<compile_context>
chip_gen: v5e
topology: v5e:2x2
jax: 0.10.0
libtpu: 0.0.40
codegen_flags: <defaults>
</compile_context>

<pallas_src>
import jax
import jax.numpy as jnp
from jax.experimental import pallas as pl
from jax.experimental.pallas import tpu as pltpu

# ---------------- configuration (small, consistent with the module) ----------
B = 2            # batch
DIM = 8          # feature dim of Conditioning
FMAP = 16        # fmap_size == image_size
PATCH = 4        # ViT patch size
HEADS = 2        # ViT heads
DIM_HEAD = 16    # ViT dim_head
DEPTH = 2        # ViT transformer depth
GROUPS = 8       # GroupNorm groups in ResnetBlock
MULT = 4         # FeedForward expansion
EPS = 1e-5       # float32 eps (matches PyTorch branch for float32)

NPH = FMAP // PATCH                      # patches per side (4)
NUM_TOKENS = NPH * NPH                   # ViT sequence length (16)
PATCH_DIM = (4 * DIM) * PATCH * PATCH    # ViT input patch dim (512)
OUT_PATCH_DIM = DIM * PATCH * PATCH      # ViT output patch dim (128)
HIDDEN = HEADS * DIM_HEAD                # attention hidden dim (32)
FF_INNER = DIM * MULT                    # FeedForward inner dim (32)

assert DIM == GROUPS, "GroupNorm is specialized to groups == channels (8/8)"
assert 3 * HIDDEN + FF_INNER == 128      # packed per-depth w_in is lane-dense


# ============================== helpers (in-kernel) ==========================

def _ln_last(t):
    """LayerNorm core over the last axis (biased var, matches PyTorch)."""
    m = jnp.mean(t, axis=-1, keepdims=True)
    v = jnp.mean(jnp.square(t - m), axis=-1, keepdims=True)
    return (t - m) * jax.lax.rsqrt(v + EPS)


_SQRT_HALF = 0.7071067811865476


def _gelu_exact(x):
    # exact GELU = x * 0.5 * (1 + erf(x / sqrt(2)))
    # erf via Abramowitz-Stegun 7.1.26 (|err| < 1.5e-7), built only from ops
    # with guaranteed Mosaic lowerings (exp, div, select).
    z = x * _SQRT_HALF
    az = jnp.abs(z)
    t = 1.0 / (1.0 + 0.3275911 * az)
    poly = t * (0.254829592 + t * (-0.284496736 + t * (1.421413741
               + t * (-1.453152027 + t * 1.061405429))))
    erf_abs = 1.0 - poly * jnp.exp(-az * az)
    erf = jnp.where(z < 0, -erf_abs, erf_abs)
    return x * 0.5 * (1.0 + erf)


# ============================== fused ViT kernel ==============================
#
# Packed weight layout:
#   vec8     : (27, DIM)        rows [0:16]=pos_emb, 16=tok_b, 17=tok_ln_g,
#                               18=out_ln_g, [19:21]=attn_ln_g(d), [21:23]=attn_out_b(d),
#                               [23:25]=ff_ln_g(d), [25:27]=ff_b2(d)
#   w_in     : (DEPTH, 9, 128)  [d,0:8,0:32]=q (heads on cols), [.,32:64]=k,
#                               [.,64:96]=v, [.,96:128]=ff_w1, [d,8,96:128]=ff_b1
#   w_out    : (DEPTH, 64, 8)   rows 0:32 = attn out-proj (heads on rows),
#                               rows 32:64 = ff_w2
#   patch_wb : (9, 128)         rows 0:8 = to_patches weight, row 8 = bias

def _vit_kernel(patches_ref, tok_w_ref, vec8_ref, w_in_ref, w_out_ref,
                patch_wb_ref, o_ref):
    """One batch element: the whole ViT stays in VMEM / vregs."""
    scale = DIM_HEAD ** -0.5

    vec8 = vec8_ref[...]                                       # (27, DIM)
    pos = vec8[0:NUM_TOKENS, :]
    tok_b = vec8[16:17, :]
    tok_ln_g = vec8[17:18, :]
    out_ln_g = vec8[18:19, :]

    x = patches_ref[0].astype(jnp.float32)                     # (L, 512)
    # to_tokens: 1x1 conv (matmul + bias) + LayerNorm (g only) + pos_emb
    toks = jnp.dot(x, tok_w_ref[...],
                   preferred_element_type=jnp.float32) + tok_b
    toks = _ln_last(toks) * tok_ln_g + pos                     # (L, DIM)

    for d in range(DEPTH):
        w_in = w_in_ref[d]                                     # (9, 128)
        w_out = w_out_ref[d]                                   # (64, 8)
        attn_ln_g = vec8[19 + d:20 + d, :]
        attn_out_b = vec8[21 + d:22 + d, :]
        ff_ln_g = vec8[23 + d:24 + d, :]
        ff_b2 = vec8[25 + d:26 + d, :]

        # ----- Residual(Attention): one fused qkv matmul (16,8)x(8,96) -----
        normed = _ln_last(toks) * attn_ln_g
        qkv = jnp.dot(normed, w_in[0:DIM, 0:3 * HIDDEN],
                      preferred_element_type=jnp.float32)      # (L, 96)
        heads_out = []
        for h in range(HEADS):
            q = qkv[:, h * DIM_HEAD:(h + 1) * DIM_HEAD] * scale
            k = qkv[:, HIDDEN + h * DIM_HEAD: HIDDEN + (h + 1) * DIM_HEAD]
            v = qkv[:, 2 * HIDDEN + h * DIM_HEAD: 2 * HIDDEN + (h + 1) * DIM_HEAD]
            sim = jax.lax.dot_general(q, k, (((1,), (1,)), ((), ())),
                                      preferred_element_type=jnp.float32)
            sim = sim - jnp.max(sim, axis=-1, keepdims=True)
            e = jnp.exp(sim)
            attn = e / jnp.sum(e, axis=-1, keepdims=True)      # exact softmax
            heads_out.append(jnp.dot(attn, v,
                                     preferred_element_type=jnp.float32))
        o_cat = jnp.concatenate(heads_out, axis=-1)            # (L, 32)
        attn_out = jnp.dot(o_cat, w_out[0:HIDDEN, :],
                           preferred_element_type=jnp.float32) + attn_out_b
        toks = toks + attn_out

        # ----- Residual(FeedForward) -----
        normed = _ln_last(toks) * ff_ln_g
        h1 = (jnp.dot(normed, w_in[0:DIM, 3 * HIDDEN:],
                      preferred_element_type=jnp.float32)
              + w_in[DIM:DIM + 1, 3 * HIDDEN:])                # (L, 32)
        h1 = _gelu_exact(h1)
        h2 = jnp.dot(h1, w_out[HIDDEN:, :],
                     preferred_element_type=jnp.float32) + ff_b2
        toks = toks + h2

    # to_patches (zero-initialized conv => zero map; executed for fidelity)
    t = _ln_last(toks) * out_ln_g
    o_ref[0] = (jnp.dot(t, patch_wb_ref[0:DIM, :],
                        preferred_element_type=jnp.float32)
                + patch_wb_ref[DIM:DIM + 1, :]).astype(o_ref.dtype)  # (L, 128)


def vit_fused(p, patches):
    """patches: (B, L, PATCH_DIM) -> (B, L, OUT_PATCH_DIM)."""
    Bn, L, PD = patches.shape
    weights = [p['vit_tok_w'], p['vit_vec8'], p['vit_w_in'],
               p['vit_w_out'], p['vit_patch_wb']]

    def fullspec(a):
        return pl.BlockSpec(a.shape, lambda b, n=a.ndim: (0,) * n)

    return pl.pallas_call(
        _vit_kernel,
        out_shape=jax.ShapeDtypeStruct((Bn, L, OUT_PATCH_DIM), jnp.float32),
        grid_spec=pltpu.PrefetchScalarGridSpec(
            num_scalar_prefetch=0, grid=(Bn,),
            in_specs=[pl.BlockSpec((1, L, PD), lambda b: (b, 0, 0))]
                     + [fullspec(w) for w in weights],
            out_specs=pl.BlockSpec((1, L, OUT_PATCH_DIM), lambda b: (b, 0, 0))),
        compiler_params=pltpu.CompilerParams(dimension_semantics=("parallel",)),
    )(patches, *weights)


# =================== fused conditioning + ResnetBlock kernel =================
#
# Channels-first layout: every tensor is (C=8, HW=256) = two full f32 vregs.
# Packed weights:
#   chan_vec : (C, 10)  cols 0..3 = LN(in) g,b / LN(cond) g,b ;
#                       4..6 = block1 conv_b, gn_g, gn_b ; 7..9 = block2 ditto
#   conv_w   : (2, C, 9*C)  conv_w[blk, co, k*C + ci] == torch_w[co, ci, ky, kx]
#                           with k = ky*3 + kx  (already transposed for matmul)

def _cond_resblock_kernel(x_ref, c_ref, chan_ref, conv_w_ref, o_ref):
    """One batch element: LN(x)*LN(c)*c then conv/GN/SiLU x2 + residual."""
    H = W = FMAP
    C = DIM
    HW = H * W

    x = x_ref[0].astype(jnp.float32)                           # (C, HW)
    c = c_ref[0].astype(jnp.float32)
    chan = chan_ref[...]                                       # (C, 10)

    def col(i):                                                # (C, 1)
        return chan[:, i:i + 1]

    # pixel-wise LayerNorm over channels == sublane reduction
    def chan_ln(t, g, b):
        m = jnp.mean(t, axis=0, keepdims=True)
        v = jnp.mean(jnp.square(t - m), axis=0, keepdims=True)
        return (t - m) * jax.lax.rsqrt(v + EPS) * g + b

    # c <- LayerNorm(x) * LayerNorm(c) * c
    c_new = chan_ln(x, col(0), col(1)) * chan_ln(c, col(2), col(3)) * c

    # ----- border-validity masks for the 9 conv taps (computed once) -----
    pos = jax.lax.broadcasted_iota(jnp.int32, (C, HW), 1)      # flat pixel id
    xcol = pos % W                                             # column index
    ok_y = (pos >= W, None, pos < (H - 1) * W)                 # ky = 0,1,2
    ok_x = (xcol >= 1, None, xcol <= W - 2)                    # kx = 0,1,2

    def conv3x3(src, w):
        """src (C, HW), w (C, 9*C) -> (C, HW). 9 lane-rolls + one matmul."""
        taps = []
        for k in range(9):
            ky, kx = k // 3, k % 3
            s = (ky - 1) * W + (kx - 1)                        # source offset
            t = src if s == 0 else pltpu.roll(src, shift=(-s) % HW, axis=1)
            m = ok_y[ky]
            mx = ok_x[kx]
            if m is None:
                m = mx
            elif mx is not None:
                m = jnp.logical_and(m, mx)
            if m is not None:
                t = jnp.where(m, t, 0.0)
            taps.append(t)
        tapmat = jnp.concatenate(taps, axis=0)                 # (9*C, HW)
        return jnp.dot(w, tapmat, preferred_element_type=jnp.float32)

    def gn_silu(t, g, b):
        # groups == channels => per-channel stats over H*W == lane reduction
        m = jnp.mean(t, axis=1, keepdims=True)
        v = jnp.mean(jnp.square(t - m), axis=1, keepdims=True)
        y = (t - m) * jax.lax.rsqrt(v + EPS) * g + b
        return y * jax.nn.sigmoid(y)                           # SiLU

    # TODO(synk): data-dependent std<1e-6 noise-injection / NaN-guard print
    # branches (pure diagnostics in the PyTorch code) are skipped.
    h = gn_silu(conv3x3(c_new, conv_w_ref[0]) + col(4), col(5), col(6))
    h = gn_silu(conv3x3(h, conv_w_ref[1]) + col(7), col(8), col(9))
    o_ref[0] = (h + c_new).astype(o_ref.dtype)                 # identity res_conv


def cond_resblock_fused(p, x_cf, c_cf):
    """x_cf, c_cf: (B, DIM, H*W) channels-first -> (B, DIM, H*W)."""
    Bn, C, HW = x_cf.shape
    weights = [p['cond_chan_vec'], p['cond_conv_w']]

    def fullspec(a):
        return pl.BlockSpec(a.shape, lambda b, n=a.ndim: (0,) * n)

    return pl.pallas_call(
        _cond_resblock_kernel,
        out_shape=jax.ShapeDtypeStruct((Bn, C, HW), x_cf.dtype),
        grid_spec=pltpu.PrefetchScalarGridSpec(
            num_scalar_prefetch=0, grid=(Bn,),
            in_specs=[pl.BlockSpec((1, C, HW), lambda b: (b, 0, 0)),
                      pl.BlockSpec((1, C, HW), lambda b: (b, 0, 0))]
                     + [fullspec(w) for w in weights],
            out_specs=pl.BlockSpec((1, C, HW), lambda b: (b, 0, 0))),
        compiler_params=pltpu.CompilerParams(dimension_semantics=("parallel",)),
    )(x_cf, c_cf, *weights)


# ============================== params / glue =================================

def init_params(key):
    ks = iter(jax.random.split(key, 10))

    def nrm(shape, scale=0.02):
        return scale * jax.random.normal(next(ks), shape, jnp.float32)

    p = {}
    # ----- Conditioning -----
    p['ff_parser_attn_map'] = jnp.ones((DIM, FMAP, FMAP), jnp.float32)

    # ----- ViT (dim=DIM, channels=4*DIM, channels_out=DIM) -----
    p['vit_tok_w'] = nrm((PATCH_DIM, DIM))                 # 1x1 conv as matmul
    vec8 = jnp.zeros((27, DIM), jnp.float32)               # pos_emb rows 0:16 = 0
    vec8 = vec8.at[17].set(1.0)                            # tok LN gamma
    vec8 = vec8.at[18].set(1.0)                            # out LN gamma
    vec8 = vec8.at[19:21].set(1.0)                         # attn prenorm gammas
    vec8 = vec8.at[23:25].set(1.0)                         # ff prenorm gammas
    p['vit_vec8'] = vec8

    w_in = jnp.zeros((DEPTH, DIM + 1, 128), jnp.float32)
    w_in = w_in.at[:, 0:DIM, 0:HIDDEN].set(nrm((DEPTH, DIM, HIDDEN)))          # q
    w_in = w_in.at[:, 0:DIM, HIDDEN:2 * HIDDEN].set(nrm((DEPTH, DIM, HIDDEN))) # k
    w_in = w_in.at[:, 0:DIM, 2 * HIDDEN:3 * HIDDEN].set(nrm((DEPTH, DIM, HIDDEN)))  # v
    w_in = w_in.at[:, 0:DIM, 3 * HIDDEN:].set(nrm((DEPTH, DIM, FF_INNER)))     # ff_w1
    p['vit_w_in'] = w_in                                   # ff_b1 (row 8) stays 0

    w_out = jnp.zeros((DEPTH, HIDDEN + FF_INNER, DIM), jnp.float32)
    w_out = w_out.at[:, 0:HIDDEN, :].set(nrm((DEPTH, HIDDEN, DIM)))     # attn out
    w_out = w_out.at[:, HIDDEN:, :].set(nrm((DEPTH, FF_INNER, DIM)))    # ff_w2
    p['vit_w_out'] = w_out

    # to_patches conv is zero-initialized in the module (nn.init.zeros_)
    p['vit_patch_wb'] = jnp.zeros((DIM + 1, OUT_PATCH_DIM), jnp.float32)

    # ----- ResnetBlock(dim, dim): two Blocks, identity res_conv -----
    cv = jnp.zeros((DIM, 10), jnp.float32)
    cv = cv.at[:, 0].set(1.0)                              # norm_input gamma
    cv = cv.at[:, 2].set(1.0)                              # norm_cond gamma
    cv = cv.at[:, 5].set(1.0)                              # block1 GN gamma
    cv = cv.at[:, 8].set(1.0)                              # block2 GN gamma
    p['cond_chan_vec'] = cv
    # conv_w[blk, co, k*Cin + ci] == torch_w[co, ci, ky, kx], k = ky*3 + kx
    p['cond_conv_w'] = nrm((2, DIM, 9 * DIM))
    return p


def conditioning_forward(p, x, c):
    """x, c: NCHW (B, DIM, FMAP, FMAP) float32 -> NCHW (B, DIM, FMAP, FMAP)."""
    Bn, D, H, W = x.shape
    dtype = x.dtype

    # TODO(synk): FFT/iFFT have no Pallas primitive; computed with jnp.fft (glue).
    x_f = jnp.fft.fft2(x)
    c_f = jnp.fft.fft2(c)

    def as_real_interleaved(t):          # 'b d h w ri -> b (d ri) h w'
        return jnp.stack((jnp.real(t), jnp.imag(t)), axis=2).reshape(Bn, 2 * D, H, W)

    dyn_in = jnp.concatenate((as_real_interleaved(x_f), as_real_interleaved(c_f)),
                             axis=1).astype(jnp.float32)            # (B, 4D, H, W)

    # ---- dynamic ff-parser map via the single fused ViT kernel ----
    c4 = 4 * D
    patches = dyn_in.reshape(Bn, c4, NPH, PATCH, NPH, PATCH)
    patches = patches.transpose(0, 2, 4, 1, 3, 5).reshape(
        Bn, NUM_TOKENS, c4 * PATCH * PATCH)                         # (B, L, 512)
    vit_out = vit_fused(p, patches)                                 # (B, L, 128)
    dyn_map = vit_out.reshape(Bn, NPH, NPH, D, PATCH, PATCH)
    dyn_map = dyn_map.transpose(0, 3, 1, 4, 2, 5).reshape(Bn, D, H, W)

    ff_map = p['ff_parser_attn_map'][None] + dyn_map                # (B, D, H, W)

    # FFT-domain modulation + inverse FFT (jnp; multiply fuses with the FFTs)
    x_sp = jnp.real(jnp.fft.ifft2(x_f * ff_map)).astype(dtype)

    # ---- fused conditioning product + full ResnetBlock kernel ----
    # channels-first (B, C, HW) layout: lane-dense, no transposes needed.
    x_cf = x_sp.reshape(Bn, D, H * W)
    c_cf = c.reshape(Bn, D, H * W)
    out_cf = cond_resblock_fused(p, x_cf, c_cf)                     # (B, D, HW)
    return out_cf.reshape(Bn, D, H, W)


# ================================== main =====================================

if __name__ == "__main__":
    key = jax.random.PRNGKey(0)
    kp, kx, kc = jax.random.split(key, 3)
    params = init_params(kp)
    x = jax.random.normal(kx, (B, DIM, FMAP, FMAP), jnp.float32)
    c = jax.random.normal(kc, (B, DIM, FMAP, FMAP), jnp.float32)

    out = jax.jit(conditioning_forward)(params, x, c)
    out = jax.block_until_ready(out)

    assert out.shape == (B, DIM, FMAP, FMAP), out.shape
    assert bool(jnp.all(jnp.isfinite(out)))
    print("KERNEL_OK")
</pallas_src>

<mosaic_0001>
module attributes {stable_mosaic.version = 11 : i64} {
  func.func @_vit_kernel(%arg0: i32, %arg1: memref<1x16x512xf32, #tpu.memory_space<vmem>>, %arg2: memref<512x8xf32, #tpu.memory_space<vmem>>, %arg3: memref<27x8xf32, #tpu.memory_space<vmem>>, %arg4: memref<2x9x128xf32, #tpu.memory_space<vmem>>, %arg5: memref<2x64x8xf32, #tpu.memory_space<vmem>>, %arg6: memref<9x128xf32, #tpu.memory_space<vmem>>, %arg7: memref<1x16x128xf32, #tpu.memory_space<vmem>>) attributes {dimension_semantics = [#tpu.dimension_semantics<parallel>], iteration_bounds = array<i64: 2>, scalar_prefetch = 0 : i64, scratch_operands = 0 : i64, tpu.core_type = #tpu.core_type<tc>, window_params = [{transform_indices = @transform_0, window_bounds = array<i64: 1, 16, 512>}, {pipeline_mode = #tpu.pipeline_mode<synchronous>, transform_indices = @transform_1, window_bounds = array<i64: 512, 8>}, {pipeline_mode = #tpu.pipeline_mode<synchronous>, transform_indices = @transform_2, window_bounds = array<i64: 27, 8>}, {pipeline_mode = #tpu.pipeline_mode<synchronous>, transform_indices = @transform_3, window_bounds = array<i64: 2, 9, 128>}, {pipeline_mode = #tpu.pipeline_mode<synchronous>, transform_indices = @transform_4, window_bounds = array<i64: 2, 64, 8>}, {pipeline_mode = #tpu.pipeline_mode<synchronous>, transform_indices = @transform_5, window_bounds = array<i64: 9, 128>}, {transform_indices = @transform_6, window_bounds = array<i64: 1, 16, 128>}]} {
    %c0 = arith.constant 0 : index
    %c0_0 = arith.constant 0 : index
    %0 = vector.load %arg3[%c0, %c0_0] : memref<27x8xf32, #tpu.memory_space<vmem>>, vector<27x8xf32>
    %1 = vector.extract_strided_slice %0 {offsets = [0, 0], sizes = [16, 8], strides = [1, 1]} : vector<27x8xf32> to vector<16x8xf32>
    %2 = vector.extract_strided_slice %0 {offsets = [16, 0], sizes = [1, 8], strides = [1, 1]} : vector<27x8xf32> to vector<1x8xf32>
    %3 = vector.extract_strided_slice %0 {offsets = [17, 0], sizes = [1, 8], strides = [1, 1]} : vector<27x8xf32> to vector<1x8xf32>
    %4 = vector.extract_strided_slice %0 {offsets = [18, 0], sizes = [1, 8], strides = [1, 1]} : vector<27x8xf32> to vector<1x8xf32>
    %c0_1 = arith.constant 0 : index
    %c0_2 = arith.constant 0 : index
    %c0_3 = arith.constant 0 : index
    %5 = vector.load %arg1[%c0_1, %c0_2, %c0_3] : memref<1x16x512xf32, #tpu.memory_space<vmem>>, vector<1x16x512xf32>
    %6 = vector.shape_cast %5 : vector<1x16x512xf32> to vector<16x512xf32>
    %c0_4 = arith.constant 0 : index
    %c0_5 = arith.constant 0 : index
    %7 = vector.load %arg2[%c0_4, %c0_5] : memref<512x8xf32, #tpu.memory_space<vmem>>, vector<512x8xf32>
    %cst = arith.constant dense<0.000000e+00> : vector<16x8xf32>
    %8 = tpu.matmul %6, %7, %cst {dimension_numbers = #tpu.dot_dimension_numbers<[1], [0], [0], [1], [0, 0, 1, 1], [], []>} : vector<16x512xf32>, vector<512x8xf32>, vector<16x8xf32> -> vector<16x8xf32>
    %9 = vector.broadcast %2 : vector<1x8xf32> to vector<16x8xf32>
    %10 = arith.addf %8, %9 : vector<16x8xf32>
    %cst_6 = arith.constant dense<0.000000e+00> : vector<16xf32>
    %11 = vector.multi_reduction <add>, %10, %cst_6 [1] : vector<16x8xf32> to vector<16xf32>
    %12 = vector.shape_cast %11 : vector<16xf32> to vector<16x1xf32>
    %cst_7 = arith.constant 8.000000e+00 : f32
    %13 = vector.broadcast %cst_7 : f32 to vector<16x1xf32>
    %14 = arith.divf %12, %13 : vector<16x1xf32>
    %15 = vector.broadcast %14 : vector<16x1xf32> to vector<16x8xf32>
    %16 = arith.subf %10, %15 : vector<16x8xf32>
    %17 = arith.mulf %16, %16 : vector<16x8xf32>
    %cst_8 = arith.constant dense<0.000000e+00> : vector<16xf32>
    %18 = vector.multi_reduction <add>, %17, %cst_8 [1] : vector<16x8xf32> to vector<16xf32>
    %19 = vector.shape_cast %18 : vector<16xf32> to vector<16x1xf32>
    %cst_9 = arith.constant 8.000000e+00 : f32
    %20 = vector.broadcast %cst_9 : f32 to vector<16x1xf32>
    %21 = arith.divf %19, %20 : vector<16x1xf32>
    %22 = vector.broadcast %14 : vector<16x1xf32> to vector<16x8xf32>
    %23 = arith.subf %10, %22 : vector<16x8xf32>
    %cst_10 = arith.constant 9.99999974E-6 : f32
    %24 = vector.broadcast %cst_10 : f32 to vector<16x1xf32>
    %25 = arith.addf %21, %24 : vector<16x1xf32>
    %26 = math.rsqrt %25 : vector<16x1xf32>
    %27 = vector.broadcast %26 : vector<16x1xf32> to vector<16x8xf32>
    %28 = arith.mulf %23, %27 : vector<16x8xf32>
    %29 = vector.broadcast %3 : vector<1x8xf32> to vector<16x8xf32>
    %30 = arith.mulf %28, %29 : vector<16x8xf32>
    %31 = arith.addf %30, %1 : vector<16x8xf32>
    %c0_11 = arith.constant 0 : index
    %c0_12 = arith.constant 0 : index
    %c0_13 = arith.constant 0 : index
    %32 = vector.load %arg4[%c0_11, %c0_12, %c0_13] : memref<2x9x128xf32, #tpu.memory_space<vmem>>, vector<1x9x128xf32>
    %33 = vector.shape_cast %32 : vector<1x9x128xf32> to vector<9x128xf32>
    %c0_14 = arith.constant 0 : index
    %c0_15 = arith.constant 0 : index
    %c0_16 = arith.constant 0 : index
    %34 = vector.load %arg5[%c0_14, %c0_15, %c0_16] : memref<2x64x8xf32, #tpu.memory_space<vmem>>, vector<1x64x8xf32>
    %35 = vector.shape_cast %34 : vector<1x64x8xf32> to vector<64x8xf32>
    %36 = vector.extract_strided_slice %0 {offsets = [19, 0], sizes = [1, 8], strides = [1, 1]} : vector<27x8xf32> to vector<1x8xf32>
    %37 = vector.extract_strided_slice %0 {offsets = [21, 0], sizes = [1, 8], strides = [1, 1]} : vector<27x8xf32> to vector<1x8xf32>
    %38 = vector.extract_strided_slice %0 {offsets = [23, 0], sizes = [1, 8], strides = [1, 1]} : vector<27x8xf32> to vector<1x8xf32>
    %39 = vector.extract_strided_slice %0 {offsets = [25, 0], sizes = [1, 8], strides = [1, 1]} : vector<27x8xf32> to vector<1x8xf32>
    %cst_17 = arith.constant dense<0.000000e+00> : vector<16xf32>
    %40 = vector.multi_reduction <add>, %31, %cst_17 [1] : vector<16x8xf32> to vector<16xf32>
    %41 = vector.shape_cast %40 : vector<16xf32> to vector<16x1xf32>
    %cst_18 = arith.constant 8.000000e+00 : f32
    %42 = vector.broadcast %cst_18 : f32 to vector<16x1xf32>
    %43 = arith.divf %41, %42 : vector<16x1xf32>
    %44 = vector.broadcast %43 : vector<16x1xf32> to vector<16x8xf32>
    %45 = arith.subf %31, %44 : vector<16x8xf32>
    %46 = arith.mulf %45, %45 : vector<16x8xf32>
    %cst_19 = arith.constant dense<0.000000e+00> : vector<16xf32>
    %47 = vector.multi_reduction <add>, %46, %cst_19 [1] : vector<16x8xf32> to vector<16xf32>
    %48 = vector.shape_cast %47 : vector<16xf32> to vector<16x1xf32>
    %cst_20 = arith.constant 8.000000e+00 : f32
    %49 = vector.broadcast %cst_20 : f32 to vector<16x1xf32>
    %50 = arith.divf %48, %49 : vector<16x1xf32>
    %51 = vector.broadcast %43 : vector<16x1xf32> to vector<16x8xf32>
    %52 = arith.subf %31, %51 : vector<16x8xf32>
    %cst_21 = arith.constant 9.99999974E-6 : f32
    %53 = vector.broadcast %cst_21 : f32 to vector<16x1xf32>
    %54 = arith.addf %50, %53 : vector<16x1xf32>
    %55 = math.rsqrt %54 : vector<16x1xf32>
    %56 = vector.broadcast %55 : vector<16x1xf32> to vector<16x8xf32>
    %57 = arith.mulf %52, %56 : vector<16x8xf32>
    %58 = vector.broadcast %36 : vector<1x8xf32> to vector<16x8xf32>
    %59 = arith.mulf %57, %58 : vector<16x8xf32>
    %60 = vector.extract_strided_slice %33 {offsets = [0, 0], sizes = [8, 96], strides = [1, 1]} : vector<9x128xf32> to vector<8x96xf32>
    %cst_22 = arith.constant dense<0.000000e+00> : vector<16x96xf32>
    %61 = tpu.matmul %59, %60, %cst_22 {dimension_numbers = #tpu.dot_dimension_numbers<[1], [0], [0], [1], [0, 0, 1, 1], [], []>} : vector<16x8xf32>, vector<8x96xf32>, vector<16x96xf32> -> vector<16x96xf32>
    %62 = vector.extract_strided_slice %61 {offsets = [0, 0], sizes = [16, 16], strides = [1, 1]} : vector<16x96xf32> to vector<16x16xf32>
    %cst_23 = arith.constant 2.500000e-01 : f32
    %63 = vector.broadcast %cst_23 : f32 to vector<16x16xf32>
    %64 = arith.mulf %62, %63 : vector<16x16xf32>
    %65 = vector.extract_strided_slice %61 {offsets = [0, 32], sizes = [16, 16], strides = [1, 1]} : vector<16x96xf32> to vector<16x16xf32>
    %66 = vector.extract_strided_slice %61 {offsets = [0, 64], sizes = [16, 16], strides = [1, 1]} : vector<16x96xf32> to vector<16x16xf32>
    %cst_24 = arith.constant dense<0.000000e+00> : vector<16x16xf32>
    %67 = tpu.matmul %64, %65, %cst_24 {dimension_numbers = #tpu.dot_dimension_numbers<[1], [1], [0], [0], [0, 0, 1, 0], [], []>} : vector<16x16xf32>, vector<16x16xf32>, vector<16x16xf32> -> vector<16x16xf32>
    %cst_25 = arith.constant dense<0xFF800000> : vector<16xf32>
    %68 = vector.multi_reduction <maximumf>, %67, %cst_25 [1] : vector<16x16xf32> to vector<16xf32>
    %69 = vector.shape_cast %68 : vector<16xf32> to vector<16x1xf32>
    %70 = vector.broadcast %69 : vector<16x1xf32> to vector<16x16xf32>
    %71 = arith.subf %67, %70 : vector<16x16xf32>
    %72 = math.exp %71 : vector<16x16xf32>
    %cst_26 = arith.constant dense<0.000000e+00> : vector<16xf32>
    %73 = vector.multi_reduction <add>, %72, %cst_26 [1] : vector<16x16xf32> to vector<16xf32>
    %74 = vector.shape_cast %73 : vector<16xf32> to vector<16x1xf32>
    %75 = vector.broadcast %74 : vector<16x1xf32> to vector<16x16xf32>
    %76 = arith.divf %72, %75 : vector<16x16xf32>
    %cst_27 = arith.constant dense<0.000000e+00> : vector<16x16xf32>
    %77 = tpu.matmul %76, %66, %cst_27 {dimension_numbers = #tpu.dot_dimension_numbers<[1], [0], [0], [1], [0, 0, 1, 1], [], []>} : vector<16x16xf32>, vector<16x16xf32>, vector<16x16xf32> -> vector<16x16xf32>
    %78 = vector.extract_strided_slice %61 {offsets = [0, 16], sizes = [16, 16], strides = [1, 1]} : vector<16x96xf32> to vector<16x16xf32>
    %cst_28 = arith.constant 2.500000e-01 : f32
    %79 = vector.broadcast %cst_28 : f32 to vector<16x16xf32>
    %80 = arith.mulf %78, %79 : vector<16x16xf32>
    %81 = vector.extract_strided_slice %61 {offsets = [0, 48], sizes = [16, 16], strides = [1, 1]} : vector<16x96xf32> to vector<16x16xf32>
    %82 = vector.extract_strided_slice %61 {offsets = [0, 80], sizes = [16, 16], strides = [1, 1]} : vector<16x96xf32> to vector<16x16xf32>
    %cst_29 = arith.constant dense<0.000000e+00> : vector<16x16xf32>
    %83 = tpu.matmul %80, %81, %cst_29 {dimension_numbers = #tpu.dot_dimension_numbers<[1], [1], [0], [0], [0, 0, 1, 0], [], []>} : vector<16x16xf32>, vector<16x16xf32>, vector<16x16xf32> -> vector<16x16xf32>
    %cst_30 = arith.constant dense<0xFF800000> : vector<16xf32>
    %84 = vector.multi_reduction <maximumf>, %83, %cst_30 [1] : vector<16x16xf32> to vector<16xf32>
    %85 = vector.shape_cast %84 : vector<16xf32> to vector<16x1xf32>
    %86 = vector.broadcast %85 : vector<16x1xf32> to vector<16x16xf32>
    %87 = arith.subf %83, %86 : vector<16x16xf32>
    %88 = math.exp %87 : vector<16x16xf32>
    %cst_31 = arith.constant dense<0.000000e+00> : vector<16xf32>
    %89 = vector.multi_reduction <add>, %88, %cst_31 [1] : vector<16x16xf32> to vector<16xf32>
    %90 = vector.shape_cast %89 : vector<16xf32> to vector<16x1xf32>
    %91 = vector.broadcast %90 : vector<16x1xf32> to vector<16x16xf32>
    %92 = arith.divf %88, %91 : vector<16x16xf32>
    %cst_32 = arith.constant dense<0.000000e+00> : vector<16x16xf32>
    %93 = tpu.matmul %92, %82, %cst_32 {dimension_numbers = #tpu.dot_dimension_numbers<[1], [0], [0], [1], [0, 0, 1, 1], [], []>} : vector<16x16xf32>, vector<16x16xf32>, vector<16x16xf32> -> vector<16x16xf32>
    %94 = tpu.concatenate %77, %93 in 1 : vector<16x16xf32>, vector<16x16xf32> -> vector<16x32xf32>
    %95 = vector.extract_strided_slice %35 {offsets = [0, 0], sizes = [32, 8], strides = [1, 1]} : vector<64x8xf32> to vector<32x8xf32>
    %cst_33 = arith.constant dense<0.000000e+00> : vector<16x8xf32>
    %96 = tpu.matmul %94, %95, %cst_33 {dimension_numbers = #tpu.dot_dimension_numbers<[1], [0], [0], [1], [0, 0, 1, 1], [], []>} : vector<16x32xf32>, vector<32x8xf32>, vector<16x8xf32> -> vector<16x8xf32>
    %97 = vector.broadcast %37 : vector<1x8xf32> to vector<16x8xf32>
    %98 = arith.addf %96, %97 : vector<16x8xf32>
    %99 = arith.addf %31, %98 : vector<16x8xf32>
    %cst_34 = arith.constant dense<0.000000e+00> : vector<16xf32>
    %100 = vector.multi_reduction <add>, %99, %cst_34 [1] : vector<16x8xf32> to vector<16xf32>
    %101 = vector.shape_cast %100 : vector<16xf32> to vector<16x1xf32>
    %cst_35 = arith.constant 8.000000e+00 : f32
    %102 = vector.broadcast %cst_35 : f32 to vector<16x1xf32>
    %103 = arith.divf %101, %102 : vector<16x1xf32>
    %104 = vector.broadcast %103 : vector<16x1xf32> to vector<16x8xf32>
    %105 = arith.subf %99, %104 : vector<16x8xf32>
    %106 = arith.mulf %105, %105 : vector<16x8xf32>
    %cst_36 = arith.constant dense<0.000000e+00> : vector<16xf32>
    %107 = vector.multi_reduction <add>, %106, %cst_36 [1] : vector<16x8xf32> to vector<16xf32>
    %108 = vector.shape_cast %107 : vector<16xf32> to vector<16x1xf32>
    %cst_37 = arith.constant 8.000000e+00 : f32
    %109 = vector.broadcast %cst_37 : f32 to vector<16x1xf32>
    %110 = arith.divf %108, %109 : vector<16x1xf32>
    %111 = vector.broadcast %103 : vector<16x1xf32> to vector<16x8xf32>
    %112 = arith.subf %99, %111 : vector<16x8xf32>
    %cst_38 = arith.constant 9.99999974E-6 : f32
    %113 = vector.broadcast %cst_38 : f32 to vector<16x1xf32>
    %114 = arith.addf %110, %113 : vector<16x1xf32>
    %115 = math.rsqrt %114 : vector<16x1xf32>
    %116 = vector.broadcast %115 : vector<16x1xf32> to vector<16x8xf32>
    %117 = arith.mulf %112, %116 : vector<16x8xf32>
    %118 = vector.broadcast %38 : vector<1x8xf32> to vector<16x8xf32>
    %119 = arith.mulf %117, %118 : vector<16x8xf32>
    %120 = vector.extract_strided_slice %33 {offsets = [0, 96], sizes = [8, 32], strides = [1, 1]} : vector<9x128xf32> to vector<8x32xf32>
    %cst_39 = arith.constant dense<0.000000e+00> : vector<16x32xf32>
    %121 = tpu.matmul %119, %120, %cst_39 {dimension_numbers = #tpu.dot_dimension_numbers<[1], [0], [0], [1], [0, 0, 1, 1], [], []>} : vector<16x8xf32>, vector<8x32xf32>, vector<16x32xf32> -> vector<16x32xf32>
    %122 = vector.extract_strided_slice %33 {offsets = [8, 96], sizes = [1, 32], strides = [1, 1]} : vector<9x128xf32> to vector<1x32xf32>
    %123 = vector.broadcast %122 : vector<1x32xf32> to vector<16x32xf32>
    %124 = arith.addf %121, %123 : vector<16x32xf32>
    %cst_40 = arith.constant 0.707106769 : f32
    %125 = vector.broadcast %cst_40 : f32 to vector<16x32xf32>
    %126 = arith.mulf %124, %125 : vector<16x32xf32>
    %127 = math.absf %126 : vector<16x32xf32>
    %cst_41 = arith.constant 0.327591091 : f32
    %128 = vector.broadcast %cst_41 : f32 to vector<16x32xf32>
    %129 = arith.mulf %128, %127 : vector<16x32xf32>
    %cst_42 = arith.constant 1.000000e+00 : f32
    %130 = vector.broadcast %cst_42 : f32 to vector<16x32xf32>
    %131 = arith.addf %130, %129 : vector<16x32xf32>
    %cst_43 = arith.constant 1.000000e+00 : f32
    %132 = vector.broadcast %cst_43 : f32 to vector<16x32xf32>
    %133 = arith.divf %132, %131 : vector<16x32xf32>
    %cst_44 = arith.constant 1.06140542 : f32
    %134 = vector.broadcast %cst_44 : f32 to vector<16x32xf32>
    %135 = arith.mulf %133, %134 : vector<16x32xf32>
    %cst_45 = arith.constant -1.45315206 : f32
    %136 = vector.broadcast %cst_45 : f32 to vector<16x32xf32>
    %137 = arith.addf %136, %135 : vector<16x32xf32>
    %138 = arith.mulf %133, %137 : vector<16x32xf32>
    %cst_46 = arith.constant 1.42141378 : f32
    %139 = vector.broadcast %cst_46 : f32 to vector<16x32xf32>
    %140 = arith.addf %139, %138 : vector<16x32xf32>
    %141 = arith.mulf %133, %140 : vector<16x32xf32>
    %cst_47 = arith.constant -0.284496725 : f32
    %142 = vector.broadcast %cst_47 : f32 to vector<16x32xf32>
    %143 = arith.addf %142, %141 : vector<16x32xf32>
    %144 = arith.mulf %133, %143 : vector<16x32xf32>
    %cst_48 = arith.constant 0.254829586 : f32
    %145 = vector.broadcast %cst_48 : f32 to vector<16x32xf32>
    %146 = arith.addf %145, %144 : vector<16x32xf32>
    %147 = arith.mulf %133, %146 : vector<16x32xf32>
    %cst_49 = arith.constant 0.000000e+00 : f32
    %148 = vector.broadcast %cst_49 : f32 to vector<16x32xf32>
    %149 = arith.subf %148, %127 : vector<16x32xf32>
    %150 = arith.mulf %149, %127 : vector<16x32xf32>
    %151 = math.exp %150 : vector<16x32xf32>
    %152 = arith.mulf %147, %151 : vector<16x32xf32>
    %cst_50 = arith.constant 1.000000e+00 : f32
    %153 = vector.broadcast %cst_50 : f32 to vector<16x32xf32>
    %154 = arith.subf %153, %152 : vector<16x32xf32>
    %cst_51 = arith.constant 0.000000e+00 : f32
    %155 = vector.broadcast %cst_51 : f32 to vector<16x32xf32>
    %156 = arith.cmpf olt, %126, %155 : vector<16x32xf32>
    %cst_52 = arith.constant 0.000000e+00 : f32
    %157 = vector.broadcast %cst_52 : f32 to vector<16x32xf32>
    %158 = arith.subf %157, %154 : vector<16x32xf32>
    %159 = arith.select %156, %158, %154 : vector<16x32xi1>, vector<16x32xf32>
    %cst_53 = arith.constant 5.000000e-01 : f32
    %160 = vector.broadcast %cst_53 : f32 to vector<16x32xf32>
    %161 = arith.mulf %124, %160 : vector<16x32xf32>
    %cst_54 = arith.constant 1.000000e+00 : f32
    %162 = vector.broadcast %cst_54 : f32 to vector<16x32xf32>
    %163 = arith.addf %162, %159 : vector<16x32xf32>
    %164 = arith.mulf %161, %163 : vector<16x32xf32>
    %165 = vector.extract_strided_slice %35 {offsets = [32, 0], sizes = [32, 8], strides = [1, 1]} : vector<64x8xf32> to vector<32x8xf32>
    %cst_55 = arith.constant dense<0.000000e+00> : vector<16x8xf32>
    %166 = tpu.matmul %164, %165, %cst_55 {dimension_numbers = #tpu.dot_dimension_numbers<[1], [0], [0], [1], [0, 0, 1, 1], [], []>} : vector<16x32xf32>, vector<32x8xf32>, vector<16x8xf32> -> vector<16x8xf32>
    %167 = vector.broadcast %39 : vector<1x8xf32> to vector<16x8xf32>
    %168 = arith.addf %166, %167 : vector<16x8xf32>
    %169 = arith.addf %99, %168 : vector<16x8xf32>
    %c1 = arith.constant 1 : index
    %c0_56 = arith.constant 0 : index
    %c0_57 = arith.constant 0 : index
    %170 = vector.load %arg4[%c1, %c0_56, %c0_57] : memref<2x9x128xf32, #tpu.memory_space<vmem>>, vector<1x9x128xf32>
    %171 = vector.shape_cast %170 : vector<1x9x128xf32> to vector<9x128xf32>
    %c1_58 = arith.constant 1 : index
    %c0_59 = arith.constant 0 : index
    %c0_60 = arith.constant 0 : index
    %172 = vector.load %arg5[%c1_58, %c0_59, %c0_60] : memref<2x64x8xf32, #tpu.memory_space<vmem>>, vector<1x64x8xf32>
    %173 = vector.shape_cast %172 : vector<1x64x8xf32> to vector<64x8xf32>
    %174 = vector.extract_strided_slice %0 {offsets = [20, 0], sizes = [1, 8], strides = [1, 1]} : vector<27x8xf32> to vector<1x8xf32>
    %175 = vector.extract_strided_slice %0 {offsets = [22, 0], sizes = [1, 8], strides = [1, 1]} : vector<27x8xf32> to vector<1x8xf32>
    %176 = vector.extract_strided_slice %0 {offsets = [24, 0], sizes = [1, 8], strides = [1, 1]} : vector<27x8xf32> to vector<1x8xf32>
    %177 = vector.extract_strided_slice %0 {offsets = [26, 0], sizes = [1, 8], strides = [1, 1]} : vector<27x8xf32> to vector<1x8xf32>
    %cst_61 = arith.constant dense<0.000000e+00> : vector<16xf32>
    %178 = vector.multi_reduction <add>, %169, %cst_61 [1] : vector<16x8xf32> to vector<16xf32>
    %179 = vector.shape_cast %178 : vector<16xf32> to vector<16x1xf32>
    %cst_62 = arith.constant 8.000000e+00 : f32
    %180 = vector.broadcast %cst_62 : f32 to vector<16x1xf32>
    %181 = arith.divf %179, %180 : vector<16x1xf32>
    %182 = vector.broadcast %181 : vector<16x1xf32> to vector<16x8xf32>
    %183 = arith.subf %169, %182 : vector<16x8xf32>
    %184 = arith.mulf %183, %183 : vector<16x8xf32>
    %cst_63 = arith.constant dense<0.000000e+00> : vector<16xf32>
    %185 = vector.multi_reduction <add>, %184, %cst_63 [1] : vector<16x8xf32> to vector<16xf32>
    %186 = vector.shape_cast %185 : vector<16xf32> to vector<16x1xf32>
    %cst_64 = arith.constant 8.000000e+00 : f32
    %187 = vector.broadcast %cst_64 : f32 to vector<16x1xf32>
    %188 = arith.divf %186, %187 : vector<16x1xf32>
    %189 = vector.broadcast %181 : vector<16x1xf32> to vector<16x8xf32>
    %190 = arith.subf %169, %189 : vector<16x8xf32>
    %cst_65 = arith.constant 9.99999974E-6 : f32
    %191 = vector.broadcast %cst_65 : f32 to vector<16x1xf32>
    %192 = arith.addf %188, %191 : vector<16x1xf32>
    %193 = math.rsqrt %192 : vector<16x1xf32>
    %194 = vector.broadcast %193 : vector<16x1xf32> to vector<16x8xf32>
    %195 = arith.mulf %190, %194 : vector<16x8xf32>
    %196 = vector.broadcast %174 : vector<1x8xf32> to vector<16x8xf32>
    %197 = arith.mulf %195, %196 : vector<16x8xf32>
    %198 = vector.extract_strided_slice %171 {offsets = [0, 0], sizes = [8, 96], strides = [1, 1]} : vector<9x128xf32> to vector<8x96xf32>
    %cst_66 = arith.constant dense<0.000000e+00> : vector<16x96xf32>
    %199 = tpu.matmul %197, %198, %cst_66 {dimension_numbers = #tpu.dot_dimension_numbers<[1], [0], [0], [1], [0, 0, 1, 1], [], []>} : vector<16x8xf32>, vector<8x96xf32>, vector<16x96xf32> -> vector<16x96xf32>
    %200 = vector.extract_strided_slice %199 {offsets = [0, 0], sizes = [16, 16], strides = [1, 1]} : vector<16x96xf32> to vector<16x16xf32>
    %cst_67 = arith.constant 2.500000e-01 : f32
    %201 = vector.broadcast %cst_67 : f32 to vector<16x16xf32>
    %202 = arith.mulf %200, %201 : vector<16x16xf32>
    %203 = vector.extract_strided_slice %199 {offsets = [0, 32], sizes = [16, 16], strides = [1, 1]} : vector<16x96xf32> to vector<16x16xf32>
    %204 = vector.extract_strided_slice %199 {offsets = [0, 64], sizes = [16, 16], strides = [1, 1]} : vector<16x96xf32> to vector<16x16xf32>
    %cst_68 = arith.constant dense<0.000000e+00> : vector<16x16xf32>
    %205 = tpu.matmul %202, %203, %cst_68 {dimension_numbers = #tpu.dot_dimension_numbers<[1], [1], [0], [0], [0, 0, 1, 0], [], []>} : vector<16x16xf32>, vector<16x16xf32>, vector<16x16xf32> -> vector<16x16xf32>
    %cst_69 = arith.constant dense<0xFF800000> : vector<16xf32>
    %206 = vector.multi_reduction <maximumf>, %205, %cst_69 [1] : vector<16x16xf32> to vector<16xf32>
    %207 = vector.shape_cast %206 : vector<16xf32> to vector<16x1xf32>
    %208 = vector.broadcast %207 : vector<16x1xf32> to vector<16x16xf32>
    %209 = arith.subf %205, %208 : vector<16x16xf32>
    %210 = math.exp %209 : vector<16x16xf32>
    %cst_70 = arith.constant dense<0.000000e+00> : vector<16xf32>
    %211 = vector.multi_reduction <add>, %210, %cst_70 [1] : vector<16x16xf32> to vector<16xf32>
    %212 = vector.shape_cast %211 : vector<16xf32> to vector<16x1xf32>
    %213 = vector.broadcast %212 : vector<16x1xf32> to vector<16x16xf32>
    %214 = arith.divf %210, %213 : vector<16x16xf32>
    %cst_71 = arith.constant dense<0.000000e+00> : vector<16x16xf32>
    %215 = tpu.matmul %214, %204, %cst_71 {dimension_numbers = #tpu.dot_dimension_numbers<[1], [0], [0], [1], [0, 0, 1, 1], [], []>} : vector<16x16xf32>, vector<16x16xf32>, vector<16x16xf32> -> vector<16x16xf32>
    %216 = vector.extract_strided_slice %199 {offsets = [0, 16], sizes = [16, 16], strides = [1, 1]} : vector<16x96xf32> to vector<16x16xf32>
    %cst_72 = arith.constant 2.500000e-01 : f32
    %217 = vector.broadcast %cst_72 : f32 to vector<16x16xf32>
    %218 = arith.mulf %216, %217 : vector<16x16xf32>
    %219 = vector.extract_strided_slice %199 {offsets = [0, 48], sizes = [16, 16], strides = [1, 1]} : vector<16x96xf32> to vector<16x16xf32>
    %220 = vector.extract_strided_slice %199 {offsets = [0, 80], sizes = [16, 16], strides = [1, 1]} : vector<16x96xf32> to vector<16x16xf32>
    %cst_73 = arith.constant dense<0.000000e+00> : vector<16x16xf32>
    %221 = tpu.matmul %218, %219, %cst_73 {dimension_numbers = #tpu.dot_dimension_numbers<[1], [1], [0], [0], [0, 0, 1, 0], [], []>} : vector<16x16xf32>, vector<16x16xf32>, vector<16x16xf32> -> vector<16x16xf32>
    %cst_74 = arith.constant dense<0xFF800000> : vector<16xf32>
    %222 = vector.multi_reduction <maximumf>, %221, %cst_74 [1] : vector<16x16xf32> to vector<16xf32>
    %223 = vector.shape_cast %222 : vector<16xf32> to vector<16x1xf32>
    %224 = vector.broadcast %223 : vector<16x1xf32> to vector<16x16xf32>
    %225 = arith.subf %221, %224 : vector<16x16xf32>
    %226 = math.exp %225 : vector<16x16xf32>
    %cst_75 = arith.constant dense<0.000000e+00> : vector<16xf32>
    %227 = vector.multi_reduction <add>, %226, %cst_75 [1] : vector<16x16xf32> to vector<16xf32>
    %228 = vector.shape_cast %227 : vector<16xf32> to vector<16x1xf32>
    %229 = vector.broadcast %228 : vector<16x1xf32> to vector<16x16xf32>
    %230 = arith.divf %226, %229 : vector<16x16xf32>
    %cst_76 = arith.constant dense<0.000000e+00> : vector<16x16xf32>
    %231 = tpu.matmul %230, %220, %cst_76 {dimension_numbers = #tpu.dot_dimension_numbers<[1], [0], [0], [1], [0, 0, 1, 1], [], []>} : vector<16x16xf32>, vector<16x16xf32>, vector<16x16xf32> -> vector<16x16xf32>
    %232 = tpu.concatenate %215, %231 in 1 : vector<16x16xf32>, vector<16x16xf32> -> vector<16x32xf32>
    %233 = vector.extract_strided_slice %173 {offsets = [0, 0], sizes = [32, 8], strides = [1, 1]} : vector<64x8xf32> to vector<32x8xf32>
    %cst_77 = arith.constant dense<0.000000e+00> : vector<16x8xf32>
    %234 = tpu.matmul %232, %233, %cst_77 {dimension_numbers = #tpu.dot_dimension_numbers<[1], [0], [0], [1], [0, 0, 1, 1], [], []>} : vector<16x32xf32>, vector<32x8xf32>, vector<16x8xf32> -> vector<16x8xf32>
    %235 = vector.broadcast %175 : vector<1x8xf32> to vector<16x8xf32>
    %236 = arith.addf %234, %235 : vector<16x8xf32>
    %237 = arith.addf %169, %236 : vector<16x8xf32>
    %cst_78 = arith.constant dense<0.000000e+00> : vector<16xf32>
    %238 = vector.multi_reduction <add>, %237, %cst_78 [1] : vector<16x8xf32> to vector<16xf32>
    %239 = vector.shape_cast %238 : vector<16xf32> to vector<16x1xf32>
    %cst_79 = arith.constant 8.000000e+00 : f32
    %240 = vector.broadcast %cst_79 : f32 to vector<16x1xf32>
    %241 = arith.divf %239, %240 : vector<16x1xf32>
    %242 = vector.broadcast %241 : vector<16x1xf32> to vector<16x8xf32>
    %243 = arith.subf %237, %242 : vector<16x8xf32>
    %244 = arith.mulf %243, %243 : vector<16x8xf32>
    %cst_80 = arith.constant dense<0.000000e+00> : vector<16xf32>
    %245 = vector.multi_reduction <add>, %244, %cst_80 [1] : vector<16x8xf32> to vector<16xf32>
    %246 = vector.shape_cast %245 : vector<16xf32> to vector<16x1xf32>
    %cst_81 = arith.constant 8.000000e+00 : f32
    %247 = vector.broadcast %cst_81 : f32 to vector<16x1xf32>
    %248 = arith.divf %246, %247 : vector<16x1xf32>
    %249 = vector.broadcast %241 : vector<16x1xf32> to vector<16x8xf32>
    %250 = arith.subf %237, %249 : vector<16x8xf32>
    %cst_82 = arith.constant 9.99999974E-6 : f32
    %251 = vector.broadcast %cst_82 : f32 to vector<16x1xf32>
    %252 = arith.addf %248, %251 : vector<16x1xf32>
    %253 = math.rsqrt %252 : vector<16x1xf32>
    %254 = vector.broadcast %253 : vector<16x1xf32> to vector<16x8xf32>
    %255 = arith.mulf %250, %254 : vector<16x8xf32>
    %256 = vector.broadcast %176 : vector<1x8xf32> to vector<16x8xf32>
    %257 = arith.mulf %255, %256 : vector<16x8xf32>
    %258 = vector.extract_strided_slice %171 {offsets = [0, 96], sizes = [8, 32], strides = [1, 1]} : vector<9x128xf32> to vector<8x32xf32>
    %cst_83 = arith.constant dense<0.000000e+00> : vector<16x32xf32>
    %259 = tpu.matmul %257, %258, %cst_83 {dimension_numbers = #tpu.dot_dimension_numbers<[1], [0], [0], [1], [0, 0, 1, 1], [], []>} : vector<16x8xf32>, vector<8x32xf32>, vector<16x32xf32> -> vector<16x32xf32>
    %260 = vector.extract_strided_slice %171 {offsets = [8, 96], sizes = [1, 32], strides = [1, 1]} : vector<9x128xf32> to vector<1x32xf32>
    %261 = vector.broadcast %260 : vector<1x32xf32> to vector<16x32xf32>
    %262 = arith.addf %259, %261 : vector<16x32xf32>
    %cst_84 = arith.constant 0.707106769 : f32
    %263 = vector.broadcast %cst_84 : f32 to vector<16x32xf32>
    %264 = arith.mulf %262, %263 : vector<16x32xf32>
    %265 = math.absf %264 : vector<16x32xf32>
    %cst_85 = arith.constant 0.327591091 : f32
    %266 = vector.broadcast %cst_85 : f32 to vector<16x32xf32>
    %267 = arith.mulf %266, %265 : vector<16x32xf32>
    %cst_86 = arith.constant 1.000000e+00 : f32
    %268 = vector.broadcast %cst_86 : f32 to vector<16x32xf32>
    %269 = arith.addf %268, %267 : vector<16x32xf32>
    %cst_87 = arith.constant 1.000000e+00 : f32
    %270 = vector.broadcast %cst_87 : f32 to vector<16x32xf32>
    %271 = arith.divf %270, %269 : vector<16x32xf32>
    %cst_88 = arith.constant 1.06140542 : f32
    %272 = vector.broadcast %cst_88 : f32 to vector<16x32xf32>
    %273 = arith.mulf %271, %272 : vector<16x32xf32>
    %cst_89 = arith.constant -1.45315206 : f32
    %274 = vector.broadcast %cst_89 : f32 to vector<16x32xf32>
    %275 = arith.addf %274, %273 : vector<16x32xf32>
    %276 = arith.mulf %271, %275 : vector<16x32xf32>
    %cst_90 = arith.constant 1.42141378 : f32
    %277 = vector.broadcast %cst_90 : f32 to vector<16x32xf32>
    %278 = arith.addf %277, %276 : vector<16x32xf32>
    %279 = arith.mulf %271, %278 : vector<16x32xf32>
    %cst_91 = arith.constant -0.284496725 : f32
    %280 = vector.broadcast %cst_91 : f32 to vector<16x32xf32>
    %281 = arith.addf %280, %279 : vector<16x32xf32>
    %282 = arith.mulf %271, %281 : vector<16x32xf32>
    %cst_92 = arith.constant 0.254829586 : f32
    %283 = vector.broadcast %cst_92 : f32 to vector<16x32xf32>
    %284 = arith.addf %283, %282 : vector<16x32xf32>
    %285 = arith.mulf %271, %284 : vector<16x32xf32>
    %cst_93 = arith.constant 0.000000e+00 : f32
    %286 = vector.broadcast %cst_93 : f32 to vector<16x32xf32>
    %287 = arith.subf %286, %265 : vector<16x32xf32>
    %288 = arith.mulf %287, %265 : vector<16x32xf32>
    %289 = math.exp %288 : vector<16x32xf32>
    %290 = arith.mulf %285, %289 : vector<16x32xf32>
    %cst_94 = arith.constant 1.000000e+00 : f32
    %291 = vector.broadcast %cst_94 : f32 to vector<16x32xf32>
    %292 = arith.subf %291, %290 : vector<16x32xf32>
    %cst_95 = arith.constant 0.000000e+00 : f32
    %293 = vector.broadcast %cst_95 : f32 to vector<16x32xf32>
    %294 = arith.cmpf olt, %264, %293 : vector<16x32xf32>
    %cst_96 = arith.constant 0.000000e+00 : f32
    %295 = vector.broadcast %cst_96 : f32 to vector<16x32xf32>
    %296 = arith.subf %295, %292 : vector<16x32xf32>
    %297 = arith.select %294, %296, %292 : vector<16x32xi1>, vector<16x32xf32>
    %cst_97 = arith.constant 5.000000e-01 : f32
    %298 = vector.broadcast %cst_97 : f32 to vector<16x32xf32>
    %299 = arith.mulf %262, %298 : vector<16x32xf32>
    %cst_98 = arith.constant 1.000000e+00 : f32
    %300 = vector.broadcast %cst_98 : f32 to vector<16x32xf32>
    %301 = arith.addf %300, %297 : vector<16x32xf32>
    %302 = arith.mulf %299, %301 : vector<16x32xf32>
    %303 = vector.extract_strided_slice %173 {offsets = [32, 0], sizes = [32, 8], strides = [1, 1]} : vector<64x8xf32> to vector<32x8xf32>
    %cst_99 = arith.constant dense<0.000000e+00> : vector<16x8xf32>
    %304 = tpu.matmul %302, %303, %cst_99 {dimension_numbers = #tpu.dot_dimension_numbers<[1], [0], [0], [1], [0, 0, 1, 1], [], []>} : vector<16x32xf32>, vector<32x8xf32>, vector<16x8xf32> -> vector<16x8xf32>
    %305 = vector.broadcast %177 : vector<1x8xf32> to vector<16x8xf32>
    %306 = arith.addf %304, %305 : vector<16x8xf32>
    %307 = arith.addf %237, %306 : vector<16x8xf32>
    %cst_100 = arith.constant dense<0.000000e+00> : vector<16xf32>
    %308 = vector.multi_reduction <add>, %307, %cst_100 [1] : vector<16x8xf32> to vector<16xf32>
    %309 = vector.shape_cast %308 : vector<16xf32> to vector<16x1xf32>
    %cst_101 = arith.constant 8.000000e+00 : f32
    %310 = vector.broadcast %cst_101 : f32 to vector<16x1xf32>
    %311 = arith.divf %309, %310 : vector<16x1xf32>
    %312 = vector.broadcast %311 : vector<16x1xf32> to vector<16x8xf32>
    %313 = arith.subf %307, %312 : vector<16x8xf32>
    %314 = arith.mulf %313, %313 : vector<16x8xf32>
    %cst_102 = arith.constant dense<0.000000e+00> : vector<16xf32>
    %315 = vector.multi_reduction <add>, %314, %cst_102 [1] : vector<16x8xf32> to vector<16xf32>
    %316 = vector.shape_cast %315 : vector<16xf32> to vector<16x1xf32>
    %cst_103 = arith.constant 8.000000e+00 : f32
    %317 = vector.broadcast %cst_103 : f32 to vector<16x1xf32>
    %318 = arith.divf %316, %317 : vector<16x1xf32>
    %319 = vector.broadcast %311 : vector<16x1xf32> to vector<16x8xf32>
    %320 = arith.subf %307, %319 : vector<16x8xf32>
    %cst_104 = arith.constant 9.99999974E-6 : f32
    %321 = vector.broadcast %cst_104 : f32 to vector<16x1xf32>
    %322 = arith.addf %318, %321 : vector<16x1xf32>
    %323 = math.rsqrt %322 : vector<16x1xf32>
    %324 = vector.broadcast %323 : vector<16x1xf32> to vector<16x8xf32>
    %325 = arith.mulf %320, %324 : vector<16x8xf32>
    %326 = vector.broadcast %4 : vector<1x8xf32> to vector<16x8xf32>
    %327 = arith.mulf %325, %326 : vector<16x8xf32>
    %c0_105 = arith.constant 0 : index
    %c0_106 = arith.constant 0 : index
    %328 = vector.load %arg6[%c0_105, %c0_106] : memref<9x128xf32, #tpu.memory_space<vmem>>, vector<8x128xf32>
    %cst_107 = arith.constant dense<0.000000e+00> : vector<16x128xf32>
    %329 = tpu.matmul %327, %328, %cst_107 {dimension_numbers = #tpu.dot_dimension_numbers<[1], [0], [0], [1], [0, 0, 1, 1], [], []>} : vector<16x8xf32>, vector<8x128xf32>, vector<16x128xf32> -> vector<16x128xf32>
    %c8 = arith.constant 8 : index
    %c0_108 = arith.constant 0 : index
    %330 = vector.load %arg6[%c8, %c0_108] : memref<9x128xf32, #tpu.memory_space<vmem>>, vector<1x128xf32>
    %331 = vector.broadcast %330 : vector<1x128xf32> to vector<16x128xf32>
    %332 = arith.addf %329, %331 : vector<16x128xf32>
    %c0_109 = arith.constant 0 : index
    %c0_110 = arith.constant 0 : index
    %c0_111 = arith.constant 0 : index
    %333 = vector.load %arg7[%c0_109, %c0_110, %c0_111] : memref<1x16x128xf32, #tpu.memory_space<vmem>>, vector<1x16x128xf32>
    %334 = vector.shape_cast %333 : vector<1x16x128xf32> to vector<16x128xf32>
    %335 = vector.shape_cast %332 : vector<16x128xf32> to vector<1x16x128xf32>
    tpu.vector_store %arg7[%c0_109, %c0_110, %c0_111], %335 {strides = array<i32>} : memref<1x16x128xf32, #tpu.memory_space<vmem>>, vector<1x16x128xf32>,
    return
  }
  func.func @transform_0(%arg0: i32) -> (i32, i32, i32) {
    %c0_i32 = arith.constant 0 : i32
    %c0_i32_0 = arith.constant 0 : i32
    %c0_i32_1 = arith.constant 0 : i32
    return %arg0, %c0_i32, %c0_i32_0 : i32, i32, i32
  }
  func.func @transform_1(%arg0: i32) -> (i32, i32) {
    %c0_i32 = arith.constant 0 : i32
    %c0_i32_0 = arith.constant 0 : i32
    %c0_i32_1 = arith.constant 0 : i32
    return %c0_i32, %c0_i32_0 : i32, i32
  }
  func.func @transform_2(%arg0: i32) -> (i32, i32) {
    %c0_i32 = arith.constant 0 : i32
    %c0_i32_0 = arith.constant 0 : i32
    %c0_i32_1 = arith.constant 0 : i32
    return %c0_i32, %c0_i32_0 : i32, i32
  }
  func.func @transform_3(%arg0: i32) -> (i32, i32, i32) {
    %c0_i32 = arith.constant 0 : i32
    %c0_i32_0 = arith.constant 0 : i32
    %c0_i32_1 = arith.constant 0 : i32
    %c0_i32_2 = arith.constant 0 : i32
    return %c0_i32, %c0_i32_0, %c0_i32_1 : i32, i32, i32
  }
  func.func @transform_4(%arg0: i32) -> (i32, i32, i32) {
    %c0_i32 = arith.constant 0 : i32
    %c0_i32_0 = arith.constant 0 : i32
    %c0_i32_1 = arith.constant 0 : i32
    %c0_i32_2 = arith.constant 0 : i32
    return %c0_i32, %c0_i32_0, %c0_i32_1 : i32, i32, i32
  }
  func.func @transform_5(%arg0: i32) -> (i32, i32) {
    %c0_i32 = arith.constant 0 : i32
    %c0_i32_0 = arith.constant 0 : i32
    %c0_i32_1 = arith.constant 0 : i32
    return %c0_i32, %c0_i32_0 : i32, i32
  }
  func.func @transform_6(%arg0: i32) -> (i32, i32, i32) {
    %c0_i32 = arith.constant 0 : i32
    %c0_i32_0 = arith.constant 0 : i32
    %c0_i32_1 = arith.constant 0 : i32
    return %arg0, %c0_i32, %c0_i32_0 : i32, i32, i32
  }
}

module attributes {stable_mosaic.version = 11 : i64} {
  func.func @_cond_resblock_kernel(%arg0: i32, %arg1: memref<1x8x256xf32, #tpu.memory_space<vmem>>, %arg2: memref<1x8x256xf32, #tpu.memory_space<vmem>>, %arg3: memref<8x10xf32, #tpu.memory_space<vmem>>, %arg4: memref<2x8x72xf32, #tpu.memory_space<vmem>>, %arg5: memref<1x8x256xf32, #tpu.memory_space<vmem>>) attributes {dimension_semantics = [#tpu.dimension_semantics<parallel>], iteration_bounds = array<i64: 2>, scalar_prefetch = 0 : i64, scratch_operands = 0 : i64, tpu.core_type = #tpu.core_type<tc>, window_params = [{transform_indices = @transform_0, window_bounds = array<i64: 1, 8, 256>}, {transform_indices = @transform_1, window_bounds = array<i64: 1, 8, 256>}, {pipeline_mode = #tpu.pipeline_mode<synchronous>, transform_indices = @transform_2, window_bounds = array<i64: 8, 10>}, {pipeline_mode = #tpu.pipeline_mode<synchronous>, transform_indices = @transform_3, window_bounds = array<i64: 2, 8, 72>}, {transform_indices = @transform_4, window_bounds = array<i64: 1, 8, 256>}]} {
    %c0 = arith.constant 0 : index
    %c0_0 = arith.constant 0 : index
    %c0_1 = arith.constant 0 : index
    %0 = vector.load %arg1[%c0, %c0_0, %c0_1] : memref<1x8x256xf32, #tpu.memory_space<vmem>>, vector<1x8x256xf32>
    %1 = vector.shape_cast %0 : vector<1x8x256xf32> to vector<8x256xf32>
    %c0_2 = arith.constant 0 : index
    %c0_3 = arith.constant 0 : index
    %c0_4 = arith.constant 0 : index
    %2 = vector.load %arg2[%c0_2, %c0_3, %c0_4] : memref<1x8x256xf32, #tpu.memory_space<vmem>>, vector<1x8x256xf32>
    %3 = vector.shape_cast %2 : vector<1x8x256xf32> to vector<8x256xf32>
    %c0_5 = arith.constant 0 : index
    %c0_6 = arith.constant 0 : index
    %4 = vector.load %arg3[%c0_5, %c0_6] : memref<8x10xf32, #tpu.memory_space<vmem>>, vector<8x10xf32>
    %5 = vector.extract_strided_slice %4 {offsets = [0, 0], sizes = [8, 1], strides = [1, 1]} : vector<8x10xf32> to vector<8x1xf32>
    %6 = vector.extract_strided_slice %4 {offsets = [0, 1], sizes = [8, 1], strides = [1, 1]} : vector<8x10xf32> to vector<8x1xf32>
    %cst = arith.constant dense<0.000000e+00> : vector<256xf32>
    %7 = vector.multi_reduction <add>, %1, %cst [0] : vector<8x256xf32> to vector<256xf32>
    %8 = vector.shape_cast %7 : vector<256xf32> to vector<1x256xf32>
    %cst_7 = arith.constant 8.000000e+00 : f32
    %9 = vector.broadcast %cst_7 : f32 to vector<1x256xf32>
    %10 = arith.divf %8, %9 : vector<1x256xf32>
    %11 = vector.broadcast %10 : vector<1x256xf32> to vector<8x256xf32>
    %12 = arith.subf %1, %11 : vector<8x256xf32>
    %13 = arith.mulf %12, %12 : vector<8x256xf32>
    %cst_8 = arith.constant dense<0.000000e+00> : vector<256xf32>
    %14 = vector.multi_reduction <add>, %13, %cst_8 [0] : vector<8x256xf32> to vector<256xf32>
    %15 = vector.shape_cast %14 : vector<256xf32> to vector<1x256xf32>
    %cst_9 = arith.constant 8.000000e+00 : f32
    %16 = vector.broadcast %cst_9 : f32 to vector<1x256xf32>
    %17 = arith.divf %15, %16 : vector<1x256xf32>
    %18 = vector.broadcast %10 : vector<1x256xf32> to vector<8x256xf32>
    %19 = arith.subf %1, %18 : vector<8x256xf32>
    %cst_10 = arith.constant 9.99999974E-6 : f32
    %20 = vector.broadcast %cst_10 : f32 to vector<1x256xf32>
    %21 = arith.addf %17, %20 : vector<1x256xf32>
    %22 = math.rsqrt %21 : vector<1x256xf32>
    %23 = vector.broadcast %22 : vector<1x256xf32> to vector<8x256xf32>
    %24 = arith.mulf %19, %23 : vector<8x256xf32>
    %25 = vector.broadcast %5 : vector<8x1xf32> to vector<8x256xf32>
    %26 = arith.mulf %24, %25 : vector<8x256xf32>
    %27 = vector.broadcast %6 : vector<8x1xf32> to vector<8x256xf32>
    %28 = arith.addf %26, %27 : vector<8x256xf32>
    %29 = vector.extract_strided_slice %4 {offsets = [0, 2], sizes = [8, 1], strides = [1, 1]} : vector<8x10xf32> to vector<8x1xf32>
    %30 = vector.extract_strided_slice %4 {offsets = [0, 3], sizes = [8, 1], strides = [1, 1]} : vector<8x10xf32> to vector<8x1xf32>
    %cst_11 = arith.constant dense<0.000000e+00> : vector<256xf32>
    %31 = vector.multi_reduction <add>, %3, %cst_11 [0] : vector<8x256xf32> to vector<256xf32>
    %32 = vector.shape_cast %31 : vector<256xf32> to vector<1x256xf32>
    %cst_12 = arith.constant 8.000000e+00 : f32
    %33 = vector.broadcast %cst_12 : f32 to vector<1x256xf32>
    %34 = arith.divf %32, %33 : vector<1x256xf32>
    %35 = vector.broadcast %34 : vector<1x256xf32> to vector<8x256xf32>
    %36 = arith.subf %3, %35 : vector<8x256xf32>
    %37 = arith.mulf %36, %36 : vector<8x256xf32>
    %cst_13 = arith.constant dense<0.000000e+00> : vector<256xf32>
    %38 = vector.multi_reduction <add>, %37, %cst_13 [0] : vector<8x256xf32> to vector<256xf32>
    %39 = vector.shape_cast %38 : vector<256xf32> to vector<1x256xf32>
    %cst_14 = arith.constant 8.000000e+00 : f32
    %40 = vector.broadcast %cst_14 : f32 to vector<1x256xf32>
    %41 = arith.divf %39, %40 : vector<1x256xf32>
    %42 = vector.broadcast %34 : vector<1x256xf32> to vector<8x256xf32>
    %43 = arith.subf %3, %42 : vector<8x256xf32>
    %cst_15 = arith.constant 9.99999974E-6 : f32
    %44 = vector.broadcast %cst_15 : f32 to vector<1x256xf32>
    %45 = arith.addf %41, %44 : vector<1x256xf32>
    %46 = math.rsqrt %45 : vector<1x256xf32>
    %47 = vector.broadcast %46 : vector<1x256xf32> to vector<8x256xf32>
    %48 = arith.mulf %43, %47 : vector<8x256xf32>
    %49 = vector.broadcast %29 : vector<8x1xf32> to vector<8x256xf32>
    %50 = arith.mulf %48, %49 : vector<8x256xf32>
    %51 = vector.broadcast %30 : vector<8x1xf32> to vector<8x256xf32>
    %52 = arith.addf %50, %51 : vector<8x256xf32>
    %53 = arith.mulf %28, %52 : vector<8x256xf32>
    %54 = arith.mulf %53, %3 : vector<8x256xf32>
    %55 = tpu.iota {dimensions = array<i32: 1>} : vector<8x256xi32>
    %c16_i32 = arith.constant 16 : i32
    %c0_i32 = arith.constant 0 : i32
    %56 = arith.cmpi eq, %c16_i32, %c0_i32 : i32
    %c1_i32 = arith.constant 1 : i32
    %57 = arith.select %56, %c1_i32, %c16_i32 : i32
    %58 = vector.broadcast %57 : i32 to vector<8x256xi32>
    %59 = arith.remsi %55, %58 : vector<8x256xi32>
    %c0_i32_16 = arith.constant 0 : i32
    %60 = vector.broadcast %c0_i32_16 : i32 to vector<8x256xi32>
    %61 = arith.cmpi ne, %59, %60 : vector<8x256xi32>
    %c0_i32_17 = arith.constant 0 : i32
    %62 = vector.broadcast %c0_i32_17 : i32 to vector<8x256xi32>
    %63 = arith.cmpi slt, %59, %62 : vector<8x256xi32>
    %c0_i32_18 = arith.constant 0 : i32
    %64 = arith.cmpi slt, %57, %c0_i32_18 : i32
    %65 = vector.broadcast %64 : i1 to vector<8x256xi1>
    %66 = vector.broadcast %65 : vector<8x256xi1> to vector<8x256xi1>
    %67 = arith.xori %63, %66 : vector<8x256xi1>
    %68 = arith.andi %67, %61 : vector<8x256xi1>
    %69 = vector.broadcast %57 : i32 to vector<8x256xi32>
    %70 = arith.addi %59, %69 : vector<8x256xi32>
    %71 = arith.select %68, %70, %59 : vector<8x256xi1>, vector<8x256xi32>
    %c16_i32_19 = arith.constant 16 : i32
    %72 = vector.broadcast %c16_i32_19 : i32 to vector<8x256xi32>
    %73 = arith.cmpi sge, %55, %72 : vector<8x256xi32>
    %c240_i32 = arith.constant 240 : i32
    %74 = vector.broadcast %c240_i32 : i32 to vector<8x256xi32>
    %75 = arith.cmpi slt, %55, %74 : vector<8x256xi32>
    %c1_i32_20 = arith.constant 1 : i32
    %76 = vector.broadcast %c1_i32_20 : i32 to vector<8x256xi32>
    %77 = arith.cmpi sge, %71, %76 : vector<8x256xi32>
    %c14_i32 = arith.constant 14 : i32
    %78 = vector.broadcast %c14_i32 : i32 to vector<8x256xi32>
    %79 = arith.cmpi sle, %71, %78 : vector<8x256xi32>
    %c0_21 = arith.constant 0 : index
    %c0_22 = arith.constant 0 : index
    %c0_23 = arith.constant 0 : index
    %80 = vector.load %arg4[%c0_21, %c0_22, %c0_23] : memref<2x8x72xf32, #tpu.memory_space<vmem>>, vector<1x8x72xf32>
    %81 = vector.shape_cast %80 : vector<1x8x72xf32> to vector<8x72xf32>
    %c17_i32 = arith.constant 17 : i32
    %82 = tpu.dynamic_rotate %54 by %c17_i32 dim 1 : vector<8x256xf32>, i32 -> vector<8x256xf32>
    %83 = arith.andi %73, %77 : vector<8x256xi1>
    %cst_24 = arith.constant 0.000000e+00 : f32
    %84 = vector.broadcast %cst_24 : f32 to vector<8x256xf32>
    %85 = arith.select %83, %82, %84 : vector<8x256xi1>, vector<8x256xf32>
    %c16_i32_25 = arith.constant 16 : i32
    %86 = tpu.dynamic_rotate %54 by %c16_i32_25 dim 1 : vector<8x256xf32>, i32 -> vector<8x256xf32>
    %cst_26 = arith.constant 0.000000e+00 : f32
    %87 = vector.broadcast %cst_26 : f32 to vector<8x256xf32>
    %88 = arith.select %73, %86, %87 : vector<8x256xi1>, vector<8x256xf32>
    %c15_i32 = arith.constant 15 : i32
    %89 = tpu.dynamic_rotate %54 by %c15_i32 dim 1 : vector<8x256xf32>, i32 -> vector<8x256xf32>
    %90 = arith.andi %73, %79 : vector<8x256xi1>
    %cst_27 = arith.constant 0.000000e+00 : f32
    %91 = vector.broadcast %cst_27 : f32 to vector<8x256xf32>
    %92 = arith.select %90, %89, %91 : vector<8x256xi1>, vector<8x256xf32>
    %c1_i32_28 = arith.constant 1 : i32
    %93 = tpu.dynamic_rotate %54 by %c1_i32_28 dim 1 : vector<8x256xf32>, i32 -> vector<8x256xf32>
    %cst_29 = arith.constant 0.000000e+00 : f32
    %94 = vector.broadcast %cst_29 : f32 to vector<8x256xf32>
    %95 = arith.select %77, %93, %94 : vector<8x256xi1>, vector<8x256xf32>
    %c255_i32 = arith.constant 255 : i32
    %96 = tpu.dynamic_rotate %54 by %c255_i32 dim 1 : vector<8x256xf32>, i32 -> vector<8x256xf32>
    %cst_30 = arith.constant 0.000000e+00 : f32
    %97 = vector.broadcast %cst_30 : f32 to vector<8x256xf32>
    %98 = arith.select %79, %96, %97 : vector<8x256xi1>, vector<8x256xf32>
    %c241_i32 = arith.constant 241 : i32
    %99 = tpu.dynamic_rotate %54 by %c241_i32 dim 1 : vector<8x256xf32>, i32 -> vector<8x256xf32>
    %100 = arith.andi %75, %77 : vector<8x256xi1>
    %cst_31 = arith.constant 0.000000e+00 : f32
    %101 = vector.broadcast %cst_31 : f32 to vector<8x256xf32>
    %102 = arith.select %100, %99, %101 : vector<8x256xi1>, vector<8x256xf32>
    %c240_i32_32 = arith.constant 240 : i32
    %103 = tpu.dynamic_rotate %54 by %c240_i32_32 dim 1 : vector<8x256xf32>, i32 -> vector<8x256xf32>
    %cst_33 = arith.constant 0.000000e+00 : f32
    %104 = vector.broadcast %cst_33 : f32 to vector<8x256xf32>
    %105 = arith.select %75, %103, %104 : vector<8x256xi1>, vector<8x256xf32>
    %c239_i32 = arith.constant 239 : i32
    %106 = tpu.dynamic_rotate %54 by %c239_i32 dim 1 : vector<8x256xf32>, i32 -> vector<8x256xf32>
    %107 = arith.andi %75, %79 : vector<8x256xi1>
    %cst_34 = arith.constant 0.000000e+00 : f32
    %108 = vector.broadcast %cst_34 : f32 to vector<8x256xf32>
    %109 = arith.select %107, %106, %108 : vector<8x256xi1>, vector<8x256xf32>
    %110 = tpu.concatenate %85, %88, %92, %95, %54, %98, %102, %105, %109 in 0 : vector<8x256xf32>, vector<8x256xf32>, vector<8x256xf32>, vector<8x256xf32>, vector<8x256xf32>, vector<8x256xf32>, vector<8x256xf32>, vector<8x256xf32>, vector<8x256xf32> -> vector<72x256xf32>
    %cst_35 = arith.constant dense<0.000000e+00> : vector<8x256xf32>
    %111 = tpu.matmul %81, %110, %cst_35 {dimension_numbers = #tpu.dot_dimension_numbers<[1], [0], [0], [1], [0, 0, 1, 1], [], []>} : vector<8x72xf32>, vector<72x256xf32>, vector<8x256xf32> -> vector<8x256xf32>
    %112 = vector.extract_strided_slice %4 {offsets = [0, 4], sizes = [8, 1], strides = [1, 1]} : vector<8x10xf32> to vector<8x1xf32>
    %113 = vector.broadcast %112 : vector<8x1xf32> to vector<8x256xf32>
    %114 = arith.addf %111, %113 : vector<8x256xf32>
    %115 = vector.extract_strided_slice %4 {offsets = [0, 5], sizes = [8, 1], strides = [1, 1]} : vector<8x10xf32> to vector<8x1xf32>
    %116 = vector.extract_strided_slice %4 {offsets = [0, 6], sizes = [8, 1], strides = [1, 1]} : vector<8x10xf32> to vector<8x1xf32>
    %cst_36 = arith.constant dense<0.000000e+00> : vector<8xf32>
    %117 = vector.multi_reduction <add>, %114, %cst_36 [1] : vector<8x256xf32> to vector<8xf32>
    %118 = vector.shape_cast %117 : vector<8xf32> to vector<8x1xf32>
    %cst_37 = arith.constant 2.560000e+02 : f32
    %119 = vector.broadcast %cst_37 : f32 to vector<8x1xf32>
    %120 = arith.divf %118, %119 : vector<8x1xf32>
    %121 = vector.broadcast %120 : vector<8x1xf32> to vector<8x256xf32>
    %122 = arith.subf %114, %121 : vector<8x256xf32>
    %123 = arith.mulf %122, %122 : vector<8x256xf32>
    %cst_38 = arith.constant dense<0.000000e+00> : vector<8xf32>
    %124 = vector.multi_reduction <add>, %123, %cst_38 [1] : vector<8x256xf32> to vector<8xf32>
    %125 = vector.shape_cast %124 : vector<8xf32> to vector<8x1xf32>
    %cst_39 = arith.constant 2.560000e+02 : f32
    %126 = vector.broadcast %cst_39 : f32 to vector<8x1xf32>
    %127 = arith.divf %125, %126 : vector<8x1xf32>
    %128 = vector.broadcast %120 : vector<8x1xf32> to vector<8x256xf32>
    %129 = arith.subf %114, %128 : vector<8x256xf32>
    %cst_40 = arith.constant 9.99999974E-6 : f32
    %130 = vector.broadcast %cst_40 : f32 to vector<8x1xf32>
    %131 = arith.addf %127, %130 : vector<8x1xf32>
    %132 = math.rsqrt %131 : vector<8x1xf32>
    %133 = vector.broadcast %132 : vector<8x1xf32> to vector<8x256xf32>
    %134 = arith.mulf %129, %133 : vector<8x256xf32>
    %135 = vector.broadcast %115 : vector<8x1xf32> to vector<8x256xf32>
    %136 = arith.mulf %134, %135 : vector<8x256xf32>
    %137 = vector.broadcast %116 : vector<8x1xf32> to vector<8x256xf32>
    %138 = arith.addf %136, %137 : vector<8x256xf32>
    %139 = arith.negf %138 : vector<8x256xf32>
    %140 = math.exp %139 : vector<8x256xf32>
    %cst_41 = arith.constant 1.000000e+00 : f32
    %141 = vector.broadcast %cst_41 : f32 to vector<8x256xf32>
    %142 = arith.addf %141, %140 : vector<8x256xf32>
    %143 = arith.divf %141, %142 : vector<8x256xf32>
    %144 = arith.mulf %138, %143 : vector<8x256xf32>
    %c1 = arith.constant 1 : index
    %c0_42 = arith.constant 0 : index
    %c0_43 = arith.constant 0 : index
    %145 = vector.load %arg4[%c1, %c0_42, %c0_43] : memref<2x8x72xf32, #tpu.memory_space<vmem>>, vector<1x8x72xf32>
    %146 = vector.shape_cast %145 : vector<1x8x72xf32> to vector<8x72xf32>
    %c17_i32_44 = arith.constant 17 : i32
    %147 = tpu.dynamic_rotate %144 by %c17_i32_44 dim 1 : vector<8x256xf32>, i32 -> vector<8x256xf32>
    %148 = arith.andi %73, %77 : vector<8x256xi1>
    %cst_45 = arith.constant 0.000000e+00 : f32
    %149 = vector.broadcast %cst_45 : f32 to vector<8x256xf32>
    %150 = arith.select %148, %147, %149 : vector<8x256xi1>, vector<8x256xf32>
    %c16_i32_46 = arith.constant 16 : i32
    %151 = tpu.dynamic_rotate %144 by %c16_i32_46 dim 1 : vector<8x256xf32>, i32 -> vector<8x256xf32>
    %cst_47 = arith.constant 0.000000e+00 : f32
    %152 = vector.broadcast %cst_47 : f32 to vector<8x256xf32>
    %153 = arith.select %73, %151, %152 : vector<8x256xi1>, vector<8x256xf32>
    %c15_i32_48 = arith.constant 15 : i32
    %154 = tpu.dynamic_rotate %144 by %c15_i32_48 dim 1 : vector<8x256xf32>, i32 -> vector<8x256xf32>
    %155 = arith.andi %73, %79 : vector<8x256xi1>
    %cst_49 = arith.constant 0.000000e+00 : f32
    %156 = vector.broadcast %cst_49 : f32 to vector<8x256xf32>
    %157 = arith.select %155, %154, %156 : vector<8x256xi1>, vector<8x256xf32>
    %c1_i32_50 = arith.constant 1 : i32
    %158 = tpu.dynamic_rotate %144 by %c1_i32_50 dim 1 : vector<8x256xf32>, i32 -> vector<8x256xf32>
    %cst_51 = arith.constant 0.000000e+00 : f32
    %159 = vector.broadcast %cst_51 : f32 to vector<8x256xf32>
    %160 = arith.select %77, %158, %159 : vector<8x256xi1>, vector<8x256xf32>
    %c255_i32_52 = arith.constant 255 : i32
    %161 = tpu.dynamic_rotate %144 by %c255_i32_52 dim 1 : vector<8x256xf32>, i32 -> vector<8x256xf32>
    %cst_53 = arith.constant 0.000000e+00 : f32
    %162 = vector.broadcast %cst_53 : f32 to vector<8x256xf32>
    %163 = arith.select %79, %161, %162 : vector<8x256xi1>, vector<8x256xf32>
    %c241_i32_54 = arith.constant 241 : i32
    %164 = tpu.dynamic_rotate %144 by %c241_i32_54 dim 1 : vector<8x256xf32>, i32 -> vector<8x256xf32>
    %165 = arith.andi %75, %77 : vector<8x256xi1>
    %cst_55 = arith.constant 0.000000e+00 : f32
    %166 = vector.broadcast %cst_55 : f32 to vector<8x256xf32>
    %167 = arith.select %165, %164, %166 : vector<8x256xi1>, vector<8x256xf32>
    %c240_i32_56 = arith.constant 240 : i32
    %168 = tpu.dynamic_rotate %144 by %c240_i32_56 dim 1 : vector<8x256xf32>, i32 -> vector<8x256xf32>
    %cst_57 = arith.constant 0.000000e+00 : f32
    %169 = vector.broadcast %cst_57 : f32 to vector<8x256xf32>
    %170 = arith.select %75, %168, %169 : vector<8x256xi1>, vector<8x256xf32>
    %c239_i32_58 = arith.constant 239 : i32
    %171 = tpu.dynamic_rotate %144 by %c239_i32_58 dim 1 : vector<8x256xf32>, i32 -> vector<8x256xf32>
    %172 = arith.andi %75, %79 : vector<8x256xi1>
    %cst_59 = arith.constant 0.000000e+00 : f32
    %173 = vector.broadcast %cst_59 : f32 to vector<8x256xf32>
    %174 = arith.select %172, %171, %173 : vector<8x256xi1>, vector<8x256xf32>
    %175 = tpu.concatenate %150, %153, %157, %160, %144, %163, %167, %170, %174 in 0 : vector<8x256xf32>, vector<8x256xf32>, vector<8x256xf32>, vector<8x256xf32>, vector<8x256xf32>, vector<8x256xf32>, vector<8x256xf32>, vector<8x256xf32>, vector<8x256xf32> -> vector<72x256xf32>
    %cst_60 = arith.constant dense<0.000000e+00> : vector<8x256xf32>
    %176 = tpu.matmul %146, %175, %cst_60 {dimension_numbers = #tpu.dot_dimension_numbers<[1], [0], [0], [1], [0, 0, 1, 1], [], []>} : vector<8x72xf32>, vector<72x256xf32>, vector<8x256xf32> -> vector<8x256xf32>
    %177 = vector.extract_strided_slice %4 {offsets = [0, 7], sizes = [8, 1], strides = [1, 1]} : vector<8x10xf32> to vector<8x1xf32>
    %178 = vector.broadcast %177 : vector<8x1xf32> to vector<8x256xf32>
    %179 = arith.addf %176, %178 : vector<8x256xf32>
    %180 = vector.extract_strided_slice %4 {offsets = [0, 8], sizes = [8, 1], strides = [1, 1]} : vector<8x10xf32> to vector<8x1xf32>
    %181 = vector.extract_strided_slice %4 {offsets = [0, 9], sizes = [8, 1], strides = [1, 1]} : vector<8x10xf32> to vector<8x1xf32>
    %cst_61 = arith.constant dense<0.000000e+00> : vector<8xf32>
    %182 = vector.multi_reduction <add>, %179, %cst_61 [1] : vector<8x256xf32> to vector<8xf32>
    %183 = vector.shape_cast %182 : vector<8xf32> to vector<8x1xf32>
    %cst_62 = arith.constant 2.560000e+02 : f32
    %184 = vector.broadcast %cst_62 : f32 to vector<8x1xf32>
    %185 = arith.divf %183, %184 : vector<8x1xf32>
    %186 = vector.broadcast %185 : vector<8x1xf32> to vector<8x256xf32>
    %187 = arith.subf %179, %186 : vector<8x256xf32>
    %188 = arith.mulf %187, %187 : vector<8x256xf32>
    %cst_63 = arith.constant dense<0.000000e+00> : vector<8xf32>
    %189 = vector.multi_reduction <add>, %188, %cst_63 [1] : vector<8x256xf32> to vector<8xf32>
    %190 = vector.shape_cast %189 : vector<8xf32> to vector<8x1xf32>
    %cst_64 = arith.constant 2.560000e+02 : f32
    %191 = vector.broadcast %cst_64 : f32 to vector<8x1xf32>
    %192 = arith.divf %190, %191 : vector<8x1xf32>
    %193 = vector.broadcast %185 : vector<8x1xf32> to vector<8x256xf32>
    %194 = arith.subf %179, %193 : vector<8x256xf32>
    %cst_65 = arith.constant 9.99999974E-6 : f32
    %195 = vector.broadcast %cst_65 : f32 to vector<8x1xf32>
    %196 = arith.addf %192, %195 : vector<8x1xf32>
    %197 = math.rsqrt %196 : vector<8x1xf32>
    %198 = vector.broadcast %197 : vector<8x1xf32> to vector<8x256xf32>
    %199 = arith.mulf %194, %198 : vector<8x256xf32>
    %200 = vector.broadcast %180 : vector<8x1xf32> to vector<8x256xf32>
    %201 = arith.mulf %199, %200 : vector<8x256xf32>
    %202 = vector.broadcast %181 : vector<8x1xf32> to vector<8x256xf32>
    %203 = arith.addf %201, %202 : vector<8x256xf32>
    %204 = arith.negf %203 : vector<8x256xf32>
    %205 = math.exp %204 : vector<8x256xf32>
    %cst_66 = arith.constant 1.000000e+00 : f32
    %206 = vector.broadcast %cst_66 : f32 to vector<8x256xf32>
    %207 = arith.addf %206, %205 : vector<8x256xf32>
    %208 = arith.divf %206, %207 : vector<8x256xf32>
    %209 = arith.mulf %203, %208 : vector<8x256xf32>
    %210 = arith.addf %209, %54 : vector<8x256xf32>
    %c0_67 = arith.constant 0 : index
    %c0_68 = arith.constant 0 : index
    %c0_69 = arith.constant 0 : index
    %211 = vector.load %arg5[%c0_67, %c0_68, %c0_69] : memref<1x8x256xf32, #tpu.memory_space<vmem>>, vector<1x8x256xf32>
    %212 = vector.shape_cast %211 : vector<1x8x256xf32> to vector<8x256xf32>
    %213 = vector.shape_cast %210 : vector<8x256xf32> to vector<1x8x256xf32>
    tpu.vector_store %arg5[%c0_67, %c0_68, %c0_69], %213 {strides = array<i32>} : memref<1x8x256xf32, #tpu.memory_space<vmem>>, vector<1x8x256xf32>,
    return
  }
  func.func @transform_0(%arg0: i32) -> (i32, i32, i32) {
    %c0_i32 = arith.constant 0 : i32
    %c0_i32_0 = arith.constant 0 : i32
    %c0_i32_1 = arith.constant 0 : i32
    return %arg0, %c0_i32, %c0_i32_0 : i32, i32, i32
  }
  func.func @transform_1(%arg0: i32) -> (i32, i32, i32) {
    %c0_i32 = arith.constant 0 : i32
    %c0_i32_0 = arith.constant 0 : i32
    %c0_i32_1 = arith.constant 0 : i32
    return %arg0, %c0_i32, %c0_i32_0 : i32, i32, i32
  }
  func.func @transform_2(%arg0: i32) -> (i32, i32) {
    %c0_i32 = arith.constant 0 : i32
    %c0_i32_0 = arith.constant 0 : i32
    %c0_i32_1 = arith.constant 0 : i32
    return %c0_i32, %c0_i32_0 : i32, i32
  }
  func.func @transform_3(%arg0: i32) -> (i32, i32, i32) {
    %c0_i32 = arith.constant 0 : i32
    %c0_i32_0 = arith.constant 0 : i32
    %c0_i32_1 = arith.constant 0 : i32
    %c0_i32_2 = arith.constant 0 : i32
    return %c0_i32, %c0_i32_0, %c0_i32_1 : i32, i32, i32
  }
  func.func @transform_4(%arg0: i32) -> (i32, i32, i32) {
    %c0_i32 = arith.constant 0 : i32
    %c0_i32_0 = arith.constant 0 : i32
    %c0_i32_1 = arith.constant 0 : i32
    return %arg0, %c0_i32, %c0_i32_0 : i32, i32, i32
  }
}

</mosaic_0001>

<bundles_post_ra>
// kernel: conditioning_forward.2
= control target key start
LH: loop header
LB: loop body
LE: loop exit
PB: predicated region body
PF: predicated region fallthrough
CT: control target
= control target key end

     0   :  { %s1991_s21 = smov 0   ;;  %s2570_s0 = inlined_call_operand.vmem [shape: f32[2,16,512], index: 0, kind: input, shape index: {}]   ;;  %s2571_s1 = inlined_call_operand.vmem [shape: f32[512,8], index: 1, kind: input, shape index: {}]   ;;  %s2572_s2 = inlined_call_operand.vmem [shape: f32[27,8], index: 2, kind: input, shape index: {}]   ;;  %s2573_s3 = inlined_call_operand.vmem [shape: f32[2,9,128], index: 3, kind: input, shape index: {}]   ;;  %s2574_s4 = inlined_call_operand.vmem [shape: f32[2,64,8], index: 4, kind: input, shape index: {}]   ;;  %s2575_s5 = inlined_call_operand.vmem [shape: f32[9,128], index: 5, kind: input, shape index: {}]   ;;  %s2576_s6 = inlined_call_operand.vmem [shape: f32[2,16,128], index: 6, kind: output, shape index: {}]  }
   0x1 LB: > { %s1760_s22 = sadd.s32 4294967295, %s1946_s21   ;;  %p1764_p0 = scmp.ge.s32.totalorder %s1946_s21, 1  ;;  %s1946_s21 = sphi %s1991_s21, %s16_s21  }
   0x2   : > { %p212_p1 = scmp.lt.s32.totalorder %s1946_s21, 3 }
   0x4   : > { %p213_p2 = pnand %p1764_p0, %p212_p1 }
   0x5   : > { %p2109_p3 = scmp.lt.s32.totalorder (!%p213_p2), %s1760_s22, 1  ;;  %s1949_s8 = smov (!%p213_p2), 80  }
   0x6   : > { %216 = sbr.rel (%p213_p2) target bundleno = 4610 (0x1202), region = 44  ;;  %s1951_s10 = smov (!%p213_p2), 96  }
   0x7   : > { %s1952_s11 = smov (!%p213_p2), 48   ;;  %s1953_s12 = smov (!%p213_p2), 64  }
   0x8   : > { %s1954_s19 = smov (!%p213_p2), 16   ;;  %s1955_s24 = smov (!%p213_p2), 32  }
   0xb   : > { %v311_v0 = vld [vmem:[%s2571_s1 + $0x178] sm:$0xff]  ;;  %v310_v2 = vld [vmem:[%s2571_s1 + $0x170] sm:$0xff]  ;;  %v309_v6 = vld [vmem:[%s2571_s1 + $0x168] sm:$0xff]  ;;  %s2581_s22 = smov (!%p2109_p3, %s1760_s22), 1  ;;  %vm421_vm0 = vcmask 64512   ;;  %vm572_vm14 = vcmask 130048  }
   0xc   : > { %v279_v1 = vld [vmem:[%s2571_s1 + $0x78] sm:$0xff]  ;;  %375 = vmatpush.msra.mxu2 %v311_v0  ;;  %v278_v4 = vld [vmem:[%s2571_s1 + $0x70] sm:$0xff]  ;;  %v277_v8 = vld [vmem:[%s2571_s1 + $0x68] sm:$0xff]  ;;  %s1823_s18 = sshll.u32 %s2581_s22, 6 }
   0xd   : > { %329 = vmatpush.msra.mxu0 %v279_v1  ;;  %v327_v3 = vld [vmem:[%s2571_s1 + $0x1f8] sm:$0xff]  ;;  %v326_v7 = vld [vmem:[%s2571_s1 + $0x1f0] sm:$0xff]  ;;  %v325_v10 = vld [vmem:[%s2571_s1 + $0x1e8] sm:$0xff]  ;;  %s2189_s9 = scalar_lea.vmem %s2570_s0, %s1823_s18 }
   0xe   : > { %v295_v5 = vld [vmem:[%s2571_s1 + $0xf8] sm:$0xff]  ;;  %398 = vmatpush.msra.mxu3 %v327_v3  ;;  %376 = vmatpush.msra.mxu2 %v310_v2  ;;  %v294_v9 = vld [vmem:[%s2571_s1 + $0xf0] sm:$0xff]  ;;  %v308_v11 = vld [vmem:[%s2571_s1 + $0x160] sm:$0xff] }
   0xf   : > { %352 = vmatpush.msra.mxu1 %v295_v5  ;;  %330 = vmatpush.msra.mxu0 %v278_v4  ;;  %v276_v12 = vld [vmem:[%s2571_s1 + $0x60] sm:$0xff]  ;;  %v293_v13 = vld [vmem:[%s2571_s1 + $0xe8] sm:$0xff]  ;;  %v307_v16 = vld [vmem:[%s2571_s1 + $0x158] sm:$0xff] }
  0x10   : > { %399 = vmatpush.msra.mxu3 %v326_v7  ;;  %377 = vmatpush.msra.mxu2 %v309_v6  ;;  %v324_v14 = vld [vmem:[%s2571_s1 + $0x1e0] sm:$0xff]  ;;  %v275_v17 = vld [vmem:[%s2571_s1 + $0x58] sm:$0xff]  ;;  %v306_v20 = vld [vmem:[%s2571_s1 + $0x150] sm:$0xff] }
  0x11   : > { %353 = vmatpush.msra.mxu1 %v294_v9  ;;  %331 = vmatpush.msra.mxu0 %v277_v8  ;;  %v292_v15 = vld [vmem:[%s2571_s1 + $0xe0] sm:$0xff]  ;;  %v323_v18 = vld [vmem:[%s2571_s1 + $0x1d8] sm:$0xff]  ;;  %v274_v21 = vld [vmem:[%s2571_s1 + $0x50] sm:$0xff] }
  0x12   : > { %400 = vmatpush.msra.mxu3 %v325_v10  ;;  %378 = vmatpush.msra.mxu2 %v308_v11  ;;  %v291_v19 = vld [vmem:[%s2571_s1 + $0xd8] sm:$0xff]  ;;  %v322_v22 = vld [vmem:[%s2571_s1 + $0x1d0] sm:$0xff]  ;;  %v305_v24 = vld [vmem:[%s2571_s1 + $0x148] sm:$0xff] }
  0x13   : > { %354 = vmatpush.msra.mxu1 %v293_v13  ;;  %332 = vmatpush.msra.mxu0 %v276_v12  ;;  %v290_v23 = vld [vmem:[%s2571_s1 + $0xd0] sm:$0xff]  ;;  %v273_v25 = vld [vmem:[%s2571_s1 + $0x48] sm:$0xff]  ;;  %v304_v28 = vld [vmem:[%s2571_s1 + $0x140] sm:$0xff] }
  0x14   : > { %401 = vmatpush.msra.mxu3 %v324_v14  ;;  %379 = vmatpush.msra.mxu2 %v307_v16  ;;  %v321_v26 = vld [vmem:[%s2571_s1 + $0x1c8] sm:$0xff]  ;;  %v272_v29 = vld [vmem:[%s2571_s1 + $0x40] sm:$0xff]  ;;  %v303_v32 = vld [vmem:[%s2571_s1 + $0x138] sm:$0xff] }
  0x15   : > { %355 = vmatpush.msra.mxu1 %v292_v15  ;;  %333 = vmatpush.msra.mxu0 %v275_v17  ;;  %v289_v27 = vld [vmem:[%s2571_s1 + $0xc8] sm:$0xff]  ;;  %v320_v30 = vld [vmem:[%s2571_s1 + $0x1c0] sm:$0xff]  ;;  %v271_v33 = vld [vmem:[%s2571_s1 + $0x38] sm:$0xff] }
  0x16   : > { %402 = vmatpush.msra.mxu3 %v323_v18  ;;  %380 = vmatpush.msra.mxu2 %v306_v20  ;;  %v288_v31 = vld [vmem:[%s2571_s1 + $0xc0] sm:$0xff]  ;;  %v319_v34 = vld [vmem:[%s2571_s1 + $0x1b8] sm:$0xff]  ;;  %v302_v36 = vld [vmem:[%s2571_s1 + $0x130] sm:$0xff] }
  0x17   : > { %356 = vmatpush.msra.mxu1 %v291_v19  ;;  %334 = vmatpush.msra.mxu0 %v274_v21  ;;  %v287_v35 = vld [vmem:[%s2571_s1 + $0xb8] sm:$0xff]  ;;  %v270_v37 = vld [vmem:[%s2571_s1 + $0x30] sm:$0xff]  ;;  %v301_v40 = vld [vmem:[%s2571_s1 + $0x128] sm:$0xff] }
  0x18   : > { %403 = vmatpush.msra.mxu3 %v322_v22  ;;  %381 = vmatpush.msra.mxu2 %v305_v24  ;;  %v318_v38 = vld [vmem:[%s2571_s1 + $0x1b0] sm:$0xff]  ;;  %v269_v41 = vld [vmem:[%s2571_s1 + $0x28] sm:$0xff]  ;;  %v300_v44 = vld [vmem:[%s2571_s1 + $0x120] sm:$0xff] }
  0x19   : > { %357 = vmatpush.msra.mxu1 %v290_v23  ;;  %335 = vmatpush.msra.mxu0 %v273_v25  ;;  %v286_v39 = vld [vmem:[%s2571_s1 + $0xb0] sm:$0xff]  ;;  %v317_v42 = vld [vmem:[%s2571_s1 + $0x1a8] sm:$0xff]  ;;  %v268_v45 = vld [vmem:[%s2571_s1 + $0x20] sm:$0xff] }
  0x1a   : > { %404 = vmatpush.msra.mxu3 %v321_v26  ;;  %382 = vmatpush.msra.mxu2 %v304_v28  ;;  %v285_v43 = vld [vmem:[%s2571_s1 + $0xa8] sm:$0xff]  ;;  %v316_v46 = vld [vmem:[%s2571_s1 + $0x1a0] sm:$0xff]  ;;  %v299_v48 = vld [vmem:[%s2571_s1 + $0x118] sm:$0xff]  ;;  %v1948_v28 = vmov 8.0  }
  0x1b   : > { %358 = vmatpush.msra.mxu1 %v289_v27  ;;  %336 = vmatpush.msra.mxu0 %v272_v29  ;;  %v284_v47 = vld [vmem:[%s2571_s1 + $0xa0] sm:$0xff]  ;;  %v267_v49 = vld [vmem:[%s2571_s1 + $0x18] sm:$0xff]  ;;  %v298_v50 = vld [vmem:[%s2571_s1 + $0x110] sm:$0xff]  ;;  %1865 = vrcp.f32 %v1948_v28 }
  0x1c   : > { %405 = vmatpush.msra.mxu3 %v320_v30  ;;  %383 = vmatpush.msra.mxu2 %v303_v32  ;;  %v315_v51 = vld [vmem:[%s2571_s1 + $0x198] sm:$0xff]  ;;  %v266_v53 = vld [vmem:[%s2571_s1 + $0x10] sm:$0xff]  ;;  %v297_v56 = vld [vmem:[%s2571_s1 + $0x108] sm:$0xff] }
  0x1d   : > { %359 = vmatpush.msra.mxu1 %v288_v31  ;;  %337 = vmatpush.msra.mxu0 %v271_v33  ;;  %v283_v52 = vld [vmem:[%s2571_s1 + $0x98] sm:$0xff]  ;;  %v314_v54 = vld [vmem:[%s2571_s1 + $0x190] sm:$0xff]  ;;  %v265_v57 = vld [vmem:[%s2571_s1 + $0x8] sm:$0xff] }
  0x1e   : > { %406 = vmatpush.msra.mxu3 %v319_v34  ;;  %384 = vmatpush.msra.mxu2 %v302_v36  ;;  %v282_v55 = vld [vmem:[%s2571_s1 + $0x90] sm:$0xff]  ;;  %v313_v58 = vld [vmem:[%s2571_s1 + $0x188] sm:$0xff]  ;;  %v296_v60 = vld [vmem:[%s2571_s1 + $0x100] sm:$0xff] }
  0x1f   : > { %360 = vmatpush.msra.mxu1 %v287_v35  ;;  %338 = vmatpush.msra.mxu0 %v270_v37  ;;  %v281_v59 = vld [vmem:[%s2571_s1 + $0x88] sm:$0xff]  ;;  %v264_v61 = vld [vmem:[%s2571_s1] sm:$0xff]  ;;  %v258_v62 = vld [vmem:[%s2189_s9 + $0x10] sm:$0xff] }
  0x20   : > { %407 = vmatpush.msra.mxu3 %v318_v38  ;;  %385 = vmatpush.msra.mxu2 %v301_v40  ;;  %v312_v63 = vld [vmem:[%s2571_s1 + $0x180] sm:$0xff]  ;;  %v259_v1 = vld [vmem:[%s2189_s9 + $0x18] sm:$0xff]  ;;  %v257_v3 = vld [vmem:[%s2189_s9 + $0x8] sm:$0xff] }
  0x21   : > { %361 = vmatpush.msra.mxu1 %v286_v39  ;;  %339 = vmatpush.msra.mxu0 %v269_v41  ;;  %v256_v0 = vld [vmem:[%s2189_s9] sm:$0xff]  ;;  %v262_v4 = vld [vmem:[%s2189_s9 + $0x30] sm:$0xff]  ;;  %v263_v6 = vld [vmem:[%s2189_s9 + $0x38] sm:$0xff]  ;;  %v1866_v29 = vpop.eup %1865 }
  0x22   : > { %408 = vmatpush.msra.mxu3 %v317_v42  ;;  %386 = vmatpush.msra.mxu2 %v300_v44  ;;  %v280_v2 = vld [vmem:[%s2571_s1 + $0x80] sm:$0xff]  ;;  %v261_v7 = vld [vmem:[%s2189_s9 + $0x28] sm:$0xff]  ;;  %v2220_v10 = vld [vmem:[%s2572_s2 + $0x10] sm:$0xff]  ;;  %v429_v30 = vmul.f32 8.0, %v1866_v29  ;;  %vm433_vm1 = vweird.f32 %v1866_v29 }
  0x23   : > { %362 = vmatpush.msra.mxu1 %v285_v43  ;;  %340 = vmatpush.msra.mxu0 %v268_v45  ;;  %v260_v5 = vld [vmem:[%s2189_s9 + $0x20] sm:$0xff]  ;;  %v328_v12 = vperm.slane %v2220_v10, 0  ;;  %s1950_s9 = smov 112  }
  0x24   : > { %409 = vmatpush.msra.mxu3 %v316_v46  ;;  %387 = vmatpush.msra.mxu2 %v299_v48  ;;  %v430_v31 = vsub.f32 1.0, %v429_v30 }
  0x25   : > { %363 = vmatpush.msra.mxu1 %v284_v47  ;;  %341 = vmatpush.msra.mxu0 %v267_v49 }
  0x26   : > { %410 = vmatpush.msra.mxu3 %v315_v51  ;;  %388 = vmatpush.msra.mxu2 %v298_v50  ;;  %v431_v32 = vmul.f32 %v1866_v29, %v430_v31 }
  0x27   : > { %364 = vmatpush.msra.mxu1 %v283_v52  ;;  %342 = vmatpush.msra.mxu0 %v266_v53 }
  0x28   : > { %411 = vmatpush.msra.mxu3 %v314_v54  ;;  %389 = vmatpush.msra.mxu2 %v297_v56  ;;  %v432_v33 = vadd.f32 %v1866_v29, %v431_v32 }
  0x29   : > { %365 = vmatpush.msra.mxu1 %v282_v55  ;;  %343 = vmatpush.msra.mxu0 %v265_v57 }
  0x2a   : > { %412 = vmatpush.msra.mxu3 %v313_v58  ;;  %390 = vmatpush.msra.mxu2 %v296_v60  ;;  %v2225_v34 = vsel %vm433_vm1, %v1866_v29, %v432_v33 }
  0x2b   : > { %366 = vmatpush.msra.mxu1 %v281_v59  ;;  %344 = vmatpush.msra.mxu0 %v264_v61  ;;  %v473_v59 = vperm.slane %v2220_v10, 1 }
  0x2c   : > { %391 = vmatmul.f32.vlgmr.msra.gmra.mxu2 %v258_v62  ;;  %413 = vmatpush.msra.mxu3 %v312_v63 }
  0x2d   : > { %345 = vmatmul.f32.vlgmr.msra.gmra.mxu0 %v256_v0  ;;  %414 = vmatmul.f32.vlgmr.msra.gmra.mxu3 %v259_v1  ;;  %v253_v0 = vld [vmem:[%s2572_s2 + $0x8] sm:$0xff] }
  0x2e   : > { %367 = vmatpush.msra.mxu1 %v280_v2 }
  0x2f   : > { %368 = vmatmul.f32.vlgmr.msra.gmra.mxu1 %v257_v3 }
  0x34   : > { %394 = vmatmul.f32.gmra.mxu2 %v262_v4 }
  0x35   : > { %348 = vmatmul.f32.gmra.mxu0 %v260_v5  ;;  %417 = vmatmul.f32.gmra.mxu3 %v263_v6 }
  0x37   : > { %371 = vmatmul.f32.gmra.mxu1 %v261_v7 }
  0xaa   : > { %v346_v8 = vpop.f32.mrf.mxu0 }
  0xab   : > { %v347_v16 = vadd.f32 %v346_v8, %v328_v12  ;;  %v252_v8 = vld [vmem:[%s2572_s2] sm:$0xff] }
  0xac   : > { %v369_v9 = vpop.f32.mrf.mxu1 }
  0xad   : > { %v370_v20 = vadd.f32 %v369_v9, %v347_v16 }
  0xaf   : > { %v392_v11 = vpop.f32.mrf.mxu2 }
  0xb0   : > { %v415_v13 = vpop.f32.mrf.mxu3  ;;  %v393_v24 = vadd.f32 %v392_v11, %v370_v20 }
  0xb2   : > { %v349_v14 = vpop.f32.mrf.mxu0  ;;  %v416_v26 = vadd.f32 %v415_v13, %v393_v24 }
  0xb3   : > { %v350_v15 = vadd.f32 %v349_v14, %v328_v12 }
  0xb4   : > { %v372_v17 = vpop.f32.mrf.mxu1  ;;  %v422_v27 = vsel %vm421_vm0, %v416_v26, 0.0 }
  0xb5   : > { %v373_v18 = vadd.f32 %v372_v17, %v350_v15 }
  0xb7   : > { %v395_v19 = vpop.f32.mrf.mxu2 }
  0xb8   : > { %v396_v21 = vadd.f32 %v395_v19, %v373_v18  ;;  %v418_v22 = vpop.f32.mrf.mxu3 }
  0xba   : > { %v419_v23 = vadd.f32 %v418_v22, %v396_v21 }
  0xbc   : > { %v425_v25 = vsel %vm421_vm0, %v419_v23, 0.0 }
  0xbd   : > { %426 = vadd.xlane.f32.xlu0 %v425_v25 }
  0xc5   : > { %423 = vadd.xlane.f32.xlu0 %v422_v27 }
 0x130   : > { %v427_v35 = vpop.xlane.xlu0 %426 }
 0x131   : > { %v436_v36 = vmul.f32 %v2225_v34, %v427_v35 }
 0x133   : > { %v438_v37 = vsub.f32 %v419_v23, %v436_v36  ;;  %v2257_v23 = vld [vmem:[%s2573_s3] sm:$0xff] }
 0x134   : > { %1825 = vmatpush.msrb.mxu1 %v2257_v23  ;;  %556 = vmatpush.msrb.mxu0 %v2257_v23 }
 0x135   : > { %v440_v38 = vmul.f32 %v438_v37, %v438_v37 }
 0x137   : > { %v444_v39 = vsel %vm421_vm0, %v440_v38, 0.0 }
 0x138   : > { %445 = vadd.xlane.f32.xlu1 %v444_v39  ;;  %v424_v40 = vpop.xlane.xlu0 %423  ;;  %v532_v39 = vperm.slane %v2220_v10, 3 }
 0x139   : > { %v435_v41 = vmul.f32 %v2225_v34, %v424_v40 }
 0x13b   : > { %v437_v42 = vsub.f32 %v416_v26, %v435_v41 }
 0x13d   : > { %v439_v43 = vmul.f32 %v437_v42, %v437_v42 }
 0x13f   : > { %v441_v44 = vsel %vm421_vm0, %v439_v43, 0.0 }
 0x140   : > { %442 = vadd.xlane.f32.xlu1 %v441_v44 }
 0x1ab   : > { %v446_v45 = vpop.xlane.xlu1 %445 }
 0x1ac   : > { %v448_v46 = vmul.f32 %v446_v45, %v2225_v34 }
 0x1ae   : > { %v450_v47 = vadd.f32 1e-05, %v448_v46 }
 0x1b0   : > { %1867 = vrsqrt.f32 %v450_v47  ;;  %vm467_vm3 = vweird.f32 %v450_v47 }
 0x1b3   : > { %v443_v48 = vpop.xlane.xlu1 %442 }
 0x1b4   : > { %v447_v49 = vmul.f32 %v443_v48, %v2225_v34 }
 0x1b6   : > { %v1868_v50 = vpop.eup %1867  ;;  %v449_v51 = vadd.f32 1e-05, %v447_v49 }
 0x1b7   : > { %v462_v52 = vmul.f32 %v1868_v50, %v450_v47  ;;  %vm468_vm2 = vweird.f32 %v1868_v50 }
 0x1b8   : > { %1869 = vrsqrt.f32 %v449_v51  ;;  %vm469_vm4 = vmor %vm467_vm3, %vm468_vm2  ;;  %vm457_vm6 = vweird.f32 %v449_v51 }
 0x1b9   : > { %v463_v53 = vmul.f32 %v1868_v50, %v462_v52 }
 0x1bb   : > { %v464_v54 = vmul.f32 0.5, %v463_v53 }
 0x1bd   : > { %v465_v55 = vsub.f32 1.5, %v464_v54 }
 0x1be   : > { %v1870_v56 = vpop.eup %1869 }
 0x1bf   : > { %v466_v57 = vmul.f32 %v1868_v50, %v465_v55  ;;  %v452_v58 = vmul.f32 %v1870_v56, %v449_v51  ;;  %vm458_vm5 = vweird.f32 %v1870_v56 }
 0x1c0   : > { %vm459_vm7 = vmor %vm457_vm6, %vm458_vm5 }
 0x1c1   : > { %v470_v60 = vsel %vm469_vm4, %v1868_v50, %v466_v57  ;;  %v453_v61 = vmul.f32 %v1870_v56, %v452_v58 }
 0x1c2   : > { %v472_v62 = vmul.f32 %v470_v60, %v438_v37 }
 0x1c3   : > { %v454_v63 = vmul.f32 0.5, %v453_v61 }
 0x1c4   : > { %v475_v1 = vmul.f32 %v473_v59, %v472_v62 }
 0x1c5   : > { %v455_v2 = vsub.f32 1.5, %v454_v63 }
 0x1c6   : > { %v2237_v3 = vadd.f32 %v475_v1, %v253_v0 }
 0x1c7   : > { %v456_v4 = vmul.f32 %v1870_v56, %v455_v2 }
 0x1c8   : > { %v491_v5 = vsel %vm421_vm0, %v2237_v3, 0.0 }
 0x1c9   : > { %v460_v6 = vsel %vm459_vm7, %v1870_v56, %v456_v4  ;;  %492 = vadd.xlane.f32.xlu2 %v491_v5 }
 0x1ca   : > { %v471_v7 = vmul.f32 %v460_v6, %v437_v42 }
 0x1cc   : > { %v474_v9 = vmul.f32 %v473_v59, %v471_v7 }
 0x1ce   : > { %v2244_v11 = vadd.f32 %v474_v9, %v252_v8 }
 0x1d0   : > { %v488_v12 = vsel %vm421_vm0, %v2244_v11, 0.0 }
 0x1d1   : > { %489 = vadd.xlane.f32.xlu2 %v488_v12 }
 0x23c   : > { %v493_v13 = vpop.xlane.xlu2 %492 }
 0x23d   : > { %v495_v14 = vmul.f32 %v493_v13, %v2225_v34 }
 0x23f   : > { %v497_v15 = vsub.f32 %v2237_v3, %v495_v14 }
 0x241   : > { %v499_v16 = vmul.f32 %v497_v15, %v497_v15 }
 0x243   : > { %v503_v17 = vsel %vm421_vm0, %v499_v16, 0.0 }
 0x244   : > { %504 = vadd.xlane.f32.xlu0 %v503_v17  ;;  %v490_v18 = vpop.xlane.xlu2 %489 }
 0x245   : > { %v494_v19 = vmul.f32 %v490_v18, %v2225_v34 }
 0x247   : > { %v496_v20 = vsub.f32 %v2244_v11, %v494_v19 }
 0x249   : > { %v498_v21 = vmul.f32 %v496_v20, %v496_v20 }
 0x24b   : > { %v500_v22 = vsel %vm421_vm0, %v498_v21, 0.0 }
 0x24c   : > { %501 = vadd.xlane.f32.xlu1 %v500_v22 }
 0x2b7   : > { %v505_v24 = vpop.xlane.xlu0 %504 }
 0x2b8   : > { %v507_v25 = vmul.f32 %v505_v24, %v2225_v34 }
 0x2ba   : > { %v509_v26 = vadd.f32 1e-05, %v507_v25 }
 0x2bc   : > { %1871 = vrsqrt.f32 %v509_v26  ;;  %vm526_vm9 = vweird.f32 %v509_v26 }
 0x2bf   : > { %v502_v27 = vpop.xlane.xlu1 %501 }
 0x2c0   : > { %v506_v28 = vmul.f32 %v502_v27, %v2225_v34 }
 0x2c2   : > { %v1872_v29 = vpop.eup %1871  ;;  %v508_v30 = vadd.f32 1e-05, %v506_v28 }
 0x2c3   : > { %v521_v31 = vmul.f32 %v1872_v29, %v509_v26  ;;  %vm527_vm8 = vweird.f32 %v1872_v29 }
 0x2c4   : > { %1873 = vrsqrt.f32 %v508_v30  ;;  %vm528_vm10 = vmor %vm526_vm9, %vm527_vm8  ;;  %vm516_vm12 = vweird.f32 %v508_v30 }
 0x2c5   : > { %v522_v32 = vmul.f32 %v1872_v29, %v521_v31 }
 0x2c7   : > { %v523_v33 = vmul.f32 0.5, %v522_v32 }
 0x2c9   : > { %v524_v35 = vsub.f32 1.5, %v523_v33 }
 0x2ca   : > { %v1874_v36 = vpop.eup %1873 }
 0x2cb   : > { %v525_v37 = vmul.f32 %v1872_v29, %v524_v35  ;;  %v511_v38 = vmul.f32 %v1874_v36, %v508_v30  ;;  %vm517_vm11 = vweird.f32 %v1874_v36 }
 0x2cc   : > { %vm518_vm13 = vmor %vm516_vm12, %vm517_vm11 }
 0x2cd   : > { %v529_v40 = vsel %vm528_vm10, %v1872_v29, %v525_v37  ;;  %v512_v41 = vmul.f32 %v1874_v36, %v511_v38 }
 0x2ce   : > { %v531_v42 = vmul.f32 %v529_v40, %v497_v15 }
 0x2cf   : > { %v513_v43 = vmul.f32 0.5, %v512_v41 }
 0x2d0   : > { %v534_v44 = vmul.f32 %v532_v39, %v531_v42 }
 0x2d1   : > { %v514_v45 = vsub.f32 1.5, %v513_v43 }
 0x2d2   : > { %1770 = vmatmul.msk.f32.vlgmr.msrb.gmra.mxu1 %vm421_vm0, %v534_v44 }
 0x2d3   : > { %v515_v46 = vmul.f32 %v1874_v36, %v514_v45 }
 0x2d5   : > { %v519_v47 = vsel %vm518_vm13, %v1874_v36, %v515_v46 }
 0x2d6   : > { %v530_v48 = vmul.f32 %v519_v47, %v496_v20 }
 0x2d8   : > { %v533_v49 = vmul.f32 %v532_v39, %v530_v48 }
 0x2da   : > { %1769 = vmatmul.msk.f32.vlgmr.msrb.gmra.mxu0 %vm421_vm0, %v533_v49 }
 0x34f   : > { %v561_v50 = vpop.f32.mrf.mxu1 }
 0x350   : > { %695 = vrot.lane.b32.xlu2 %v561_v50, %s1949_s8  ;;  %v565_v51 = vmul.f32 0.25, %v561_v50 }
 0x357   : > { %v558_v52 = vpop.f32.mrf.mxu0 }
 0x358   : > { %693 = vrot.lane.b32.xlu0 %v558_v52, %s1949_s8  ;;  %691 = vrot.lane.b32.xlu2 %v565_v51, %s1950_s9  ;;  %v564_v53 = vmul.f32 0.25, %v558_v52  ;;  %v1842_v5 = vpack.i.bf16 %v558_v52, %v561_v50 }
 0x35a   : > { %689 = vrot.lane.b32.xlu1 %v564_v53, %s1950_s9 }
 0x360   : > { %570 = vrot.lane.b32.xlu0 %v561_v50, %s1951_s10  ;;  %568 = vrot.lane.b32.xlu2 %v558_v52, %s1951_s10 }
 0x3aa   : > { %v696_v54 = vpop.permute.xlu2 %695 }
 0x3ab   : > { %1777 = vmatpush.xpose.msk.msrb.mxu3 %vm572_vm14, %v696_v54 }
 0x3b2   : > { %v692_v56 = vpop.permute.xlu2 %691 }
 0x3ba   : > { %v569_v59 = vpop.permute.xlu2 %568 }
 0x3ca   : > { %v694_v55 = vpop.permute.xlu0 %693 }
 0x3cb   : > { %1778 = vmatpush.xpose.msk.msrb.mxu3 %vm572_vm14, %v694_v55 }
 0x3cc   : > { %v690_v57 = vpop.permute.xlu1 %689 }
 0x3ce   : > { %1779 = vmatmul.msk.f32.vlgmr.msrb.gmra.mxu3 %vm572_vm14, %v690_v57 }
 0x3d2   : > { %v571_v58 = vpop.permute.xlu0 %570 }
 0x3d3   : > { %1771 = vmatpush.xpose.msk.msra.mxu1 %vm572_vm14, %v571_v58 }
 0x3d6   : > { %1780 = vmatmul.msk.f32.gmra.mxu3 %vm572_vm14, %v692_v56 }
 0x3d7   : > { %1772 = vmatpush.xpose.msk.msra.mxu1 %vm572_vm14, %v569_v59 }
 0x3da   : > { %1773 = vmatmul.msk.f32.vlgmr.msra.gmra.mxu1 %vm572_vm14, %v564_v53 }
 0x3e2   : > { %1774 = vmatmul.msk.f32.gmra.mxu1 %vm572_vm14, %v565_v51 }
 0x451   : > { %v722_v60 = vpop.f32.mrf.mxu3 }
 0x452   : > { %v728_v61 = vsel %vm572_vm14, %v722_v60, -inf }
 0x453   : > { %729 = vmax.xlane.f32.xlu1 %v728_v61 }
 0x457   : > { %v600_v62 = vpop.f32.mrf.mxu1 }
 0x458   : > { %v606_v63 = vsel %vm572_vm14, %v600_v62, -inf }
 0x459   : > { %v725_v0 = vpop.f32.mrf.mxu3  ;;  %607 = vmax.xlane.f32.xlu2 %v606_v63 }
 0x45a   : > { %v731_v1 = vsel %vm572_vm14, %v725_v0, -inf }
 0x45b   : > { %732 = vmax.xlane.f32.xlu0 %v731_v1 }
 0x45f   : > { %v603_v2 = vpop.f32.mrf.mxu1 }
 0x460   : > { %v609_v4 = vsel %vm572_vm14, %v603_v2, -inf }
 0x461   : > { %610 = vmax.xlane.f32.xlu1 %v609_v4 }
 0x47a   : > { %1843 = vrot.lane.b32.xlu1 %v1842_v5, %s1952_s11 }
 0x4c6   : > { %v730_v6 = vpop.xlane.xlu1 %729 }
 0x4c7   : > { %v734_v7 = vsub.f32 %v722_v60, %v730_v6 }
 0x4c9   : > { %v736_v8 = vmul.f32 1.442695, %v734_v7 }
 0x4cb   : > { %1875 = vpow2.f32 %v736_v8 }
 0x4cc   : > { %v608_v9 = vpop.xlane.xlu2 %607 }
 0x4cd   : > { %v612_v12 = vsub.f32 %v600_v62, %v608_v9 }
 0x4ce   : > { %v733_v13 = vpop.xlane.xlu0 %732 }
 0x4cf   : > { %v614_v14 = vmul.f32 1.442695, %v612_v12  ;;  %v735_v15 = vsub.f32 %v725_v0, %v733_v13 }
 0x4d1   : > { %v1876_v16 = vpop.eup %1875  ;;  %1877 = vpow2.f32 %v614_v14  ;;  %v738_v17 = vmul.f32 1.442695, %v735_v15 }
 0x4d2   : > { %v740_v18 = vsel %vm572_vm14, %v1876_v16, 0.0 }
 0x4d3   : > { %1879 = vpow2.f32 %v738_v17  ;;  %741 = vadd.xlane.f32.xlu0 %v740_v18 }
 0x4d4   : > { %v611_v19 = vpop.xlane.xlu1 %610 }
 0x4d5   : > { %v613_v20 = vsub.f32 %v603_v2, %v611_v19 }
 0x4d7   : > { %v2286_v21 = vpop.eup %1877  ;;  %v616_v22 = vmul.f32 1.442695, %v613_v20 }
 0x4d8   : > { %v618_v25 = vsel %vm572_vm14, %v2286_v21, 0.0 }
 0x4d9   : > { %v2288_v24 = vpop.eup %1879  ;;  %1881 = vpow2.f32 %v616_v22 }
 0x4da   : > { %v743_v26 = vsel %vm572_vm14, %v2288_v24, 0.0 }
 0x4db   : > { %619 = vadd.xlane.f32.xlu0 %v618_v25  ;;  %744 = vadd.xlane.f32.xlu2 %v743_v26  ;;  %v483_v25 = vld [vmem:[%s2574_s4 + $0x18] sm:$0xff]  ;;  %v481_v26 = vld [vmem:[%s2574_s4 + $0x8] sm:$0xff] }
 0x4dc   : > { %841 = vmatpush.msrb.mxu1 %v483_v25 }
 0x4df   : > { %v2294_v27 = vpop.eup %1881 }
 0x4e0   : > { %v621_v28 = vsel %vm572_vm14, %v2294_v27, 0.0 }
 0x4e3   : > { %622 = vadd.xlane.f32.xlu2 %v621_v28 }
 0x4ec   : > { %v1844_v29 = vpop.permute.xlu1 %1843 }
 0x4ed   : > { %v1845_v30 = vunpack.i.l.bf16 %v1844_v29  ;;  %v1846_v31 = vunpack.i.h.bf16 %v1844_v29  ;;  %v480_v29 = vld [vmem:[%s2574_s4] sm:$0xff] }
 0x4ef   : > { %1848 = vrot.lane.b32.xlu0 %v1842_v5, %s1953_s12  ;;  %802 = vmatpush.msra.mxu0 %v1845_v30 }
 0x4f1   : > { %803 = vmatpush.msra.mxu0 %v1846_v31 }
 0x546   : > { %v742_v32 = vpop.xlane.xlu0 %741 }
 0x547   : > { %1883 = vrcp.f32 %v742_v32  ;;  %v757_v39 = vand.u32 2147483648, %v742_v32  ;;  %v755_v41 = vand.u32 2147483647, %v742_v32  ;;  %vm751_vm1 = vweird.f32 %v742_v32 }
 0x549   : > { %v758_v44 = vor.u32 1.1754944e-38, %v757_v39  ;;  %vm756_vm3 = vcmp.eq.f32.partialorder %v755_v41, 8.507059e+37 }
 0x54d   : > { %v1884_v33 = vpop.eup %1883 }
 0x54e   : > { %v747_v35 = vmul.f32 %v1884_v33, %v742_v32  ;;  %v745_v36 = vpop.xlane.xlu2 %744  ;;  %v620_v37 = vpop.xlane.xlu0 %619  ;;  %vm752_vm15 = vweird.f32 %v1884_v33 }
 0x54f   : > { %1885 = vrcp.f32 %v745_v36  ;;  %vm753_vm2 = vmor %vm751_vm1, %vm752_vm15  ;;  %v772_v53 = vand.u32 2147483648, %v745_v36  ;;  %v770_v56 = vand.u32 2147483647, %v745_v36  ;;  %vm766_vm6 = vweird.f32 %v745_v36 }
 0x550   : > { %v748_v38 = vsub.f32 1.0, %v747_v35  ;;  %1887 = vrcp.f32 %v620_v37  ;;  %v635_v58 = vand.u32 2147483648, %v620_v37  ;;  %vm629_vm7 = vweird.f32 %v620_v37 }
 0x551   : > { %v773_v61 = vor.u32 1.1754944e-38, %v772_v53  ;;  %v633_v63 = vand.u32 2147483647, %v620_v37  ;;  %vm771_vm10 = vcmp.eq.f32.partialorder %v770_v56, 8.507059e+37 }
 0x552   : > { %v749_v40 = vmul.f32 %v1884_v33, %v748_v38  ;;  %v636_v5 = vor.u32 1.1754944e-38, %v635_v58 }
 0x553   : > { %vm634_vm11 = vcmp.eq.f32.partialorder %v633_v63, 8.507059e+37  ;;  %v898_v63 = vperm.slane %v2220_v10, 7 }
 0x554   : > { %v750_v42 = vadd.f32 %v1884_v33, %v749_v40 }
 0x555   : > { %v1886_v43 = vpop.eup %1885 }
 0x556   : > { %v1888_v45 = vpop.eup %1887  ;;  %v754_v46 = vsel %vm753_vm2, %v1884_v33, %v750_v42  ;;  %v762_v47 = vmul.f32 %v1886_v43, %v745_v36  ;;  %v623_v48 = vpop.xlane.xlu2 %622  ;;  %vm767_vm4 = vweird.f32 %v1886_v43  ;;  %vm822_vm2 = vcmask 261120  }
 0x557   : > { %v759_v49 = vsel %vm756_vm3, %v758_v44, %v754_v46  ;;  %v625_v50 = vmul.f32 %v1888_v45, %v620_v37  ;;  %1889 = vrcp.f32 %v623_v48  ;;  %vm630_vm5 = vweird.f32 %v1888_v45  ;;  %vm768_vm8 = vmor %vm766_vm6, %vm767_vm4 }
 0x558   : > { %v763_v51 = vsub.f32 1.0, %v762_v47  ;;  %v760_v52 = vmul.f32 %v1876_v16, %v759_v49  ;;  %vm631_vm9 = vmor %vm629_vm7, %vm630_vm5  ;;  %v650_v14 = vand.u32 2147483648, %v623_v48  ;;  %vm644_vm13 = vweird.f32 %v623_v48 }
 0x559   : > { %v626_v54 = vsub.f32 1.0, %v625_v50  ;;  %v648_v18 = vand.u32 2147483647, %v623_v48  ;;  %v821_v37 = vperm.slane %v2220_v10, 5 }
 0x55a   : > { %v764_v55 = vmul.f32 %v1886_v43, %v763_v51  ;;  %1781 = vmatmul.msk.f32.vlgmr.msra.gmra.mxu0 %vm572_vm14, %v760_v52  ;;  %v651_v20 = vor.u32 1.1754944e-38, %v650_v14 }
 0x55b   : > { %v627_v57 = vmul.f32 %v1888_v45, %v626_v54  ;;  %vm649_vm1 = vcmp.eq.f32.partialorder %v648_v18, 8.507059e+37 }
 0x55c   : > { %v765_v59 = vadd.f32 %v1886_v43, %v764_v55 }
 0x55d   : > { %v1890_v60 = vpop.eup %1889  ;;  %v628_v62 = vadd.f32 %v1888_v45, %v627_v57 }
 0x55e   : > { %v640_v0 = vmul.f32 %v1890_v60, %v623_v48  ;;  %v769_v1 = vsel %vm768_vm8, %v1886_v43, %v765_v59  ;;  %vm645_vm12 = vweird.f32 %v1890_v60 }
 0x55f   : > { %v774_v2 = vsel %vm771_vm10, %v773_v61, %v769_v1  ;;  %v632_v4 = vsel %vm631_vm9, %v1888_v45, %v628_v62  ;;  %vm646_vm15 = vmor %vm644_vm13, %vm645_vm12 }
 0x560   : > { %v641_v6 = vsub.f32 1.0, %v640_v0  ;;  %v775_v7 = vmul.f32 %v2288_v24, %v774_v2  ;;  %v637_v13 = vsel %vm634_vm11, %v636_v5, %v632_v4  ;;  %v1862_v4 = vld [vmem:[%s2573_s3 + $0x8] ss:$0 sm:$0xff] }
 0x561   : > { %v1849_v8 = vpop.permute.xlu0 %1848  ;;  %v638_v17 = vmul.f32 %v2286_v21, %v637_v13  ;;  %v482_v21 = vld [vmem:[%s2574_s4 + $0x10] sm:$0xff] }
 0x562   : > { %v642_v9 = vmul.f32 %v1890_v60, %v641_v6  ;;  %1782 = vmatmul.msk.f32.gmra.mxu0 %vm572_vm14, %v775_v7  ;;  %v1850_v12 = vunpack.i.l.bf16 %v1849_v8  ;;  %v1851_v15 = vunpack.i.h.bf16 %v1849_v8  ;;  %842 = vmatpush.msrb.mxu1 %v482_v21 }
 0x564   : > { %680 = vmatpush.msrb.mxu2 %v1850_v12  ;;  %v643_v16 = vadd.f32 %v1890_v60, %v642_v9  ;;  %843 = vmatpush.msrb.mxu1 %v481_v26 }
 0x566   : > { %681 = vmatpush.msrb.mxu2 %v1851_v15  ;;  %v647_v19 = vsel %vm646_vm15, %v1890_v60, %v643_v16  ;;  %844 = vmatpush.msrb.mxu1 %v480_v29  ;;  %v487_v29 = vld [vmem:[%s2574_s4 + $0x38] sm:$0xff] }
 0x567   : > { %1775 = vmatmul.msk.f32.vlgmr.msrb.gmra.mxu2 %vm572_vm14, %v638_v17  ;;  %v652_v22 = vsel %vm649_vm1, %v651_v20, %v647_v19  ;;  %1038 = vmatpush.msra.mxu3 %v487_v29 }
 0x568   : > { %v653_v24 = vmul.f32 %v2294_v27, %v652_v22 }
 0x56f   : > { %1776 = vmatmul.msk.f32.gmra.mxu2 %vm572_vm14, %v653_v24 }
 0x5d7   : > { %v805_v28 = vpop.f32.mrf.mxu0 }
 0x5d8   : > { %813 = vrot.lane.b32.xlu2 %v805_v28, %s1954_s19 }
 0x5df   : > { %v808_v27 = vpop.f32.mrf.mxu0 }
 0x5e0   : > { %815 = vrot.lane.b32.xlu1 %v808_v27, %s1954_s19 }
 0x5ea   : > { %v683_v30 = vpop.f32.mrf.mxu2 }
 0x5f2   : > { %v686_v33 = vpop.f32.mrf.mxu2 }
 0x632   : > { %v814_v31 = vpop.permute.xlu2 %813 }
 0x633   : > { %v819_v32 = vsel %vm572_vm14, %v683_v30, %v814_v31 }
 0x634   : > { %1783 = vmatmul.msk.f32.vlgmr.msrb.gmra.mxu1 %vm822_vm2, %v819_v32  ;;  %v486_v32 = vld [vmem:[%s2574_s4 + $0x30] sm:$0xff] }
 0x635   : > { %1039 = vmatpush.msra.mxu3 %v486_v32 }
 0x652   : > { %v816_v35 = vpop.permute.xlu1 %815 }
 0x653   : > { %v820_v36 = vsel %vm572_vm14, %v686_v33, %v816_v35 }
 0x654   : > { %1784 = vmatmul.msk.f32.gmra.mxu1 %vm822_vm2, %v820_v36  ;;  %v485_v36 = vld [vmem:[%s2574_s4 + $0x28] sm:$0xff] }
 0x655   : > { %1040 = vmatpush.msra.mxu3 %v485_v36 }
 0x6b1   : > { %v846_v38 = vpop.f32.mrf.mxu1 }
 0x6b2   : > { %v847_v39 = vadd.f32 %v846_v38, %v821_v37 }
 0x6b4   : > { %v2326_v40 = vadd.f32 %v847_v39, %v2244_v11 }
 0x6b6   : > { %v854_v41 = vsel %vm421_vm0, %v2326_v40, 0.0 }
 0x6b7   : > { %855 = vadd.xlane.f32.xlu0 %v854_v41 }
 0x6d1   : > { %v849_v42 = vpop.f32.mrf.mxu1 }
 0x6d2   : > { %v850_v43 = vadd.f32 %v849_v42, %v821_v37  ;;  %v484_v37 = vld [vmem:[%s2574_s4 + $0x20] sm:$0xff] }
 0x6d3   : > { %1041 = vmatpush.msra.mxu3 %v484_v37 }
 0x6d4   : > { %v2331_v44 = vadd.f32 %v850_v43, %v2237_v3 }
 0x6d6   : > { %v857_v45 = vsel %vm421_vm0, %v2331_v44, 0.0 }
 0x6d7   : > { %858 = vadd.xlane.f32.xlu1 %v857_v45 }
 0x6f0   : > { %903 = vrot.lane.b32.xlu1 %v2257_v23, %s1955_s24 }
 0x72a   : > { %v856_v46 = vpop.xlane.xlu0 %855 }
 0x72b   : > { %v860_v11 = vmul.f32 %v856_v46, %v2225_v34 }
 0x72d   : > { %v862_v47 = vsub.f32 %v2326_v40, %v860_v11 }
 0x72f   : > { %v864_v48 = vmul.f32 %v862_v47, %v862_v47 }
 0x731   : > { %v866_v49 = vsel %vm421_vm0, %v864_v48, 0.0 }
 0x732   : > { %867 = vadd.xlane.f32.xlu2 %v866_v49 }
 0x74a   : > { %v859_v50 = vpop.xlane.xlu1 %858  ;;  %907 = vrot.lane.b32.xlu2 %v1862_v4, %s1955_s24 }
 0x74b   : > { %v861_v3 = vmul.f32 %v859_v50, %v2225_v34 }
 0x74d   : > { %v863_v51 = vsub.f32 %v2331_v44, %v861_v3 }
 0x74f   : > { %v865_v52 = vmul.f32 %v863_v51, %v863_v51 }
 0x751   : > { %v869_v53 = vsel %vm421_vm0, %v865_v52, 0.0 }
 0x752   : > { %870 = vadd.xlane.f32.xlu0 %v869_v53 }
 0x762   : > { %v904_v54 = vpop.permute.xlu1 %903 }
 0x763   : > { %931 = vmatpush.msra.mxu2 %v904_v54 }
 0x7a5   : > { %v868_v23 = vpop.xlane.xlu2 %867 }
 0x7a6   : > { %v872_v55 = vmul.f32 %v868_v23, %v2225_v34 }
 0x7a8   : > { %v874_v56 = vadd.f32 1e-05, %v872_v55 }
 0x7aa   : > { %1891 = vrsqrt.f32 %v874_v56  ;;  %vm882_vm4 = vweird.f32 %v874_v56 }
 0x7ad   : > { %v908_v19 = vpop.permute.xlu2 %907 }
 0x7b0   : > { %v1892_v57 = vpop.eup %1891 }
 0x7b1   : > { %v877_v58 = vmul.f32 %v1892_v57, %v874_v56  ;;  %vm883_vm3 = vweird.f32 %v1892_v57 }
 0x7b2   : > { %vm884_vm5 = vmor %vm882_vm4, %vm883_vm3 }
 0x7b3   : > { %v878_v59 = vmul.f32 %v1892_v57, %v877_v58 }
 0x7b5   : > { %v879_v60 = vmul.f32 0.5, %v878_v59 }
 0x7b7   : > { %v880_v61 = vsub.f32 1.5, %v879_v60 }
 0x7b9   : > { %v881_v62 = vmul.f32 %v1892_v57, %v880_v61 }
 0x7bb   : > { %v885_v0 = vsel %vm884_vm5, %v1892_v57, %v881_v62 }
 0x7bc   : > { %v896_v1 = vmul.f32 %v885_v0, %v862_v47 }
 0x7be   : > { %v899_v2 = vmul.f32 %v898_v63, %v896_v1 }
 0x7c0   : > { %1785 = vmatmul.msk.f32.vlgmr.msra.gmra.mxu2 %vm421_vm0, %v899_v2 }
 0x7c5   : > { %v871_v5 = vpop.xlane.xlu0 %870 }
 0x7c6   : > { %v873_v6 = vmul.f32 %v871_v5, %v2225_v34 }
 0x7c8   : > { %v875_v7 = vadd.f32 1e-05, %v873_v6 }
 0x7ca   : > { %1893 = vrsqrt.f32 %v875_v7  ;;  %vm892_vm7 = vweird.f32 %v875_v7 }
 0x7d0   : > { %v1894_v8 = vpop.eup %1893 }
 0x7d1   : > { %v887_v9 = vmul.f32 %v1894_v8, %v875_v7  ;;  %vm893_vm6 = vweird.f32 %v1894_v8 }
 0x7d2   : > { %vm894_vm8 = vmor %vm892_vm7, %vm893_vm6 }
 0x7d3   : > { %v888_v12 = vmul.f32 %v1894_v8, %v887_v9 }
 0x7d5   : > { %v889_v13 = vmul.f32 0.5, %v888_v12 }
 0x7d7   : > { %v890_v14 = vsub.f32 1.5, %v889_v13 }
 0x7d9   : > { %v891_v15 = vmul.f32 %v1894_v8, %v890_v14 }
 0x7db   : > { %v895_v16 = vsel %vm894_vm8, %v1894_v8, %v891_v15 }
 0x7dc   : > { %v897_v17 = vmul.f32 %v895_v16, %v863_v51 }
 0x7de   : > { %v900_v18 = vmul.f32 %v898_v63, %v897_v17 }
 0x7e0   : > { %1786 = vmatmul.msk.f32.gmra.mxu2 %vm421_vm0, %v900_v18 }
 0x843   : > { %v933_v20 = vpop.f32.mrf.mxu2 }
 0x844   : > { %v934_v22 = vadd.f32 %v933_v20, %v908_v19 }
 0x846   : > { %v939_v24 = vmul.f32 0.70710677, %v934_v22  ;;  %v1013_v4 = vmul.f32 0.5, %v934_v22 }
 0x848   : > { %v941_v25 = vand.u32 2147483647, %v939_v24  ;;  %vm1007_vm13 = vcmp.lt.f32.partialorder %v939_v24, 0.0 }
 0x84a   : > { %v943_v21 = vmul.f32 0.3275911, %v941_v25  ;;  %v995_v43 = vsub.f32 0.0, %v941_v25 }
 0x84c   : > { %v945_v26 = vadd.f32 1.0, %v943_v21  ;;  %v997_v11 = vmul.f32 %v995_v43, %v941_v25 }
 0x84e   : > { %1895 = vrcp.f32 %v945_v26  ;;  %v958_v31 = vand.u32 2147483648, %v945_v26  ;;  %v956_v35 = vand.u32 2147483647, %v945_v26  ;;  %vm952_vm10 = vweird.f32 %v945_v26 }
 0x84f   : > { %v999_v3 = vmul.f32 1.442695, %v997_v11 }
 0x850   : > { %v959_v39 = vor.u32 1.1754944e-38, %v958_v31  ;;  %vm957_vm12 = vcmp.eq.f32.partialorder %v956_v35, 8.507059e+37 }
 0x851   : > { %1897 = vpow2.f32 %v999_v3 }
 0x854   : > { %v1896_v28 = vpop.eup %1895 }
 0x855   : > { %v948_v27 = vmul.f32 %v1896_v28, %v945_v26  ;;  %vm953_vm9 = vweird.f32 %v1896_v28 }
 0x856   : > { %vm954_vm11 = vmor %vm952_vm10, %vm953_vm9 }
 0x857   : > { %v949_v30 = vsub.f32 1.0, %v948_v27  ;;  %v1898_v59 = vpop.eup %1897 }
 0x859   : > { %v950_v33 = vmul.f32 %v1896_v28, %v949_v30 }
 0x85b   : > { %v951_v38 = vadd.f32 %v1896_v28, %v950_v33 }
 0x85d   : > { %v955_v41 = vsel %vm954_vm11, %v1896_v28, %v951_v38  ;;  %v2369_v38 = vld [vmem:[%s2572_s2 + $0x18] sm:$0x7] }
 0x85e   : > { %v960_v42 = vsel %vm957_vm12, %v959_v39, %v955_v41  ;;  %v1019_v39 = vperm.slane %v2369_v38, 1 }
 0x85f   : > { %v977_v45 = vmul.f32 1.0614054, %v960_v42 }
 0x861   : > { %v979_v46 = vadd.f32 -1.4531521, %v977_v45 }
 0x863   : > { %v981_v47 = vmul.f32 %v979_v46, %v960_v42  ;;  %v936_v48 = vpop.f32.mrf.mxu2 }
 0x864   : > { %v937_v49 = vadd.f32 %v936_v48, %v908_v19 }
 0x865   : > { %v983_v50 = vadd.f32 1.4214138, %v981_v47 }
 0x866   : > { %v940_v51 = vmul.f32 0.70710677, %v937_v49  ;;  %v1014_v35 = vmul.f32 0.5, %v937_v49 }
 0x867   : > { %v985_v52 = vmul.f32 %v983_v50, %v960_v42 }
 0x868   : > { %v942_v53 = vand.u32 2147483647, %v940_v51  ;;  %vm1008_vm5 = vcmp.lt.f32.partialorder %v940_v51, 0.0 }
 0x869   : > { %v987_v54 = vadd.f32 -0.28449672, %v985_v52 }
 0x86a   : > { %v944_v23 = vmul.f32 0.3275911, %v942_v53  ;;  %v996_v15 = vsub.f32 0.0, %v942_v53 }
 0x86b   : > { %v989_v55 = vmul.f32 %v987_v54, %v960_v42 }
 0x86c   : > { %v946_v56 = vadd.f32 1.0, %v944_v23  ;;  %v998_v19 = vmul.f32 %v996_v15, %v942_v53 }
 0x86d   : > { %v991_v57 = vadd.f32 0.2548296, %v989_v55  ;;  %v2391_v55 = vld [vmem:[%s2573_s3 + $0x10] sm:$0xff] }
 0x86e   : > { %1899 = vrcp.f32 %v946_v56  ;;  %v973_v6 = vand.u32 2147483648, %v946_v56  ;;  %v971_v8 = vand.u32 2147483647, %v946_v56  ;;  %vm967_vm1 = vweird.f32 %v946_v56  ;;  %1131 = vmatpush.msrb.mxu0 %v2391_v55 }
 0x86f   : > { %v993_v58 = vmul.f32 %v991_v57, %v960_v42  ;;  %v1001_v24 = vmul.f32 1.442695, %v998_v19 }
 0x870   : > { %v974_v13 = vor.u32 1.1754944e-38, %v973_v6  ;;  %vm972_vm4 = vcmp.eq.f32.partialorder %v971_v8, 8.507059e+37 }
 0x871   : > { %v1003_v60 = vmul.f32 %v1898_v59, %v993_v58  ;;  %1901 = vpow2.f32 %v1001_v24 }
 0x873   : > { %v1005_v61 = vsub.f32 1.0, %v1003_v60 }
 0x874   : > { %v1900_v62 = vpop.eup %1899 }
 0x875   : > { %v1009_v63 = vsub.f32 0.0, %v1005_v61  ;;  %v963_v0 = vmul.f32 %v1900_v62, %v946_v56  ;;  %vm968_vm15 = vweird.f32 %v1900_v62 }
 0x876   : > { %vm969_vm3 = vmor %vm967_vm1, %vm968_vm15 }
 0x877   : > { %v1011_v1 = vsel %vm1007_vm13, %v1009_v63, %v1005_v61  ;;  %v964_v2 = vsub.f32 1.0, %v963_v0  ;;  %v1902_v29 = vpop.eup %1901 }
 0x878   : > { %v1015_v5 = vadd.f32 1.0, %v1011_v1  ;;  %v1107_v1 = vperm.slane %v2220_v10, 4 }
 0x879   : > { %v965_v7 = vmul.f32 %v1900_v62, %v964_v2 }
 0x87a   : > { %v1017_v9 = vmul.f32 %v1015_v5, %v1013_v4 }
 0x87b   : > { %v966_v12 = vadd.f32 %v1900_v62, %v965_v7 }
 0x87c   : > { %1787 = vmatmul.msk.f32.vlgmr.msra.gmra.mxu3 %vm822_vm2, %v1017_v9 }
 0x87d   : > { %v970_v14 = vsel %vm969_vm3, %v1900_v62, %v966_v12 }
 0x87e   : > { %v975_v16 = vsel %vm972_vm4, %v974_v13, %v970_v14 }
 0x87f   : > { %v978_v17 = vmul.f32 1.0614054, %v975_v16 }
 0x881   : > { %v980_v18 = vadd.f32 -1.4531521, %v978_v17 }
 0x883   : > { %v982_v20 = vmul.f32 %v980_v18, %v975_v16 }
 0x885   : > { %v984_v22 = vadd.f32 1.4214138, %v982_v20 }
 0x887   : > { %v986_v25 = vmul.f32 %v984_v22, %v975_v16 }
 0x889   : > { %v988_v21 = vadd.f32 -0.28449672, %v986_v25 }
 0x88b   : > { %v990_v26 = vmul.f32 %v988_v21, %v975_v16 }
 0x88d   : > { %v992_v28 = vadd.f32 0.2548296, %v990_v26 }
 0x88f   : > { %v994_v27 = vmul.f32 %v992_v28, %v975_v16 }
 0x891   : > { %v1004_v30 = vmul.f32 %v1902_v29, %v994_v27 }
 0x893   : > { %v1006_v31 = vsub.f32 1.0, %v1004_v30 }
 0x895   : > { %v1010_v32 = vsub.f32 0.0, %v1006_v31 }
 0x897   : > { %v1012_v33 = vsel %vm1008_vm5, %v1010_v32, %v1006_v31 }
 0x898   : > { %v1016_v36 = vadd.f32 1.0, %v1012_v33 }
 0x89a   : > { %v1018_v37 = vmul.f32 %v1016_v36, %v1014_v35 }
 0x89c   : > { %1788 = vmatmul.msk.f32.gmra.mxu3 %vm822_vm2, %v1018_v37 }
 0x8ff   : > { %v1043_v41 = vpop.f32.mrf.mxu3 }
 0x900   : > { %v1044_v42 = vadd.f32 %v1043_v41, %v1019_v39 }
 0x902   : > { %v2373_v43 = vadd.f32 %v1044_v42, %v2326_v40 }
 0x904   : > { %v1063_v45 = vsel %vm421_vm0, %v2373_v43, 0.0 }
 0x905   : > { %1064 = vadd.xlane.f32.xlu0 %v1063_v45 }
 0x91f   : > { %v1046_v46 = vpop.f32.mrf.mxu3 }
 0x920   : > { %v1047_v11 = vadd.f32 %v1046_v46, %v1019_v39 }
 0x922   : > { %v2378_v47 = vadd.f32 %v1047_v11, %v2331_v44 }
 0x924   : > { %v1066_v48 = vsel %vm421_vm0, %v2378_v47, 0.0 }
 0x925   : > { %1067 = vadd.xlane.f32.xlu0 %v1066_v48 }
 0x978   : > { %v1065_v49 = vpop.xlane.xlu0 %1064 }
 0x979   : > { %v1069_v50 = vmul.f32 %v1065_v49, %v2225_v34 }
 0x97b   : > { %v1071_v3 = vsub.f32 %v2373_v43, %v1069_v50 }
 0x97d   : > { %v1073_v40 = vmul.f32 %v1071_v3, %v1071_v3 }
 0x97f   : > { %v1075_v51 = vsel %vm421_vm0, %v1073_v40, 0.0 }
 0x980   : > { %1076 = vadd.xlane.f32.xlu0 %v1075_v51 }
 0x998   : > { %v1068_v52 = vpop.xlane.xlu0 %1067 }
 0x999   : > { %v1070_v53 = vmul.f32 %v1068_v52, %v2225_v34 }
 0x99b   : > { %v1072_v54 = vsub.f32 %v2378_v47, %v1070_v53 }
 0x99d   : > { %v1074_v44 = vmul.f32 %v1072_v54, %v1072_v54 }
 0x99f   : > { %v1078_v23 = vsel %vm421_vm0, %v1074_v44, 0.0 }
 0x9a0   : > { %1079 = vadd.xlane.f32.xlu1 %v1078_v23 }
 0x9f3   : > { %v1077_v56 = vpop.xlane.xlu0 %1076 }
 0x9f4   : > { %v1081_v57 = vmul.f32 %v1077_v56, %v2225_v34 }
 0x9f6   : > { %v1083_v58 = vadd.f32 1e-05, %v1081_v57 }
 0x9f8   : > { %1903 = vrsqrt.f32 %v1083_v58  ;;  %vm1091_vm7 = vweird.f32 %v1083_v58 }
 0x9fe   : > { %v1904_v59 = vpop.eup %1903 }
 0x9ff   : > { %v1086_v60 = vmul.f32 %v1904_v59, %v1083_v58  ;;  %vm1092_vm6 = vweird.f32 %v1904_v59 }
 0xa00   : > { %vm1093_vm8 = vmor %vm1091_vm7, %vm1092_vm6 }
 0xa01   : > { %v1087_v61 = vmul.f32 %v1904_v59, %v1086_v60 }
 0xa03   : > { %v1088_v62 = vmul.f32 0.5, %v1087_v61 }
 0xa05   : > { %v1089_v63 = vsub.f32 1.5, %v1088_v62 }
 0xa07   : > { %v1090_v0 = vmul.f32 %v1904_v59, %v1089_v63 }
 0xa09   : > { %v1094_v2 = vsel %vm1093_vm8, %v1904_v59, %v1090_v0 }
 0xa0a   : > { %v1105_v4 = vmul.f32 %v1094_v2, %v1071_v3 }
 0xa0c   : > { %v1108_v5 = vmul.f32 %v1107_v1, %v1105_v4 }
 0xa0e   : > { %1799 = vmatmul.msk.f32.vlgmr.msrb.gmra.mxu0 %vm421_vm0, %v1108_v5 }
 0xa13   : > { %v1080_v6 = vpop.xlane.xlu1 %1079 }
 0xa14   : > { %v1082_v7 = vmul.f32 %v1080_v6, %v2225_v34 }
 0xa16   : > { %v1084_v8 = vadd.f32 1e-05, %v1082_v7 }
 0xa18   : > { %1905 = vrsqrt.f32 %v1084_v8  ;;  %vm1101_vm10 = vweird.f32 %v1084_v8 }
 0xa1e   : > { %v1906_v9 = vpop.eup %1905 }
 0xa1f   : > { %v1096_v12 = vmul.f32 %v1906_v9, %v1084_v8  ;;  %vm1102_vm9 = vweird.f32 %v1906_v9 }
 0xa20   : > { %vm1103_vm11 = vmor %vm1101_vm10, %vm1102_vm9 }
 0xa21   : > { %v1097_v13 = vmul.f32 %v1906_v9, %v1096_v12 }
 0xa23   : > { %v1098_v14 = vmul.f32 0.5, %v1097_v13 }
 0xa25   : > { %v1099_v15 = vsub.f32 1.5, %v1098_v14 }
 0xa27   : > { %v1100_v16 = vmul.f32 %v1906_v9, %v1099_v15 }
 0xa29   : > { %v1104_v10 = vsel %vm1103_vm11, %v1906_v9, %v1100_v16 }
 0xa2a   : > { %v1106_v17 = vmul.f32 %v1104_v10, %v1072_v54 }
 0xa2c   : > { %v1109_v18 = vmul.f32 %v1107_v1, %v1106_v17 }
 0xa2e   : > { %1800 = vmatmul.msk.f32.gmra.mxu0 %vm421_vm0, %v1109_v18 }
 0xa8b   : > { %v2399_v19 = vpop.f32.mrf.mxu0 }
 0xa8c   : > { %1267 = vrot.lane.b32.xlu0 %v2399_v19, %s1949_s8  ;;  %v1139_v22 = vmul.f32 0.25, %v2399_v19 }
 0xaab   : > { %v1136_v20 = vpop.f32.mrf.mxu0 }
 0xaac   : > { %1145 = vrot.lane.b32.xlu0 %v1136_v20, %s1951_s10  ;;  %1269 = vrot.lane.b32.xlu2 %v1136_v20, %s1949_s8  ;;  %v1140_v24 = vmul.f32 0.25, %v1136_v20  ;;  %v1852_v60 = vpack.i.bf16 %v2399_v19, %v1136_v20  ;;  %s1824_s8 = sshll.u32 %s2581_s22, 4 }
 0xaad   : > { %s251_s23 = scalar_lea.vmem %s2576_s6, %s1824_s8 }
 0xab4   : > { %1263 = vrot.lane.b32.xlu2 %v1139_v22, %s1950_s9 }
 0xabc   : > { %1265 = vrot.lane.b32.xlu2 %v1140_v24, %s1950_s9 }
 0xac4   : > { %1143 = vrot.lane.b32.xlu2 %v2399_v19, %s1951_s10 }
 0xafe   : > { %v1268_v21 = vpop.permute.xlu0 %1267 }
 0xb06   : > { %v1270_v25 = vpop.permute.xlu2 %1269 }
 0xb07   : > { %1807 = vmatpush.xpose.msk.msrb.mxu3 %vm572_vm14, %v1270_v25 }
 0xb0b   : > { %1808 = vmatpush.xpose.msk.msrb.mxu3 %vm572_vm14, %v1268_v21 }
 0xb0e   : > { %v1264_v26 = vpop.permute.xlu2 %1263 }
 0xb0f   : > { %1809 = vmatmul.msk.f32.vlgmr.msrb.gmra.mxu3 %vm572_vm14, %v1264_v26 }
 0xb16   : > { %v1266_v28 = vpop.permute.xlu2 %1265 }
 0xb17   : > { %1810 = vmatmul.msk.f32.gmra.mxu3 %vm572_vm14, %v1266_v28 }
 0xb1e   : > { %v1146_v27 = vpop.permute.xlu0 %1145  ;;  %v1144_v29 = vpop.permute.xlu2 %1143 }
 0xb1f   : > { %1801 = vmatpush.xpose.msk.msra.mxu1 %vm572_vm14, %v1146_v27 }
 0xb23   : > { %1802 = vmatpush.xpose.msk.msra.mxu1 %vm572_vm14, %v1144_v29 }
 0xb26   : > { %1803 = vmatmul.msk.f32.vlgmr.msra.gmra.mxu1 %vm572_vm14, %v1139_v22 }
 0xb2e   : > { %1804 = vmatmul.msk.f32.gmra.mxu1 %vm572_vm14, %v1140_v24 }
 0xb92   : > { %v1296_v30 = vpop.f32.mrf.mxu3 }
 0xb93   : > { %v1302_v31 = vsel %vm572_vm14, %v1296_v30, -inf }
 0xb94   : > { %1303 = vmax.xlane.f32.xlu0 %v1302_v31 }
 0xb9a   : > { %v1299_v32 = vpop.f32.mrf.mxu3 }
 0xb9b   : > { %v1305_v33 = vsel %vm572_vm14, %v1299_v32, -inf }
 0xb9c   : > { %1306 = vmax.xlane.f32.xlu2 %v1305_v33 }
 0xba3   : > { %v1174_v35 = vpop.f32.mrf.mxu1 }
 0xba4   : > { %v1180_v36 = vsel %vm572_vm14, %v1174_v35, -inf }
 0xba5   : > { %1181 = vmax.xlane.f32.xlu1 %v1180_v36 }
 0xbab   : > { %v1177_v37 = vpop.f32.mrf.mxu1 }
 0xbac   : > { %v1183_v39 = vsel %vm572_vm14, %v1177_v37, -inf }
 0xbad   : > { %1184 = vmax.xlane.f32.xlu1 %v1183_v39 }
 0xc07   : > { %v1304_v41 = vpop.xlane.xlu0 %1303 }
 0xc08   : > { %v1308_v42 = vsub.f32 %v1296_v30, %v1304_v41 }
 0xc0a   : > { %v1310_v45 = vmul.f32 1.442695, %v1308_v42 }
 0xc0c   : > { %1907 = vpow2.f32 %v1310_v45 }
 0xc0f   : > { %v1307_v46 = vpop.xlane.xlu2 %1306 }
 0xc10   : > { %v1309_v11 = vsub.f32 %v1299_v32, %v1307_v46 }
 0xc12   : > { %v2422_v48 = vpop.eup %1907  ;;  %v1312_v49 = vmul.f32 1.442695, %v1309_v11 }
 0xc13   : > { %v1314_v50 = vsel %vm572_vm14, %v2422_v48, 0.0 }
 0xc14   : > { %1909 = vpow2.f32 %v1312_v49  ;;  %1315 = vadd.xlane.f32.xlu1 %v1314_v50 }
 0xc18   : > { %v1182_v3 = vpop.xlane.xlu1 %1181 }
 0xc19   : > { %v1186_v40 = vsub.f32 %v1174_v35, %v1182_v3 }
 0xc1a   : > { %v2426_v51 = vpop.eup %1909 }
 0xc1b   : > { %v1188_v52 = vmul.f32 1.442695, %v1186_v40  ;;  %v1317_v53 = vsel %vm572_vm14, %v2426_v51, 0.0 }
 0xc1c   : > { %1318 = vadd.xlane.f32.xlu1 %v1317_v53 }
 0xc1d   : > { %1911 = vpow2.f32 %v1188_v52 }
 0xc20   : > { %v1185_v54 = vpop.xlane.xlu1 %1184 }
 0xc21   : > { %v1187_v44 = vsub.f32 %v1177_v37, %v1185_v54 }
 0xc23   : > { %v2430_v23 = vpop.eup %1911  ;;  %v1190_v56 = vmul.f32 1.442695, %v1187_v44 }
 0xc24   : > { %v1192_v57 = vsel %vm572_vm14, %v2430_v23, 0.0 }
 0xc25   : > { %1913 = vpow2.f32 %v1190_v56  ;;  %1193 = vadd.xlane.f32.xlu0 %v1192_v57 }
 0xc2b   : > { %v2434_v58 = vpop.eup %1913 }
 0xc2c   : > { %v1195_v59 = vsel %vm572_vm14, %v2434_v58, 0.0 }
 0xc2d   : > { %1196 = vadd.xlane.f32.xlu2 %v1195_v59 }
 0xc35   : > { %1853 = vrot.lane.b32.xlu1 %v1852_v60, %s1952_s11 }
 0xc39   : > { %1858 = vrot.lane.b32.xlu0 %v1852_v60, %s1953_s12  ;;  %v1793_v60 = vld [vmem:[%s2574_s4 + $0x50] sm:$0xff] }
 0xc87   : > { %v1316_v61 = vpop.xlane.xlu1 %1315 }
 0xc88   : > { %1915 = vrcp.f32 %v1316_v61  ;;  %v1331_v14 = vand.u32 2147483648, %v1316_v61  ;;  %vm1325_vm13 = vweird.f32 %v1316_v61  ;;  %v1329_v16 = vand.u32 2147483647, %v1316_v61 }
 0xc8a   : > { %v1332_v19 = vor.u32 1.1754944e-38, %v1331_v14  ;;  %vm1330_vm3 = vcmp.eq.f32.partialorder %v1329_v16, 8.507059e+37 }
 0xc8e   : > { %v1916_v63 = vpop.eup %1915 }
 0xc8f   : > { %v2441_v62 = vpop.xlane.xlu1 %1318  ;;  %v1321_v0 = vmul.f32 %v1916_v63, %v1316_v61  ;;  %vm1326_vm12 = vweird.f32 %v1916_v63 }
 0xc90   : > { %1917 = vrcp.f32 %v2441_v62  ;;  %vm1327_vm15 = vmor %vm1325_vm13, %vm1326_vm12  ;;  %v1346_v32 = vand.u32 2147483648, %v2441_v62  ;;  %vm1340_vm7 = vweird.f32 %v2441_v62  ;;  %v1344_v41 = vand.u32 2147483647, %v2441_v62 }
 0xc91   : > { %v1322_v2 = vsub.f32 1.0, %v1321_v0 }
 0xc92   : > { %v1347_v49 = vor.u32 1.1754944e-38, %v1346_v32  ;;  %vm1345_vm12 = vcmp.eq.f32.partialorder %v1344_v41, 8.507059e+37 }
 0xc93   : > { %v1323_v5 = vmul.f32 %v1916_v63, %v1322_v2 }
 0xc95   : > { %v1324_v12 = vadd.f32 %v1916_v63, %v1323_v5 }
 0xc96   : > { %v2444_v4 = vpop.eup %1917 }
 0xc97   : > { %v1336_v6 = vmul.f32 %v2444_v4, %v2441_v62  ;;  %v1328_v17 = vsel %vm1327_vm15, %v1916_v63, %v1324_v12  ;;  %vm1341_vm6 = vweird.f32 %v2444_v4  ;;  %v1791_v62 = vld [vmem:[%s2574_s4 + $0x40] sm:$0xff] }
 0xc98   : > { %v1194_v1 = vpop.xlane.xlu0 %1193  ;;  %v1333_v26 = vsel %vm1330_vm3, %v1332_v19, %v1328_v17  ;;  %vm1342_vm9 = vmor %vm1340_vm7, %vm1341_vm6 }
 0xc99   : > { %1919 = vrcp.f32 %v1194_v1  ;;  %v1337_v13 = vsub.f32 1.0, %v1336_v6  ;;  %v1209_v22 = vand.u32 2147483648, %v1194_v1  ;;  %vm1203_vm4 = vweird.f32 %v1194_v1  ;;  %v2499_v6 = vld [vmem:[%s2572_s2 + $0x10] sm:$0xff] }
 0xc9a   : > { %v1207_v25 = vand.u32 2147483647, %v1194_v1  ;;  %v1334_v39 = vmul.f32 %v2422_v48, %v1333_v26 }
 0xc9b   : > { %v1338_v18 = vmul.f32 %v2444_v4, %v1337_v13  ;;  %v1210_v33 = vor.u32 1.1754944e-38, %v1209_v22 }
 0xc9c   : > { %vm1208_vm8 = vcmp.eq.f32.partialorder %v1207_v25, 8.507059e+37 }
 0xc9d   : > { %v1339_v31 = vadd.f32 %v2444_v4, %v1338_v18 }
 0xc9f   : > { %v1920_v7 = vpop.eup %1919  ;;  %v1343_v11 = vsel %vm1342_vm9, %v2444_v4, %v1339_v31 }
 0xca0   : > { %v1199_v8 = vmul.f32 %v1920_v7, %v1194_v1  ;;  %v2448_v9 = vpop.xlane.xlu2 %1196  ;;  %vm1204_vm1 = vweird.f32 %v1920_v7  ;;  %v1348_v53 = vsel %vm1345_vm12, %v1347_v49, %v1343_v11 }
 0xca1   : > { %1921 = vrcp.f32 %v2448_v9  ;;  %vm2452_vm5 = vmor %vm1203_vm4, %vm1204_vm1  ;;  %v1224_v50 = vand.u32 2147483648, %v2448_v9  ;;  %vm1218_vm11 = vweird.f32 %v2448_v9  ;;  %v1222_v52 = vand.u32 2147483647, %v2448_v9 }
 0xca2   : > { %v1200_v15 = vsub.f32 1.0, %v1199_v8  ;;  %v1349_v56 = vmul.f32 %v2426_v51, %v1348_v53  ;;  %v1792_v51 = vld [vmem:[%s2574_s4 + $0x48] sm:$0xff] }
 0xca3   : > { %v1225_v44 = vor.u32 1.1754944e-38, %v1224_v50  ;;  %vm1223_vm15 = vcmp.eq.f32.partialorder %v1222_v52, 8.507059e+37 }
 0xca4   : > { %v1201_v10 = vmul.f32 %v1920_v7, %v1200_v15 }
 0xca6   : > { %v1202_v20 = vadd.f32 %v1920_v7, %v1201_v10 }
 0xca7   : > { %v1922_v24 = vpop.eup %1921  ;;  %v1854_v21 = vpop.permute.xlu1 %1853 }
 0xca8   : > { %v1214_v27 = vmul.f32 %v1922_v24, %v2448_v9  ;;  %v1855_v29 = vunpack.i.l.bf16 %v1854_v21  ;;  %v1206_v30 = vsel %vm2452_vm5, %v1920_v7, %v1202_v20  ;;  %v1856_v36 = vunpack.i.h.bf16 %v1854_v21 }
 0xca9   : > { %v1211_v42 = vsel %vm1208_vm8, %v1210_v33, %v1206_v30  ;;  %vm1219_vm10 = vweird.f32 %v1922_v24  ;;  %v1395_v7 = vperm.slane %v2499_v6, 6 }
 0xcaa   : > { %v1215_v35 = vsub.f32 1.0, %v1214_v27  ;;  %1376 = vmatpush.msra.mxu0 %v1855_v29  ;;  %v1212_v40 = vmul.f32 %v2430_v23, %v1211_v42  ;;  %vm1220_vm13 = vmor %vm1218_vm11, %vm1219_vm10  ;;  %v1794_v23 = vld [vmem:[%s2574_s4 + $0x58] sm:$0xff] }
 0xcab   : > { %v1859_v37 = vpop.permute.xlu0 %1858  ;;  %1414 = vmatpush.msrb.mxu1 %v1794_v23  ;;  %v1863_v42 = vld [vmem:[%s2573_s3 + $0x18] ss:$0 sm:$0xff] }
 0xcac   : > { %v1216_v45 = vmul.f32 %v1922_v24, %v1215_v35  ;;  %v1860_v46 = vunpack.i.l.bf16 %v1859_v37  ;;  %1377 = vmatpush.msra.mxu0 %v1856_v36  ;;  %v1861_v3 = vunpack.i.h.bf16 %v1859_v37  ;;  %v1471_v36 = vperm.slane %v2369_v38, 0 }
 0xcad   : > { %1811 = vmatmul.msk.f32.vlgmr.msra.gmra.mxu0 %vm572_vm14, %v1334_v39  ;;  %1415 = vmatpush.msrb.mxu1 %v1793_v60 }
 0xcae   : > { %1254 = vmatpush.msrb.mxu2 %v1860_v46  ;;  %v1217_v48 = vadd.f32 %v1922_v24, %v1216_v45 }
 0xcaf   : > { %1416 = vmatpush.msrb.mxu1 %v1792_v51 }
 0xcb0   : > { %1255 = vmatpush.msrb.mxu2 %v1861_v3  ;;  %v1221_v54 = vsel %vm1220_vm13, %v1922_v24, %v1217_v48 }
 0xcb1   : > { %1805 = vmatmul.msk.f32.vlgmr.msrb.gmra.mxu2 %vm572_vm14, %v1212_v40  ;;  %v1226_v57 = vsel %vm1223_vm15, %v1225_v44, %v1221_v54  ;;  %1417 = vmatpush.msrb.mxu1 %v1791_v62 }
 0xcb2   : > { %v1227_v59 = vmul.f32 %v2434_v58, %v1226_v57 }
 0xcb5   : > { %1812 = vmatmul.msk.f32.gmra.mxu0 %vm572_vm14, %v1349_v56 }
 0xcb9   : > { %1806 = vmatmul.msk.f32.gmra.mxu2 %vm572_vm14, %v1227_v59 }
 0xd2a   : > { %v1379_v61 = vpop.f32.mrf.mxu0 }
 0xd2b   : > { %1387 = vrot.lane.b32.xlu2 %v1379_v61, %s1954_s19 }
 0xd32   : > { %v1382_v58 = vpop.f32.mrf.mxu0 }
 0xd33   : > { %1389 = vrot.lane.b32.xlu1 %v1382_v58, %s1954_s19 }
 0xd34   : > { %v1257_v63 = vpop.f32.mrf.mxu2 }
 0xd3c   : > { %v1260_v2 = vpop.f32.mrf.mxu2 }
 0xd85   : > { %v1388_v0 = vpop.permute.xlu2 %1387 }
 0xd86   : > { %v1393_v1 = vsel %vm572_vm14, %v1257_v63, %v1388_v0  ;;  %v1798_v63 = vld [vmem:[%s2574_s4 + $0x78] sm:$0xff] }
 0xd87   : > { %1813 = vmatmul.msk.f32.vlgmr.msrb.gmra.mxu1 %vm822_vm2, %v1393_v1  ;;  %1611 = vmatpush.msra.mxu3 %v1798_v63 }
 0xda5   : > { %v1390_v4 = vpop.permute.xlu1 %1389 }
 0xda6   : > { %v1394_v5 = vsel %vm572_vm14, %v1260_v2, %v1390_v4  ;;  %v1797_v2 = vld [vmem:[%s2574_s4 + $0x70] sm:$0xff] }
 0xda7   : > { %1814 = vmatmul.msk.f32.gmra.mxu1 %vm822_vm2, %v1394_v5  ;;  %1612 = vmatpush.msra.mxu3 %v1797_v2 }
 0xe04   : > { %v1419_v8 = vpop.f32.mrf.mxu1 }
 0xe05   : > { %v1420_v9 = vadd.f32 %v1419_v8, %v1395_v7  ;;  %v1795_v8 = vld [vmem:[%s2574_s4 + $0x60] sm:$0xff] }
 0xe07   : > { %v2503_v12 = vadd.f32 %v1420_v9, %v2373_v43 }
 0xe09   : > { %v1427_v13 = vsel %vm421_vm0, %v2503_v12, 0.0 }
 0xe0a   : > { %1428 = vadd.xlane.f32.xlu0 %v1427_v13 }
 0xe24   : > { %v1422_v14 = vpop.f32.mrf.mxu1 }
 0xe25   : > { %v1423_v15 = vadd.f32 %v1422_v14, %v1395_v7  ;;  %v1796_v7 = vld [vmem:[%s2574_s4 + $0x68] sm:$0xff] }
 0xe26   : > { %1613 = vmatpush.msra.mxu3 %v1796_v7 }
 0xe27   : > { %v2508_v16 = vadd.f32 %v1423_v15, %v2378_v47 }
 0xe28   : > { %1614 = vmatpush.msra.mxu3 %v1795_v8 }
 0xe29   : > { %v1430_v10 = vsel %vm421_vm0, %v2508_v16, 0.0 }
 0xe2a   : > { %1431 = vadd.xlane.f32.xlu1 %v1430_v10 }
 0xe43   : > { %1476 = vrot.lane.b32.xlu1 %v2391_v55, %s1955_s24 }
 0xe7d   : > { %v1429_v17 = vpop.xlane.xlu0 %1428 }
 0xe7e   : > { %v1433_v43 = vmul.f32 %v1429_v17, %v2225_v34 }
 0xe80   : > { %v1435_v18 = vsub.f32 %v2503_v12, %v1433_v43 }
 0xe82   : > { %v1437_v19 = vmul.f32 %v1435_v18, %v1435_v18 }
 0xe84   : > { %v1439_v20 = vsel %vm421_vm0, %v1437_v19, 0.0 }
 0xe85   : > { %1440 = vadd.xlane.f32.xlu2 %v1439_v20 }
 0xe9d   : > { %v1432_v22 = vpop.xlane.xlu1 %1431  ;;  %1480 = vrot.lane.b32.xlu2 %v1863_v42, %s1955_s24 }
 0xe9e   : > { %v1434_v47 = vmul.f32 %v1432_v22, %v2225_v34 }
 0xea0   : > { %v1436_v24 = vsub.f32 %v2508_v16, %v1434_v47 }
 0xea2   : > { %v1438_v25 = vmul.f32 %v1436_v24, %v1436_v24 }
 0xea4   : > { %v1442_v21 = vsel %vm421_vm0, %v1438_v25, 0.0 }
 0xea5   : > { %1443 = vadd.xlane.f32.xlu0 %v1442_v21 }
 0xeb5   : > { %v1477_v26 = vpop.permute.xlu1 %1476 }
 0xeb6   : > { %1504 = vmatpush.msra.mxu2 %v1477_v26 }
 0xef8   : > { %v1441_v55 = vpop.xlane.xlu2 %1440 }
 0xef9   : > { %v1445_v28 = vmul.f32 %v1441_v55, %v2225_v34 }
 0xefb   : > { %v1447_v27 = vadd.f32 1e-05, %v1445_v28 }
 0xefd   : > { %1923 = vrsqrt.f32 %v1447_v27  ;;  %vm1455_vm1 = vweird.f32 %v1447_v27 }
 0xf00   : > { %v1481_v56 = vpop.permute.xlu2 %1480 }
 0xf03   : > { %v1924_v29 = vpop.eup %1923 }
 0xf04   : > { %v1450_v30 = vmul.f32 %v1924_v29, %v1447_v27  ;;  %vm1456_vm14 = vweird.f32 %v1924_v29 }
 0xf05   : > { %vm1457_vm3 = vmor %vm1455_vm1, %vm1456_vm14 }
 0xf06   : > { %v1451_v31 = vmul.f32 %v1924_v29, %v1450_v30 }
 0xf08   : > { %v1452_v32 = vmul.f32 0.5, %v1451_v31 }
 0xf0a   : > { %v1453_v33 = vsub.f32 1.5, %v1452_v32 }
 0xf0c   : > { %v1454_v35 = vmul.f32 %v1924_v29, %v1453_v33 }
 0xf0e   : > { %v1458_v37 = vsel %vm1457_vm3, %v1924_v29, %v1454_v35 }
 0xf0f   : > { %v1469_v39 = vmul.f32 %v1458_v37, %v1435_v18 }
 0xf11   : > { %v1472_v41 = vmul.f32 %v1471_v36, %v1469_v39 }
 0xf13   : > { %1815 = vmatmul.msk.f32.vlgmr.msra.gmra.mxu2 %vm421_vm0, %v1472_v41 }
 0xf18   : > { %v1444_v45 = vpop.xlane.xlu0 %1443 }
 0xf19   : > { %v1446_v46 = vmul.f32 %v1444_v45, %v2225_v34 }
 0xf1b   : > { %v1448_v11 = vadd.f32 1e-05, %v1446_v46 }
 0xf1d   : > { %1925 = vrsqrt.f32 %v1448_v11  ;;  %vm1465_vm5 = vweird.f32 %v1448_v11 }
 0xf23   : > { %v1926_v49 = vpop.eup %1925 }
 0xf24   : > { %v1460_v50 = vmul.f32 %v1926_v49, %v1448_v11  ;;  %vm1466_vm4 = vweird.f32 %v1926_v49 }
 0xf25   : > { %vm1467_vm6 = vmor %vm1465_vm5, %vm1466_vm4 }
 0xf26   : > { %v1461_v3 = vmul.f32 %v1926_v49, %v1460_v50 }
 0xf28   : > { %v1462_v48 = vmul.f32 0.5, %v1461_v3 }
 0xf2a   : > { %v1463_v40 = vsub.f32 1.5, %v1462_v48 }
 0xf2c   : > { %v1464_v52 = vmul.f32 %v1926_v49, %v1463_v40 }
 0xf2e   : > { %v1468_v53 = vsel %vm1467_vm6, %v1926_v49, %v1464_v52 }
 0xf2f   : > { %v1470_v54 = vmul.f32 %v1468_v53, %v1436_v24 }
 0xf31   : > { %v1473_v44 = vmul.f32 %v1471_v36, %v1470_v54 }
 0xf33   : > { %1816 = vmatmul.msk.f32.gmra.mxu2 %vm421_vm0, %v1473_v44 }
 0xf96   : > { %v1506_v57 = vpop.f32.mrf.mxu2 }
 0xf97   : > { %v1507_v59 = vadd.f32 %v1506_v57, %v1481_v56 }
 0xf99   : > { %v1512_v23 = vmul.f32 0.70710677, %v1507_v59  ;;  %v1586_v45 = vmul.f32 0.5, %v1507_v59 }
 0xf9b   : > { %v1514_v60 = vand.u32 2147483647, %v1512_v23  ;;  %vm1580_vm11 = vcmp.lt.f32.partialorder %v1512_v23, 0.0 }
 0xf9d   : > { %v1516_v51 = vmul.f32 0.3275911, %v1514_v60  ;;  %v1568_v10 = vsub.f32 0.0, %v1514_v60 }
 0xf9f   : > { %v1518_v61 = vadd.f32 1.0, %v1516_v51  ;;  %v1570_v18 = vmul.f32 %v1568_v10, %v1514_v60 }
 0xfa1   : > { %1927 = vrcp.f32 %v1518_v61  ;;  %v1531_v1 = vand.u32 2147483648, %v1518_v61  ;;  %v1529_v5 = vand.u32 2147483647, %v1518_v61  ;;  %vm1525_vm8 = vweird.f32 %v1518_v61 }
 0xfa2   : > { %v1572_v24 = vmul.f32 1.442695, %v1570_v18 }
 0xfa3   : > { %v1532_v13 = vor.u32 1.1754944e-38, %v1531_v1  ;;  %vm1530_vm10 = vcmp.eq.f32.partialorder %v1529_v5, 8.507059e+37 }
 0xfa4   : > { %1929 = vpow2.f32 %v1572_v24 }
 0xfa7   : > { %v1928_v58 = vpop.eup %1927 }
 0xfa8   : > { %v1521_v62 = vmul.f32 %v1928_v58, %v1518_v61  ;;  %vm1526_vm7 = vweird.f32 %v1928_v58 }
 0xfa9   : > { %vm1527_vm9 = vmor %vm1525_vm8, %vm1526_vm7 }
 0xfaa   : > { %v1522_v0 = vsub.f32 1.0, %v1521_v62  ;;  %v1930_v32 = vpop.eup %1929 }
 0xfac   : > { %v1523_v4 = vmul.f32 %v1928_v58, %v1522_v0 }
 0xfae   : > { %v1524_v9 = vadd.f32 %v1928_v58, %v1523_v4 }
 0xfb0   : > { %v1528_v14 = vsel %vm1527_vm9, %v1928_v58, %v1524_v9 }
 0xfb1   : > { %v1533_v15 = vsel %vm1530_vm10, %v1532_v13, %v1528_v14  ;;  %v1592_v13 = vperm.slane %v2369_v38, 2 }
 0xfb2   : > { %v1550_v17 = vmul.f32 1.0614054, %v1533_v15 }
 0xfb4   : > { %v1552_v43 = vadd.f32 -1.4531521, %v1550_v17 }
 0xfb6   : > { %v1554_v19 = vmul.f32 %v1552_v43, %v1533_v15  ;;  %v1509_v20 = vpop.f32.mrf.mxu2 }
 0xfb7   : > { %v1510_v22 = vadd.f32 %v1509_v20, %v1481_v56 }
 0xfb8   : > { %v1556_v47 = vadd.f32 1.4214138, %v1554_v19 }
 0xfb9   : > { %v1513_v25 = vmul.f32 0.70710677, %v1510_v22  ;;  %v1587_v7 = vmul.f32 0.5, %v1510_v22 }
 0xfba   : > { %v1558_v21 = vmul.f32 %v1556_v47, %v1533_v15 }
 0xfbb   : > { %v1515_v26 = vand.u32 2147483647, %v1513_v25  ;;  %vm1581_vm1 = vcmp.lt.f32.partialorder %v1513_v25, 0.0 }
 0xfbc   : > { %v1560_v55 = vadd.f32 -0.28449672, %v1558_v21 }
 0xfbd   : > { %v1517_v28 = vmul.f32 0.3275911, %v1515_v26  ;;  %v1569_v53 = vsub.f32 0.0, %v1515_v26 }
 0xfbe   : > { %v1562_v27 = vmul.f32 %v1560_v55, %v1533_v15 }
 0xfbf   : > { %v1519_v29 = vadd.f32 1.0, %v1517_v28  ;;  %v1571_v57 = vmul.f32 %v1569_v53, %v1515_v26 }
 0xfc0   : > { %v1564_v30 = vadd.f32 0.2548296, %v1562_v27 }
 0xfc1   : > { %1931 = vrcp.f32 %v1519_v29  ;;  %v1546_v11 = vand.u32 2147483648, %v1519_v29  ;;  %v1544_v50 = vand.u32 2147483647, %v1519_v29  ;;  %vm1540_vm13 = vweird.f32 %v1519_v29 }
 0xfc2   : > { %v1566_v31 = vmul.f32 %v1564_v30, %v1533_v15  ;;  %v1574_v60 = vmul.f32 1.442695, %v1571_v57 }
 0xfc3   : > { %v1547_v40 = vor.u32 1.1754944e-38, %v1546_v11  ;;  %vm1545_vm14 = vcmp.eq.f32.partialorder %v1544_v50, 8.507059e+37 }
 0xfc4   : > { %v1576_v33 = vmul.f32 %v1930_v32, %v1566_v31  ;;  %1933 = vpow2.f32 %v1574_v60 }
 0xfc6   : > { %v1578_v35 = vsub.f32 1.0, %v1576_v33 }
 0xfc7   : > { %v1932_v36 = vpop.eup %1931 }
 0xfc8   : > { %v1582_v37 = vsub.f32 0.0, %v1578_v35  ;;  %v1536_v39 = vmul.f32 %v1932_v36, %v1519_v29  ;;  %vm1541_vm12 = vweird.f32 %v1932_v36 }
 0xfc9   : > { %vm1542_vm15 = vmor %vm1540_vm13, %vm1541_vm12 }
 0xfca   : > { %v1584_v41 = vsel %vm1580_vm11, %v1582_v37, %v1578_v35  ;;  %v1537_v42 = vsub.f32 1.0, %v1536_v39  ;;  %v1934_v0 = vpop.eup %1933  ;;  %v1668_v39 = vperm.slane %v2499_v6, 2 }
 0xfcb   : > { %v1588_v46 = vadd.f32 1.0, %v1584_v41 }
 0xfcc   : > { %v1538_v49 = vmul.f32 %v1932_v36, %v1537_v42 }
 0xfcd   : > { %v1590_v3 = vmul.f32 %v1588_v46, %v1586_v45 }
 0xfce   : > { %v1539_v48 = vadd.f32 %v1932_v36, %v1538_v49 }
 0xfcf   : > { %1817 = vmatmul.msk.f32.vlgmr.msra.gmra.mxu3 %vm822_vm2, %v1590_v3 }
 0xfd0   : > { %v1543_v52 = vsel %vm1542_vm15, %v1932_v36, %v1539_v48 }
 0xfd1   : > { %v1548_v54 = vsel %vm1545_vm14, %v1547_v40, %v1543_v52 }
 0xfd2   : > { %v1551_v44 = vmul.f32 1.0614054, %v1548_v54 }
 0xfd4   : > { %v1553_v56 = vadd.f32 -1.4531521, %v1551_v44 }
 0xfd6   : > { %v1555_v59 = vmul.f32 %v1553_v56, %v1548_v54 }
 0xfd8   : > { %v1557_v23 = vadd.f32 1.4214138, %v1555_v59 }
 0xfda   : > { %v1559_v51 = vmul.f32 %v1557_v23, %v1548_v54 }
 0xfdc   : > { %v1561_v61 = vadd.f32 -0.28449672, %v1559_v51 }
 0xfde   : > { %v1563_v58 = vmul.f32 %v1561_v61, %v1548_v54 }
 0xfe0   : > { %v1565_v62 = vadd.f32 0.2548296, %v1563_v58 }
 0xfe2   : > { %v1567_v63 = vmul.f32 %v1565_v62, %v1548_v54 }
 0xfe4   : > { %v1577_v1 = vmul.f32 %v1934_v0, %v1567_v63 }
 0xfe6   : > { %v1579_v2 = vsub.f32 1.0, %v1577_v1 }
 0xfe8   : > { %v1583_v4 = vsub.f32 0.0, %v1579_v2 }
 0xfea   : > { %v1585_v5 = vsel %vm1581_vm1, %v1583_v4, %v1579_v2 }
 0xfeb   : > { %v1589_v8 = vadd.f32 1.0, %v1585_v5 }
 0xfed   : > { %v1591_v9 = vmul.f32 %v1589_v8, %v1587_v7 }
 0xfef   : > { %1818 = vmatmul.msk.f32.gmra.mxu3 %vm822_vm2, %v1591_v9 }
0x1052   : > { %v1616_v14 = vpop.f32.mrf.mxu3 }
0x1053   : > { %v1617_v15 = vadd.f32 %v1616_v14, %v1592_v13 }
0x1055   : > { %v1622_v10 = vadd.f32 %v1617_v15, %v2503_v12 }
0x1057   : > { %v1624_v17 = vsel %vm421_vm0, %v1622_v10, 0.0 }
0x1058   : > { %1625 = vadd.xlane.f32.xlu0 %v1624_v17 }
0x1072   : > { %v1619_v43 = vpop.f32.mrf.mxu3 }
0x1073   : > { %v1620_v18 = vadd.f32 %v1619_v43, %v1592_v13 }
0x1075   : > { %v1623_v19 = vadd.f32 %v1620_v18, %v2508_v16  ;;  %v1671_v16 = vld [vmem:[%s2575_s5] sm:$0xff] }
0x1076   : > { %1695 = vmatpush.msrb.mxu0 %v1671_v16 }
0x1077   : > { %v1627_v20 = vsel %vm421_vm0, %v1623_v19, 0.0 }
0x1078   : > { %1628 = vadd.xlane.f32.xlu0 %v1627_v20 }
0x10cb   : > { %v1626_v22 = vpop.xlane.xlu0 %1625 }
0x10cc   : > { %v1630_v47 = vmul.f32 %v1626_v22, %v2225_v34 }
0x10ce   : > { %v1632_v24 = vsub.f32 %v1622_v10, %v1630_v47 }
0x10d0   : > { %v1634_v25 = vmul.f32 %v1632_v24, %v1632_v24 }
0x10d2   : > { %v1636_v38 = vsel %vm421_vm0, %v1634_v25, 0.0 }
0x10d3   : > { %1637 = vadd.xlane.f32.xlu0 %v1636_v38 }
0x10eb   : > { %v1629_v21 = vpop.xlane.xlu0 %1628 }
0x10ec   : > { %v1631_v12 = vmul.f32 %v1629_v21, %v2225_v34 }
0x10ee   : > { %v1633_v26 = vsub.f32 %v1623_v19, %v1631_v12 }
0x10f0   : > { %v1635_v55 = vmul.f32 %v1633_v26, %v1633_v26 }
0x10f2   : > { %v1639_v28 = vsel %vm421_vm0, %v1635_v55, 0.0 }
0x10f3   : > { %1640 = vadd.xlane.f32.xlu2 %v1639_v28 }
0x1146   : > { %v1638_v27 = vpop.xlane.xlu0 %1637 }
0x1147   : > { %v1642_v29 = vmul.f32 %v1638_v27, %v2225_v34 }
0x1149   : > { %v1644_v30 = vadd.f32 1e-05, %v1642_v29 }
0x114b   : > { %1935 = vrsqrt.f32 %v1644_v30  ;;  %vm1652_vm3 = vweird.f32 %v1644_v30 }
0x1151   : > { %v1936_v31 = vpop.eup %1935 }
0x1152   : > { %v1647_v32 = vmul.f32 %v1936_v31, %v1644_v30  ;;  %vm1653_vm2 = vweird.f32 %v1936_v31 }
0x1153   : > { %vm1654_vm4 = vmor %vm1652_vm3, %vm1653_vm2 }
0x1154   : > { %v1648_v33 = vmul.f32 %v1936_v31, %v1647_v32 }
0x1156   : > { %v1649_v35 = vmul.f32 0.5, %v1648_v33 }
0x1158   : > { %v1650_v36 = vsub.f32 1.5, %v1649_v35 }
0x115a   : > { %v1651_v37 = vmul.f32 %v1936_v31, %v1650_v36 }
0x115c   : > { %v1655_v41 = vsel %vm1654_vm4, %v1936_v31, %v1651_v37 }
0x115d   : > { %v1666_v42 = vmul.f32 %v1655_v41, %v1632_v24 }
0x115f   : > { %v1669_v45 = vmul.f32 %v1668_v39, %v1666_v42 }
0x1161   : > { %1819 = vmatmul.msk.f32.vlgmr.msrb.gmra.mxu0 %vm421_vm0, %v1669_v45 }
0x1166   : > { %v1641_v46 = vpop.xlane.xlu2 %1640 }
0x1167   : > { %v1643_v11 = vmul.f32 %v1641_v46, %v2225_v34  ;;  %v1864_v34 = vld [vmem:[%s2575_s5 + $0x8] ss:$0 sm:$0xff] }
0x1169   : > { %v1645_v49 = vadd.f32 1e-05, %v1643_v11 }
0x116b   : > { %1937 = vrsqrt.f32 %v1645_v49  ;;  %vm1662_vm6 = vweird.f32 %v1645_v49 }
0x1171   : > { %v1938_v50 = vpop.eup %1937 }
0x1172   : > { %v1657_v3 = vmul.f32 %v1938_v50, %v1645_v49  ;;  %vm1663_vm5 = vweird.f32 %v1938_v50 }
0x1173   : > { %vm1664_vm7 = vmor %vm1662_vm6, %vm1663_vm5 }
0x1174   : > { %v1658_v48 = vmul.f32 %v1938_v50, %v1657_v3 }
0x1176   : > { %v1659_v40 = vmul.f32 0.5, %v1658_v48 }
0x1178   : > { %v1660_v52 = vsub.f32 1.5, %v1659_v40 }
0x117a   : > { %v1661_v53 = vmul.f32 %v1938_v50, %v1660_v52 }
0x117c   : > { %v1665_v6 = vsel %vm1664_vm7, %v1938_v50, %v1661_v53 }
0x117d   : > { %v1667_v54 = vmul.f32 %v1665_v6, %v1633_v26 }
0x117f   : > { %v1670_v44 = vmul.f32 %v1668_v39, %v1667_v54 }
0x1181   : > { %1820 = vmatmul.msk.f32.gmra.mxu0 %vm421_vm0, %v1670_v44 }
0x11de   : > { %v1697_v56 = vpop.f32.mrf.mxu0 }
0x11df   : > { %v1698_v57 = vadd.f32 %v1864_v34, %v1697_v56 }
0x11e1   : > { %1703 = vst [vmem:[%s251_s23] sm:$0xff] %v1698_v57 }
0x11fe   : > { %v1700_v59 = vpop.f32.mrf.mxu0 }
0x11ff   : > { %v1701_v23 = vadd.f32 %v1864_v34, %v1700_v59 }
0x1201   : > { %1704 = vst [vmem:[%s251_s23 + $0x8] sm:$0xff] %v1701_v23 }
0x1202 PF: > { %s16_s21 = sadd.s32 1, %s1946_s21  }
0x1203   : > { %p13_p4 = scmp.ge.s32.totalorder %s16_s21, 4  }
0x1205   :  { %15 = sbr.rel (!%p13_p4) target bundleno = 1 (0x1), region = 76 }

// kernel: conditioning_forward.3
= control target key start
LH: loop header
LB: loop body
LE: loop exit
PB: predicated region body
PF: predicated region fallthrough
CT: control target
= control target key end

     0   :  { %s1056_s15 = smov 0   ;;  %s1391_s0 = inlined_call_operand.vmem [shape: f32[2,8,256], index: 0, kind: input, shape index: {}]   ;;  %s1392_s1 = inlined_call_operand.vmem [shape: f32[2,8,256], index: 1, kind: input, shape index: {}]   ;;  %s1393_s2 = inlined_call_operand.vmem [shape: f32[8,10], index: 2, kind: input, shape index: {}]   ;;  %s1394_s3 = inlined_call_operand.vmem [shape: f32[2,8,72], index: 3, kind: input, shape index: {}]   ;;  %s1395_s4 = inlined_call_operand.vmem [shape: f32[2,8,256], index: 4, kind: output, shape index: {}]  }
   0x1 LB: > { %s880_s16 = sadd.s32 4294967295, %s1009_s15   ;;  %p884_p0 = scmp.ge.s32.totalorder %s1009_s15, 1  ;;  %s1009_s15 = sphi %s1056_s15, %s14_s15  }
   0x2   : > { %p172_p1 = scmp.lt.s32.totalorder %s1009_s15, 3 }
   0x4   : > { %p173_p2 = pnand %p884_p0, %p172_p1 }
   0x5   : > { %p203_p3 = scmp.lt.s32.totalorder (!%p173_p2), %s880_s16, 1  ;;  %s1016_s26 = smov (!%p173_p2), 113  }
   0x6   : > { %176 = sbr.rel (%p173_p2) target bundleno = 1319 (0x527), region = 36  ;;  %s1017_s27 = smov (!%p173_p2), 112  }
   0x7   : > { %s1018_s28 = smov (!%p173_p2), 111   ;;  %s1019_s29 = smov (!%p173_p2), 127  }
   0x8   : > { %s1020_s30 = smov (!%p173_p2), 15   ;;  %s1021_s5 = smov (!%p173_p2), 1  }
   0x9   : > { %s1022_s6 = smov (!%p173_p2), 16   ;;  %s1023_s7 = smov (!%p173_p2), 17  }
   0xb   : > { %v1067_v0 = vld [vmem:[%s1393_s2] sm:$0xff]  ;;  %v1011_v1 = vmov 0   ;;  %v1012_v2 = vmov 1   ;;  %v1013_v3 = vmov 2   ;;  %v1014_v4 = vmov 3   ;;  %s1446_s16 = smov (!%p203_p3, %s880_s16), 1 }
   0xc   : > { %961 = vset.pattern.permute.xlu0 %v1011_v1  ;;  %963 = vset.pattern.permute.xlu1 %v1012_v2  ;;  %v1015_v5 = vmov 8.0   ;;  %s1073_s19 = sshll.u32 %s1446_s16, 4 }
   0xd   : > { %288 = vperm.xlu0 %961, %v1067_v0   ;;  %294 = vperm.xlu1 %963, %v1067_v0   ;;  %971 = vrcp.f32 %v1015_v5  ;;  %s207_s22 = scalar_lea.vmem %s1391_s0, %s1073_s19  ;;  %s212_s25 = scalar_lea.vmem %s1392_s1, %s1073_s19 }
   0xe   : > { %v218_v9 = vld [vmem:[%s207_s22] sm:$0xff]  ;;  %v219_v10 = vld [vmem:[%s207_s22 + $0x8] sm:$0xff]  ;;  %s217_s14 = scalar_lea.vmem %s1395_s4, %s1073_s19 }
   0xf   : > { %v223_v11 = vrot.slane %v218_v9, 4  ;;  %v229_v12 = vrot.slane %v219_v10, 4  ;;  %v1083_v22 = vld [vmem:[%s212_s25] sm:$0xff]  ;;  %v1085_v23 = vld [vmem:[%s212_s25 + $0x8] sm:$0xff] }
  0x10   : > { %v299_v24 = vrot.slane %v1083_v22, 4  ;;  %v305_v25 = vrot.slane %v1085_v23, 4 }
  0x11   : > { %v224_v14 = vadd.f32 %v223_v11, %v218_v9  ;;  %v230_v15 = vadd.f32 %v229_v12, %v219_v10 }
  0x12   : > { %v300_v29 = vadd.f32 %v299_v24, %v1083_v22  ;;  %v306_v30 = vadd.f32 %v305_v25, %v1085_v23 }
  0x13   : > { %v972_v6 = vpop.eup %971  ;;  %v225_v16 = vrot.slane %v224_v14, 2  ;;  %v231_v17 = vrot.slane %v230_v15, 2 }
  0x14   : > { %v236_v7 = vmul.f32 8.0, %v972_v6  ;;  %vm240_vm0 = vweird.f32 %v972_v6  ;;  %v301_v32 = vrot.slane %v300_v29, 2  ;;  %v307_v33 = vrot.slane %v306_v30, 2 }
  0x15   : > { %962 = vset.pattern.permute.xlu0 %v1013_v3  ;;  %964 = vset.pattern.permute.xlu1 %v1014_v4  ;;  %v226_v19 = vadd.f32 %v225_v16, %v224_v14  ;;  %v232_v20 = vadd.f32 %v231_v17, %v230_v15 }
  0x16   : > { %356 = vperm.xlu0 %962, %v1067_v0   ;;  %362 = vperm.xlu1 %964, %v1067_v0   ;;  %v237_v8 = vsub.f32 1.0, %v236_v7  ;;  %v302_v35 = vadd.f32 %v301_v32, %v300_v29  ;;  %v308_v36 = vadd.f32 %v307_v33, %v306_v30 }
  0x17   : > { %v227_v21 = vrot.slane %v226_v19, 1  ;;  %v233_v28 = vrot.slane %v232_v20, 1 }
  0x18   : > { %v238_v13 = vmul.f32 %v972_v6, %v237_v8  ;;  %v303_v38 = vrot.slane %v302_v35, 1  ;;  %v309_v39 = vrot.slane %v308_v36, 1 }
  0x19   : > { %v228_v27 = vadd.f32 %v227_v21, %v226_v19  ;;  %v234_v34 = vadd.f32 %v233_v28, %v232_v20 }
  0x1a   : > { %v239_v18 = vadd.f32 %v972_v6, %v238_v13  ;;  %v304_v41 = vadd.f32 %v303_v38, %v302_v35  ;;  %v310_v42 = vadd.f32 %v309_v39, %v308_v36 }
  0x1c   : > { %v241_v26 = vsel %vm240_vm0, %v972_v6, %v239_v18 }
  0x1d   : > { %v242_v31 = vmul.f32 %v241_v26, %v228_v27  ;;  %v243_v40 = vmul.f32 %v241_v26, %v234_v34  ;;  %v311_v44 = vmul.f32 %v304_v41, %v241_v26  ;;  %v312_v45 = vmul.f32 %v310_v42, %v241_v26 }
  0x1f   : > { %v1091_v37 = vsub.f32 %v218_v9, %v242_v31  ;;  %v1095_v46 = vsub.f32 %v219_v10, %v243_v40  ;;  %v1098_v47 = vsub.f32 %v1083_v22, %v311_v44  ;;  %v1101_v48 = vsub.f32 %v1085_v23, %v312_v45  ;;  %v909_v44 = vld [vmem:[%s1394_s3 + $0x8] sm:$0xff] }
  0x21   : > { %v246_v43 = vmul.f32 %v1091_v37, %v1091_v37  ;;  %v315_v50 = vmul.f32 %v1098_v47, %v1098_v47  ;;  %v316_v51 = vmul.f32 %v1101_v48, %v1101_v48  ;;  %v247_v52 = vmul.f32 %v1095_v46, %v1095_v46 }
  0x23   : > { %v248_v49 = vrot.slane %v246_v43, 4  ;;  %v317_v53 = vrot.slane %v315_v50, 4  ;;  %v323_v55 = vrot.slane %v316_v51, 4  ;;  %v254_v56 = vrot.slane %v247_v52, 4 }
  0x25   : > { %v249_v54 = vadd.f32 %v248_v49, %v246_v43  ;;  %v318_v57 = vadd.f32 %v317_v53, %v315_v50  ;;  %v324_v59 = vadd.f32 %v323_v55, %v316_v51  ;;  %v255_v60 = vadd.f32 %v254_v56, %v247_v52 }
  0x27   : > { %v250_v58 = vrot.slane %v249_v54, 2  ;;  %v319_v61 = vrot.slane %v318_v57, 2  ;;  %v325_v63 = vrot.slane %v324_v59, 2  ;;  %v256_v1 = vrot.slane %v255_v60, 2 }
  0x29   : > { %v251_v62 = vadd.f32 %v250_v58, %v249_v54  ;;  %v320_v2 = vadd.f32 %v319_v61, %v318_v57  ;;  %v326_v4 = vadd.f32 %v325_v63, %v324_v59  ;;  %v257_v5 = vadd.f32 %v256_v1, %v255_v60 }
  0x2b   : > { %v252_v3 = vrot.slane %v251_v62, 1  ;;  %v321_v6 = vrot.slane %v320_v2, 1  ;;  %v327_v8 = vrot.slane %v326_v4, 1  ;;  %v258_v9 = vrot.slane %v257_v5, 1 }
  0x2d   : > { %v253_v7 = vadd.f32 %v252_v3, %v251_v62  ;;  %v322_v10 = vadd.f32 %v321_v6, %v320_v2  ;;  %v328_v12 = vadd.f32 %v327_v8, %v326_v4  ;;  %v259_v13 = vadd.f32 %v258_v9, %v257_v5 }
  0x2f   : > { %v260_v11 = vmul.f32 %v253_v7, %v241_v26  ;;  %v329_v14 = vmul.f32 %v322_v10, %v241_v26  ;;  %v330_v16 = vmul.f32 %v328_v12, %v241_v26  ;;  %v261_v17 = vmul.f32 %v259_v13, %v241_v26 }
  0x31   : > { %v262_v15 = vadd.f32 1e-05, %v260_v11  ;;  %v331_v18 = vadd.f32 1e-05, %v329_v14  ;;  %v332_v19 = vadd.f32 1e-05, %v330_v16 }
  0x32   : > { %v263_v20 = vadd.f32 1e-05, %v261_v17 }
  0x33   : > { %973 = vrsqrt.f32 %v262_v15  ;;  %vm270_vm1 = vweird.f32 %v262_v15  ;;  %vm339_vm3 = vweird.f32 %v331_v18  ;;  %vm349_vm6 = vweird.f32 %v332_v19 }
  0x34   : > { %975 = vrsqrt.f32 %v331_v18  ;;  %vm280_vm9 = vweird.f32 %v263_v20 }
  0x35   : > { %977 = vrsqrt.f32 %v332_v19 }
  0x36   : > { %979 = vrsqrt.f32 %v263_v20 }
  0x39   : > { %v974_v21 = vpop.eup %973 }
  0x3a   : > { %v976_v24 = vpop.eup %975  ;;  %v265_v25 = vmul.f32 %v974_v21, %v262_v15  ;;  %vm271_vm2 = vweird.f32 %v974_v21 }
  0x3b   : > { %v978_v27 = vpop.eup %977  ;;  %v334_v28 = vmul.f32 %v976_v24, %v331_v18  ;;  %vm340_vm4 = vweird.f32 %v976_v24  ;;  %vm1109_vm5 = vmor %vm270_vm1, %vm271_vm2 }
  0x3c   : > { %v980_v29 = vpop.eup %979  ;;  %v266_v30 = vmul.f32 %v974_v21, %v265_v25  ;;  %v344_v31 = vmul.f32 %v978_v27, %v332_v19  ;;  %vm350_vm7 = vweird.f32 %v978_v27  ;;  %vm341_vm8 = vmor %vm339_vm3, %vm340_vm4 }
  0x3d   : > { %v275_v32 = vmul.f32 %v980_v29, %v263_v20  ;;  %v335_v33 = vmul.f32 %v976_v24, %v334_v28  ;;  %vm281_vm10 = vweird.f32 %v980_v29  ;;  %vm351_vm11 = vmor %vm349_vm6, %vm350_vm7 }
  0x3e   : > { %v267_v34 = vmul.f32 0.5, %v266_v30  ;;  %v345_v35 = vmul.f32 %v978_v27, %v344_v31  ;;  %vm282_vm12 = vmor %vm280_vm9, %vm281_vm10 }
  0x3f   : > { %v276_v26 = vmul.f32 %v980_v29, %v275_v32  ;;  %v336_v36 = vmul.f32 0.5, %v335_v33 }
  0x40   : > { %v268_v38 = vsub.f32 1.5, %v267_v34  ;;  %v346_v39 = vmul.f32 0.5, %v345_v35 }
  0x41   : > { %v277_v40 = vmul.f32 0.5, %v276_v26  ;;  %v337_v41 = vsub.f32 1.5, %v336_v36 }
  0x42   : > { %v269_v42 = vmul.f32 %v974_v21, %v268_v38  ;;  %v347_v43 = vsub.f32 1.5, %v346_v39 }
  0x43   : > { %v278_v45 = vsub.f32 1.5, %v277_v40  ;;  %v338_v49 = vmul.f32 %v976_v24, %v337_v41 }
  0x44   : > { %v273_v52 = vsel %vm1109_vm5, %v974_v21, %v269_v42  ;;  %v348_v53 = vmul.f32 %v978_v27, %v347_v43 }
  0x45   : > { %v279_v54 = vmul.f32 %v980_v29, %v278_v45  ;;  %v342_v55 = vsel %vm341_vm8, %v976_v24, %v338_v49  ;;  %v284_v56 = vmul.f32 %v273_v52, %v1091_v37 }
  0x46   : > { %v352_v57 = vsel %vm351_vm11, %v978_v27, %v348_v53  ;;  %v353_v58 = vmul.f32 %v342_v55, %v1098_v47 }
  0x47   : > { %v283_v59 = vsel %vm282_vm12, %v980_v29, %v279_v54  ;;  %v354_v61 = vmul.f32 %v352_v57, %v1101_v48  ;;  %v1024_v29 = vmov 4   ;;  %v406_v57 = vld [vmem:[%s1394_s3] sm:$0xff] }
  0x48   : > { %v285_v1 = vmul.f32 %v283_v59, %v1095_v46  ;;  %965 = vset.pattern.permute.xlu0 %v1024_v29 }
  0x7f   : > { %v289_v50 = vpop.permute.xlu0 %288  ;;  %v295_v51 = vpop.permute.xlu1 %294 }
  0x80   : > { %v291_v60 = vmul.f32 %v289_v50, %v284_v56  ;;  %v292_v6 = vmul.f32 %v289_v50, %v285_v1 }
  0x82   : > { %v297_v3 = vadd.f32 %v295_v51, %v291_v60  ;;  %v298_v9 = vadd.f32 %v295_v51, %v292_v6 }
  0x88   : > { %v357_v62 = vpop.permute.xlu0 %356  ;;  %v363_v63 = vpop.permute.xlu1 %362 }
  0x89   : > { %v359_v2 = vmul.f32 %v357_v62, %v353_v58  ;;  %v360_v4 = vmul.f32 %v357_v62, %v354_v61 }
  0x8b   : > { %v365_v5 = vadd.f32 %v363_v63, %v359_v2  ;;  %v366_v8 = vadd.f32 %v363_v63, %v360_v4  ;;  %v1026_v4 = vmov 5  }
  0x8d   : > { %v367_v7 = vmul.f32 %v365_v5, %v297_v3  ;;  %v368_v46 = vmul.f32 %v366_v8, %v298_v9  ;;  %v1025_v3 = vmov 256.0   ;;  %v1027_v8 = vmov 6  }
  0x8e   : > { %981 = vrcp.f32 %v1025_v3 }
  0x8f   : > { %v1120_v37 = vmul.f32 %v367_v7, %v1083_v22  ;;  %v1129_v47 = vmul.f32 %v368_v46, %v1085_v23  ;;  %v371_v22 = vlaneseq }
  0x91   : > { %456 = vrot.lane.b32.xlu0 %v1120_v37, %s1016_s26  ;;  %467 = vrot.lane.b32.xlu1 %v1120_v37, %s1017_s27  ;;  %v1157_v23 = vand.u32 127, %v371_v22 }
  0x92   : > { %476 = vrot.lane.b32.xlu2 %v1120_v37, %s1018_s28 }
  0x93   : > { %v1160_v48 = vadd.s32 128, %v1157_v23  ;;  %v378_v12 = vand.u32 15, %v1157_v23  ;;  %vm1406_vm15 = vcmp.lt.s32.totalorder %v1157_v23, 111  ;;  %vm1405_vm2 = vcmp.lt.s32.totalorder %v1157_v23, 112 }
  0x94   : > { %vm1403_vm4 = vcmp.lt.s32.totalorder %v1157_v23, 113  ;;  %vm1402_vm7 = vcmp.lt.s32.totalorder %v1157_v23, 127  ;;  %vm1396_vm8 = vcmp.lt.s32.totalorder %v1157_v23, 1  ;;  %vm1401_vm9 = vcmp.ge.s32.totalorder %v1157_v23, 16  ;;  %v982_v5 = vpop.eup %981 }
  0x95   : > { %v385_v11 = vand.u32 15, %v1160_v48  ;;  %vm1404_vm13 = vcmp.lt.s32.totalorder %v1160_v48, 240  ;;  %vm1170_vm0 = vcmp.le.s32.totalorder %v378_v12, 14  ;;  %vm1203_vm5 = vcmp.ge.s32.totalorder %v378_v12, 1 }
  0x96   : > { %vm1397_vm10 = vcmp.lt.s32.totalorder %v1157_v23, 15  ;;  %vm1249_vm11 = vmand %vm1401_vm9, %vm1170_vm0  ;;  %vm1398_vm12 = vcmp.lt.s32.totalorder %v1157_v23, 16  ;;  %v539_v6 = vmul.f32 256.0, %v982_v5 }
  0x97   : > { %vm1165_vm14 = vcmp.le.s32.totalorder %v385_v11, 14  ;;  %vm1197_vm3 = vcmp.ge.s32.totalorder %v385_v11, 1 }
  0x98   : > { %vm1178_vm1 = vmand %vm1404_vm13, %vm1165_vm14  ;;  %v540_v7 = vsub.f32 1.0, %v539_v6 }
  0x99   : > { %449 = vrot.lane.b32.xlu0 %v1129_v47, %s1019_s29  ;;  %458 = vrot.lane.b32.xlu1 %v1129_v47, %s1016_s26  ;;  %vm1211_vm6 = vmand %vm1404_vm13, %vm1197_vm3 }
  0x9a   : > { %478 = vrot.lane.b32.xlu2 %v1129_v47, %s1018_s28  ;;  %v541_v9 = vmul.f32 %v982_v5, %v540_v7 }
  0x9c   : > { %v542_v46 = vadd.f32 %v982_v5, %v541_v9 }
  0xa1   : > { %427 = vrot.lane.b32.xlu0 %v1120_v37, %s1020_s30  ;;  %438 = vrot.lane.b32.xlu1 %v1120_v37, %s1021_s5 }
  0xa2   : > { %469 = vrot.lane.b32.xlu2 %v1129_v47, %s1017_s27 }
  0xa9   : > { %420 = vrot.lane.b32.xlu0 %v1129_v47, %s1022_s6  ;;  %429 = vrot.lane.b32.xlu1 %v1129_v47, %s1020_s30 }
  0xaa   : > { %447 = vrot.lane.b32.xlu2 %v1120_v37, %s1019_s29 }
  0xb1   : > { %407 = vrot.lane.b32.xlu1 %v1120_v37, %s1023_s7  ;;  %488 = vperm.xlu0 %965, %v1067_v0  }
  0xb2   : > { %440 = vrot.lane.b32.xlu2 %v1129_v47, %s1021_s5 }
  0xb9   : > { %966 = vset.pattern.permute.xlu0 %v1026_v4 }
  0xba   : > { %418 = vrot.lane.b32.xlu2 %v1120_v37, %s1022_s6  ;;  %568 = vperm.xlu0 %966, %v1067_v0  }
  0xc2   : > { %409 = vrot.lane.b32.xlu2 %v1129_v47, %s1023_s7  ;;  %967 = vset.pattern.permute.xlu0 %v1027_v8 }
  0xc3   : > { %574 = vperm.xlu0 %967, %v1067_v0  }
  0xec   : > { %v477_v10 = vpop.permute.xlu2 %476 }
  0xf4   : > { %v479_v16 = vpop.permute.xlu2 %478 }
  0xf5   : > { %v481_v17 = vsel %vm1406_vm15, %v477_v10, %v479_v16  ;;  %v482_v18 = vsel %vm1406_vm15, %v479_v16, %v477_v10 }
  0xf6   : > { %891 = vmatpush.msk.msra.mxu0 %vm1170_vm0, %v481_v17  ;;  %899 = vmatpush.msk.msra.mxu1 %vm1178_vm1, %v482_v18 }
  0xfc   : > { %v470_v19 = vpop.permute.xlu2 %469 }
 0x103   : > { %v457_v20 = vpop.permute.xlu0 %456  ;;  %v468_v21 = vpop.permute.xlu1 %467 }
 0x104   : > { %v472_v24 = vsel %vm1405_vm2, %v468_v21, %v470_v19  ;;  %v473_v25 = vsel %vm1405_vm2, %v470_v19, %v468_v21  ;;  %v448_v27 = vpop.permute.xlu2 %447 }
 0x105   : > { %503 = vmatpush.msra.mxu0 %v472_v24  ;;  %900 = vmatpush.msk.msra.mxu1 %vm1404_vm13, %v473_v25 }
 0x10b   : > { %v450_v32 = vpop.permute.xlu0 %449  ;;  %v459_v33 = vpop.permute.xlu1 %458 }
 0x10c   : > { %v461_v34 = vsel %vm1403_vm4, %v457_v20, %v459_v33  ;;  %v462_v35 = vsel %vm1403_vm4, %v459_v33, %v457_v20  ;;  %v452_v26 = vsel %vm1402_vm7, %v448_v27, %v450_v32  ;;  %v453_v36 = vsel %vm1402_vm7, %v450_v32, %v448_v27  ;;  %v441_v38 = vpop.permute.xlu2 %440 }
 0x10d   : > { %892 = vmatpush.msk.msra.mxu0 %vm1203_vm5, %v461_v34  ;;  %901 = vmatpush.msk.msra.mxu1 %vm1211_vm6, %v462_v35 }
 0x10f   : > { %893 = vmatpush.msk.msra.mxu0 %vm1170_vm0, %v452_v26  ;;  %902 = vmatpush.msk.msra.mxu1 %vm1165_vm14, %v453_v36 }
 0x111   : > { %506 = vmatpush.msra.mxu0 %v1120_v37  ;;  %526 = vmatpush.msra.mxu1 %v1129_v47 }
 0x113   : > { %v428_v39 = vpop.permute.xlu0 %427  ;;  %v439_v40 = vpop.permute.xlu1 %438 }
 0x114   : > { %v444_v41 = vsel %vm1396_vm8, %v441_v38, %v439_v40  ;;  %v443_v42 = vsel %vm1396_vm8, %v439_v40, %v441_v38  ;;  %v419_v43 = vpop.permute.xlu2 %418  ;;  %vm1400_vm8 = vcmp.lt.s32.totalorder %v1157_v23, 17 }
 0x115   : > { %894 = vmatpush.msk.msra.mxu0 %vm1203_vm5, %v444_v41  ;;  %903 = vmatpush.msk.msra.mxu1 %vm1197_vm3, %v443_v42 }
 0x11b   : > { %v421_v45 = vpop.permute.xlu0 %420  ;;  %v430_v49 = vpop.permute.xlu1 %429 }
 0x11c   : > { %v433_v50 = vsel %vm1397_vm10, %v430_v49, %v428_v39  ;;  %v432_v51 = vsel %vm1397_vm10, %v428_v39, %v430_v49  ;;  %v424_v52 = vsel %vm1398_vm12, %v421_v45, %v419_v43  ;;  %v423_v53 = vsel %vm1398_vm12, %v419_v43, %v421_v45  ;;  %vm1273_vm10 = vmand %vm1401_vm9, %vm1203_vm5  ;;  %v410_v55 = vpop.permute.xlu2 %409 }
 0x11d   : > { %895 = vmatpush.msk.msra.mxu0 %vm1249_vm11, %v433_v50  ;;  %904 = vmatpush.msk.msra.mxu1 %vm1165_vm14, %v432_v51  ;;  %vm1399_vm12 = vcmask 588800  }
 0x11f   : > { %896 = vmatpush.msk.msra.mxu0 %vm1401_vm9, %v424_v52  ;;  %529 = vmatpush.msra.mxu1 %v423_v53 }
 0x123   : > { %v408_v56 = vpop.permute.xlu1 %407  ;;  %v489_v60 = vpop.permute.xlu0 %488 }
 0x124   : > { %v413_v58 = vsel %vm1400_vm8, %v410_v55, %v408_v56  ;;  %v412_v59 = vsel %vm1400_vm8, %v408_v56, %v410_v55 }
 0x125   : > { %897 = vmatpush.msk.msra.mxu0 %vm1273_vm10, %v413_v58  ;;  %905 = vmatpush.msk.msra.mxu1 %vm1197_vm3, %v412_v59 }
 0x126   : > { %898 = vmatmul.msk.f32.vlgmr.msra.gmra.mxu0 %vm1399_vm12, %v406_v57  ;;  %906 = vmatmul.msk.f32.vlgmr.msra.gmra.mxu1 %vm1399_vm12, %v406_v57  ;;  %vm543_vm12 = vweird.f32 %v982_v5 }
 0x127   : > { %v1292_v22 = vsel %vm543_vm12, %v982_v5, %v542_v46 }
 0x12c   : > { %v569_v32 = vpop.permute.xlu0 %568 }
 0x135   : > { %v575_v39 = vpop.permute.xlu0 %574 }
 0x1a3   : > { %v512_v61 = vpop.f32.mrf.mxu0  ;;  %v532_v62 = vpop.f32.mrf.mxu1 }
 0x1a4   : > { %v513_v63 = vadd.f32 %v512_v61, %v489_v60  ;;  %v533_v1 = vadd.f32 %v532_v62, %v489_v60 }
 0x1a6   : > { %v535_v2 = vadd.f32 %v533_v1, %v513_v63 }
 0x1a8   : > { %536 = vadd.xlane.f32.xlu1 %v535_v2 }
 0x21b   : > { %v537_v10 = vpop.xlane.xlu1 %536 }
 0x21c   : > { %v545_v11 = vmul.f32 %v1292_v22, %v537_v10 }
 0x21e   : > { %v546_v12 = vsub.f32 %v513_v63, %v545_v11  ;;  %v547_v16 = vsub.f32 %v533_v1, %v545_v11 }
 0x220   : > { %v548_v17 = vmul.f32 %v546_v12, %v546_v12  ;;  %v549_v18 = vmul.f32 %v547_v16, %v547_v16 }
 0x222   : > { %v550_v19 = vadd.f32 %v549_v18, %v548_v17 }
 0x224   : > { %551 = vadd.xlane.f32.xlu2 %v550_v19 }
 0x297   : > { %v552_v20 = vpop.xlane.xlu2 %551 }
 0x298   : > { %v553_v21 = vmul.f32 %v552_v20, %v1292_v22 }
 0x29a   : > { %v554_v24 = vadd.f32 1e-05, %v553_v21 }
 0x29c   : > { %983 = vrsqrt.f32 %v554_v24  ;;  %vm561_vm8 = vweird.f32 %v554_v24 }
 0x2a2   : > { %v984_v25 = vpop.eup %983 }
 0x2a3   : > { %v556_v27 = vmul.f32 %v984_v25, %v554_v24  ;;  %vm562_vm12 = vweird.f32 %v984_v25 }
 0x2a4   : > { %vm563_vm9 = vmor %vm561_vm8, %vm562_vm12 }
 0x2a5   : > { %v557_v29 = vmul.f32 %v984_v25, %v556_v27 }
 0x2a7   : > { %v558_v33 = vmul.f32 0.5, %v557_v29 }
 0x2a9   : > { %v559_v34 = vsub.f32 1.5, %v558_v33 }
 0x2ab   : > { %v560_v35 = vmul.f32 %v984_v25, %v559_v34 }
 0x2ad   : > { %v564_v26 = vsel %vm563_vm9, %v984_v25, %v560_v35 }
 0x2ae   : > { %v565_v36 = vmul.f32 %v564_v26, %v546_v12  ;;  %v566_v38 = vmul.f32 %v564_v26, %v547_v16 }
 0x2b0   : > { %v571_v40 = vmul.f32 %v569_v32, %v565_v36  ;;  %v572_v41 = vmul.f32 %v569_v32, %v566_v38  ;;  %v1028_v32 = vmov 7  }
 0x2b1   : > { %968 = vset.pattern.permute.xlu0 %v1028_v32 }
 0x2b2   : > { %v577_v42 = vadd.f32 %v575_v39, %v571_v40  ;;  %v578_v43 = vadd.f32 %v575_v39, %v572_v41 }
 0x2b4   : > { %v907_v45 = vmul.f32 -1.442695, %v577_v42  ;;  %v908_v49 = vmul.f32 -1.442695, %v578_v43 }
 0x2b6   : > { %985 = vpow2.f32 %v907_v45 }
 0x2b7   : > { %987 = vpow2.f32 %v908_v49 }
 0x2bc   : > { %v986_v50 = vpop.eup %985 }
 0x2bd   : > { %v988_v51 = vpop.eup %987  ;;  %v585_v52 = vadd.f32 1.0, %v986_v50 }
 0x2be   : > { %v586_v53 = vadd.f32 1.0, %v988_v51 }
 0x2bf   : > { %989 = vrcp.f32 %v585_v52  ;;  %v598_v60 = vand.u32 2147483648, %v585_v52  ;;  %v596_v63 = vand.u32 2147483647, %v585_v52  ;;  %vm592_vm12 = vweird.f32 %v585_v52 }
 0x2c0   : > { %991 = vrcp.f32 %v586_v53  ;;  %v613_v1 = vand.u32 2147483648, %v586_v53  ;;  %v611_v3 = vand.u32 2147483647, %v586_v53  ;;  %vm607_vm4 = vweird.f32 %v586_v53 }
 0x2c1   : > { %v599_v5 = vor.u32 1.1754944e-38, %v598_v60  ;;  %vm597_vm13 = vcmp.eq.f32.partialorder %v596_v63, 8.507059e+37  ;;  %v1029_v60 = vmov 8  }
 0x2c2   : > { %v614_v8 = vor.u32 1.1754944e-38, %v613_v1  ;;  %vm612_vm15 = vcmp.eq.f32.partialorder %v611_v3, 8.507059e+37 }
 0x2c5   : > { %v990_v55 = vpop.eup %989 }
 0x2c6   : > { %v992_v56 = vpop.eup %991  ;;  %v588_v57 = vmul.f32 %v990_v55, %v585_v52  ;;  %vm593_vm8 = vweird.f32 %v990_v55 }
 0x2c7   : > { %v603_v58 = vmul.f32 %v992_v56, %v586_v53  ;;  %vm608_vm9 = vweird.f32 %v992_v56  ;;  %vm594_vm7 = vmor %vm592_vm12, %vm593_vm8 }
 0x2c8   : > { %v589_v59 = vsub.f32 1.0, %v588_v57  ;;  %vm609_vm2 = vmor %vm607_vm4, %vm608_vm9  ;;  %vm1432_vm9 = vcmp.lt.s32.totalorder %v1157_v23, 127 }
 0x2c9   : > { %v604_v61 = vsub.f32 1.0, %v603_v58  ;;  %vm1433_vm12 = vmmov %vm1432_vm9 }
 0x2ca   : > { %v590_v62 = vmul.f32 %v990_v55, %v589_v59 }
 0x2cb   : > { %v605_v2 = vmul.f32 %v992_v56, %v604_v61 }
 0x2cc   : > { %v591_v4 = vadd.f32 %v990_v55, %v590_v62 }
 0x2cd   : > { %v606_v6 = vadd.f32 %v992_v56, %v605_v2 }
 0x2ce   : > { %v595_v7 = vsel %vm594_vm7, %v990_v55, %v591_v4  ;;  %vm1429_vm7 = vcmp.lt.s32.totalorder %v1160_v48, 240 }
 0x2cf   : > { %v600_v9 = vsel %vm597_vm13, %v599_v5, %v595_v7  ;;  %v610_v46 = vsel %vm609_vm2, %v992_v56, %v606_v6  ;;  %vm1425_vm13 = vcmp.lt.s32.totalorder %v1157_v23, 111  ;;  %vm1427_vm2 = vcmp.lt.s32.totalorder %v1157_v23, 112 }
 0x2d0   : > { %v615_v10 = vsel %vm612_vm15, %v614_v8, %v610_v46  ;;  %v617_v11 = vmul.f32 %v600_v9, %v577_v42  ;;  %vm1426_vm15 = vmmov %vm1425_vm13 }
 0x2d1   : > { %v618_v12 = vmul.f32 %v615_v10, %v578_v43  ;;  %vm1428_vm4 = vmmov %vm1427_vm2 }
 0x2d2   : > { %669 = vrot.lane.b32.xlu0 %v617_v11, %s1017_s27  ;;  %677 = vrot.lane.b32.xlu2 %v617_v11, %s1018_s28 }
 0x2d3   : > { %679 = vrot.lane.b32.xlu1 %v618_v12, %s1018_s28 }
 0x2da   : > { %671 = vrot.lane.b32.xlu0 %v618_v12, %s1017_s27  ;;  %663 = vrot.lane.b32.xlu2 %v618_v12, %s1016_s26 }
 0x2db   : > { %653 = vrot.lane.b32.xlu1 %v617_v11, %s1019_s29 }
 0x2e2   : > { %661 = vrot.lane.b32.xlu0 %v617_v11, %s1016_s26  ;;  %645 = vrot.lane.b32.xlu2 %v617_v11, %s1021_s5 }
 0x2e3   : > { %647 = vrot.lane.b32.xlu1 %v618_v12, %s1021_s5 }
 0x2ea   : > { %655 = vrot.lane.b32.xlu0 %v618_v12, %s1019_s29  ;;  %639 = vrot.lane.b32.xlu2 %v618_v12, %s1020_s30 }
 0x2eb   : > { %629 = vrot.lane.b32.xlu1 %v617_v11, %s1022_s6 }
 0x2f2   : > { %637 = vrot.lane.b32.xlu0 %v617_v11, %s1020_s30  ;;  %621 = vrot.lane.b32.xlu2 %v617_v11, %s1023_s7 }
 0x2f3   : > { %623 = vrot.lane.b32.xlu1 %v618_v12, %s1023_s7 }
 0x2fa   : > { %631 = vrot.lane.b32.xlu0 %v618_v12, %s1022_s6 }
 0x302   : > { %686 = vperm.xlu0 %968, %v1067_v0  }
 0x30a   : > { %969 = vset.pattern.permute.xlu0 %v1029_v60 }
 0x30b   : > { %758 = vperm.xlu0 %969, %v1067_v0  }
 0x32c   : > { %v678_v17 = vpop.permute.xlu2 %677 }
 0x334   : > { %v664_v29 = vpop.permute.xlu2 %663 }
 0x33c   : > { %v646_v35 = vpop.permute.xlu2 %645 }
 0x344   : > { %v670_v16 = vpop.permute.xlu0 %669  ;;  %v640_v14 = vpop.permute.xlu2 %639 }
 0x345   : > { %v680_v18 = vpop.permute.xlu1 %679 }
 0x346   : > { %v681_v19 = vsel %vm1425_vm13, %v678_v17, %v680_v18  ;;  %v682_v20 = vsel %vm1426_vm15, %v680_v18, %v678_v17  ;;  %vm1434_vm13 = vcmp.lt.s32.totalorder %v1157_v23, 1 }
 0x347   : > { %910 = vmatpush.msk.msra.mxu2 %vm1170_vm0, %v681_v19  ;;  %918 = vmatpush.msk.msra.mxu3 %vm1178_vm1, %v682_v20  ;;  %vm1430_vm1 = vcmp.lt.s32.totalorder %v1157_v23, 113 }
 0x348   : > { %vm1431_vm8 = vmmov %vm1430_vm1 }
 0x34c   : > { %v672_v21 = vpop.permute.xlu0 %671  ;;  %v622_v51 = vpop.permute.xlu2 %621 }
 0x34d   : > { %v673_v24 = vsel %vm1427_vm2, %v670_v16, %v672_v21  ;;  %v674_v25 = vsel %vm1428_vm4, %v672_v21, %v670_v16  ;;  %v654_v27 = vpop.permute.xlu1 %653  ;;  %vm1440_vm4 = vcmp.ge.s32.totalorder %v1157_v23, 16 }
 0x34e   : > { %700 = vmatpush.msra.mxu2 %v673_v24  ;;  %919 = vmatpush.msk.msra.mxu3 %vm1429_vm7, %v674_v25  ;;  %vm1443_vm7 = vcmask 588800  }
 0x354   : > { %v662_v33 = vpop.permute.xlu0 %661 }
 0x355   : > { %v665_v15 = vsel %vm1430_vm1, %v662_v33, %v664_v29  ;;  %v666_v34 = vsel %vm1431_vm8, %v664_v29, %v662_v33  ;;  %v648_v48 = vpop.permute.xlu1 %647  ;;  %vm1444_vm1 = vmmov %vm1443_vm7 }
 0x356   : > { %911 = vmatpush.msk.msra.mxu2 %vm1203_vm5, %v665_v15  ;;  %920 = vmatpush.msk.msra.mxu3 %vm1211_vm6, %v666_v34  ;;  %v650_v31 = vsel %vm1434_vm13, %v648_v48, %v646_v35  ;;  %vm1435_vm6 = vmmov %vm1434_vm13 }
 0x357   : > { %v649_v39 = vsel %vm1435_vm6, %v646_v35, %v648_v48 }
 0x35c   : > { %v656_v26 = vpop.permute.xlu0 %655 }
 0x35d   : > { %v657_v36 = vsel %vm1432_vm9, %v654_v27, %v656_v26  ;;  %v658_v38 = vsel %vm1433_vm12, %v656_v26, %v654_v27  ;;  %v630_v40 = vpop.permute.xlu1 %629 }
 0x35e   : > { %912 = vmatpush.msk.msra.mxu2 %vm1170_vm0, %v657_v36  ;;  %921 = vmatpush.msk.msra.mxu3 %vm1165_vm14, %v658_v38  ;;  %vm1436_vm0 = vcmp.lt.s32.totalorder %v1157_v23, 15 }
 0x35f   : > { %vm1437_vm15 = vmmov %vm1436_vm0 }
 0x360   : > { %703 = vmatpush.msra.mxu2 %v617_v11  ;;  %723 = vmatpush.msra.mxu3 %v618_v12 }
 0x362   : > { %913 = vmatpush.msk.msra.mxu2 %vm1203_vm5, %v650_v31  ;;  %922 = vmatpush.msk.msra.mxu3 %vm1197_vm3, %v649_v39  ;;  %vm1438_vm5 = vcmp.lt.s32.totalorder %v1157_v23, 16 }
 0x363   : > { %vm1439_vm2 = vmmov %vm1438_vm5 }
 0x364   : > { %v638_v41 = vpop.permute.xlu0 %637 }
 0x365   : > { %v642_v42 = vsel %vm1436_vm0, %v640_v14, %v638_v41  ;;  %v641_v43 = vsel %vm1437_vm15, %v638_v41, %v640_v14  ;;  %v624_v45 = vpop.permute.xlu1 %623 }
 0x366   : > { %914 = vmatpush.msk.msra.mxu2 %vm1249_vm11, %v642_v42  ;;  %923 = vmatpush.msk.msra.mxu3 %vm1165_vm14, %v641_v43  ;;  %vm1441_vm11 = vcmp.lt.s32.totalorder %v1157_v23, 17  ;;  %v1030_v23 = vmov 9  }
 0x367   : > { %v626_v13 = vsel %vm1441_vm11, %v624_v45, %v622_v51  ;;  %vm1442_vm14 = vmmov %vm1441_vm11  ;;  %970 = vset.pattern.permute.xlu0 %v1030_v23 }
 0x368   : > { %v625_v52 = vsel %vm1442_vm14, %v622_v51, %v624_v45  ;;  %764 = vperm.xlu0 %970, %v1067_v0  }
 0x36c   : > { %v632_v30 = vpop.permute.xlu0 %631 }
 0x36d   : > { %v634_v49 = vsel %vm1438_vm5, %v632_v30, %v630_v40  ;;  %v633_v50 = vsel %vm1439_vm2, %v630_v40, %v632_v30 }
 0x36e   : > { %915 = vmatpush.msk.msra.mxu2 %vm1440_vm4, %v634_v49  ;;  %726 = vmatpush.msra.mxu3 %v633_v50 }
 0x370   : > { %916 = vmatpush.msk.msra.mxu2 %vm1273_vm10, %v626_v13  ;;  %924 = vmatpush.msk.msra.mxu3 %vm1197_vm3, %v625_v52 }
 0x371   : > { %917 = vmatmul.msk.f32.vlgmr.msra.gmra.mxu2 %vm1443_vm7, %v909_v44  ;;  %925 = vmatmul.msk.f32.vlgmr.msra.gmra.mxu3 %vm1444_vm1, %v909_v44 }
 0x374   : > { %v687_v53 = vpop.permute.xlu0 %686 }
 0x37d   : > { %v759_v9 = vpop.permute.xlu0 %758 }
 0x3da   : > { %v765_v17 = vpop.permute.xlu0 %764 }
 0x3f4   : > { %v709_v55 = vpop.f32.mrf.mxu2  ;;  %v729_v56 = vpop.f32.mrf.mxu3 }
 0x3f5   : > { %v710_v57 = vadd.f32 %v709_v55, %v687_v53  ;;  %v730_v58 = vadd.f32 %v729_v56, %v687_v53 }
 0x3f7   : > { %v732_v59 = vadd.f32 %v730_v58, %v710_v57 }
 0x3f9   : > { %733 = vadd.xlane.f32.xlu2 %v732_v59 }
 0x46c   : > { %v734_v28 = vpop.xlane.xlu2 %733 }
 0x46d   : > { %v735_v54 = vmul.f32 %v734_v28, %v1292_v22 }
 0x46f   : > { %v736_v61 = vsub.f32 %v710_v57, %v735_v54  ;;  %v737_v62 = vsub.f32 %v730_v58, %v735_v54 }
 0x471   : > { %v738_v63 = vmul.f32 %v736_v61, %v736_v61  ;;  %v739_v1 = vmul.f32 %v737_v62, %v737_v62 }
 0x473   : > { %v740_v2 = vadd.f32 %v739_v1, %v738_v63 }
 0x475   : > { %741 = vadd.xlane.f32.xlu1 %v740_v2 }
 0x4e8   : > { %v742_v3 = vpop.xlane.xlu1 %741 }
 0x4e9   : > { %v743_v4 = vmul.f32 %v742_v3, %v1292_v22 }
 0x4eb   : > { %v744_v5 = vadd.f32 1e-05, %v743_v4 }
 0x4ed   : > { %993 = vrsqrt.f32 %v744_v5  ;;  %vm751_vm10 = vweird.f32 %v744_v5 }
 0x4f3   : > { %v994_v6 = vpop.eup %993 }
 0x4f4   : > { %v746_v7 = vmul.f32 %v994_v6, %v744_v5  ;;  %vm752_vm3 = vweird.f32 %v994_v6 }
 0x4f5   : > { %vm753_vm8 = vmor %vm751_vm10, %vm752_vm3 }
 0x4f6   : > { %v747_v8 = vmul.f32 %v994_v6, %v746_v7 }
 0x4f8   : > { %v748_v46 = vmul.f32 0.5, %v747_v8 }
 0x4fa   : > { %v749_v0 = vsub.f32 1.5, %v748_v46 }
 0x4fc   : > { %v750_v10 = vmul.f32 %v994_v6, %v749_v0 }
 0x4fe   : > { %v754_v11 = vsel %vm753_vm8, %v994_v6, %v750_v10 }
 0x4ff   : > { %v755_v12 = vmul.f32 %v754_v11, %v736_v61  ;;  %v756_v16 = vmul.f32 %v754_v11, %v737_v62 }
 0x501   : > { %v761_v18 = vmul.f32 %v759_v9, %v755_v12  ;;  %v762_v19 = vmul.f32 %v759_v9, %v756_v16 }
 0x503   : > { %v767_v20 = vadd.f32 %v765_v17, %v761_v18  ;;  %v768_v22 = vadd.f32 %v765_v17, %v762_v19 }
 0x505   : > { %v926_v21 = vmul.f32 -1.442695, %v767_v20  ;;  %v927_v24 = vmul.f32 -1.442695, %v768_v22 }
 0x507   : > { %995 = vpow2.f32 %v926_v21 }
 0x508   : > { %997 = vpow2.f32 %v927_v24 }
 0x50d   : > { %v996_v25 = vpop.eup %995 }
 0x50e   : > { %v998_v27 = vpop.eup %997  ;;  %v775_v29 = vadd.f32 1.0, %v996_v25 }
 0x50f   : > { %v776_v32 = vadd.f32 1.0, %v998_v27 }
 0x510   : > { %999 = vrcp.f32 %v775_v29  ;;  %v788_v26 = vand.u32 2147483648, %v775_v29  ;;  %v786_v31 = vand.u32 2147483647, %v775_v29  ;;  %vm782_vm13 = vweird.f32 %v775_v29 }
 0x511   : > { %1001 = vrcp.f32 %v776_v32  ;;  %v803_v39 = vand.u32 2147483648, %v776_v32  ;;  %v801_v14 = vand.u32 2147483647, %v776_v32  ;;  %vm797_vm0 = vweird.f32 %v776_v32 }
 0x512   : > { %v789_v42 = vor.u32 1.1754944e-38, %v788_v26  ;;  %vm787_vm15 = vcmp.eq.f32.partialorder %v786_v31, 8.507059e+37 }
 0x513   : > { %v804_v30 = vor.u32 1.1754944e-38, %v803_v39  ;;  %vm802_vm2 = vcmp.eq.f32.partialorder %v801_v14, 8.507059e+37 }
 0x516   : > { %v1000_v33 = vpop.eup %999 }
 0x517   : > { %v1002_v15 = vpop.eup %1001  ;;  %v778_v34 = vmul.f32 %v1000_v33, %v775_v29  ;;  %vm783_vm9 = vweird.f32 %v1000_v33 }
 0x518   : > { %v793_v48 = vmul.f32 %v1002_v15, %v776_v32  ;;  %vm798_vm12 = vweird.f32 %v1002_v15  ;;  %vm784_vm6 = vmor %vm782_vm13, %vm783_vm9 }
 0x519   : > { %v779_v35 = vsub.f32 1.0, %v778_v34  ;;  %vm799_vm5 = vmor %vm797_vm0, %vm798_vm12 }
 0x51a   : > { %v794_v36 = vsub.f32 1.0, %v793_v48 }
 0x51b   : > { %v780_v38 = vmul.f32 %v1000_v33, %v779_v35 }
 0x51c   : > { %v795_v40 = vmul.f32 %v1002_v15, %v794_v36 }
 0x51d   : > { %v781_v41 = vadd.f32 %v1000_v33, %v780_v38 }
 0x51e   : > { %v796_v43 = vadd.f32 %v1002_v15, %v795_v40 }
 0x51f   : > { %v785_v45 = vsel %vm784_vm6, %v1000_v33, %v781_v41 }
 0x520   : > { %v790_v49 = vsel %vm787_vm15, %v789_v42, %v785_v45  ;;  %v800_v50 = vsel %vm799_vm5, %v1002_v15, %v796_v43 }
 0x521   : > { %v805_v51 = vsel %vm802_vm2, %v804_v30, %v800_v50  ;;  %v807_v44 = vmul.f32 %v790_v49, %v767_v20 }
 0x522   : > { %v808_v13 = vmul.f32 %v805_v51, %v768_v22 }
 0x523   : > { %v809_v52 = vadd.f32 %v807_v44, %v1120_v37 }
 0x524   : > { %v810_v53 = vadd.f32 %v808_v13, %v1129_v47 }
 0x525   : > { %811 = vst [vmem:[%s217_s14] sm:$0xff] %v809_v52 }
 0x526   : > { %812 = vst [vmem:[%s217_s14 + $0x8] sm:$0xff] %v810_v53 }
 0x527 PF: > { %s14_s15 = sadd.s32 1, %s1009_s15  }
 0x528   : > { %p11_p4 = scmp.ge.s32.totalorder %s14_s15, 4  }
 0x52a   :  { %13 = sbr.rel (!%p11_p4) target bundleno = 1 (0x1), region = 70 }

</bundles_post_ra>
